<compile_context>
chip_gen: v5e
topology: v5e:2x2
jax: 0.10.0
libtpu: 0.0.40
codegen_flags: <defaults>
</compile_context>

<pallas_src>
import jax
import jax.numpy as jnp
from jax import lax
from jax.experimental import pallas as pl
from jax.experimental.pallas import tpu as pltpu


def basic_block_kernel(x_ref, w1_ref, w2_ref, s1_ref, b1_ref, s2_ref, b2_ref,
                       o_ref, xpad_ref, midpad_ref, col_ref):
    # x_ref     : (H, W, Cp)         full image for this batch element
    # w1_ref    : (9*Cp, Cp)         conv1 weights, im2col layout
    # w2_ref    : (9*Cp, Cp)         conv2 weights, im2col layout
    # s*/b*     : (1, Cp)            folded BN scale / bias (f32)
    # o_ref     : (TH, W, Cp)        output row strip
    # xpad_ref  : (TH+4, W+2, Cp)    zero-haloed input rows for this strip
    # midpad_ref: (TH+2, W+2, Cp)    zero-haloed relu(bn1(conv1)) rows
    # col_ref   : ((TH+2)*W, 9*Cp)   shared im2col buffer (conv1 then conv2)
    H, W, Cp = x_ref.shape
    TH = o_ref.shape[0]
    s_id = pl.program_id(1)
    r0 = pl.multiple_of(s_id * TH, TH)          # first output row of strip

    # ---- zero only the 1-px left/right halo columns (rows handled below) ----
    xpad_ref[:, 0:1, :] = jnp.zeros((TH + 4, 1, Cp), xpad_ref.dtype)
    xpad_ref[:, W + 1:W + 2, :] = jnp.zeros((TH + 4, 1, Cp), xpad_ref.dtype)
    midpad_ref[:, 0:1, :] = jnp.zeros((TH + 2, 1, Cp), midpad_ref.dtype)
    midpad_ref[:, W + 1:W + 2, :] = jnp.zeros((TH + 2, 1, Cp), midpad_ref.dtype)

    # ---- gather the TH+4 input rows this strip needs (zero outside [0,H)) ----
    @pl.loop(0, TH + 4)
    def _copy_row(i):
        g = r0 - 2 + i                           # global input row
        valid = jnp.logical_and(g >= 0, g < H)
        row = x_ref[pl.ds(jnp.clip(g, 0, H - 1), 1), :, :]     # (1, W, Cp)
        row = jnp.where(valid, row, jnp.zeros_like(row))
        xpad_ref[pl.ds(i, 1), pl.ds(1, W), :] = row

    # ---- conv1: single im2col matmul, K = 9*Cp ----
    for t in range(9):
        dy, dx = t // 3, t % 3
        patch = xpad_ref[dy:dy + TH + 2, dx:dx + W, :]
        col_ref[:, t * Cp:(t + 1) * Cp] = patch.reshape((TH + 2) * W, Cp)
    acc1 = jnp.dot(col_ref[...], w1_ref[...],
                   preferred_element_type=jnp.float32)         # ((TH+2)*W, Cp)

    # ---- bn1 (folded) + relu, write haloed intermediate ----
    out1 = jnp.maximum(acc1 * s1_ref[...] + b1_ref[...], 0.0)
    midpad_ref[:, pl.ds(1, W), :] = (
        out1.reshape(TH + 2, W, Cp).astype(midpad_ref.dtype))

    # mid rows falling outside the image are conv2's zero padding
    @pl.when(s_id == 0)
    def _():
        midpad_ref[0:1, :, :] = jnp.zeros((1, W + 2, Cp), midpad_ref.dtype)

    @pl.when(s_id == pl.num_programs(1) - 1)
    def _():
        midpad_ref[TH + 1:TH + 2, :, :] = jnp.zeros((1, W + 2, Cp),
                                                    midpad_ref.dtype)

    # ---- conv2: single im2col matmul, K = 9*Cp (reuse col buffer) ----
    for t in range(9):
        dy, dx = t // 3, t % 3
        patch = midpad_ref[dy:dy + TH, dx:dx + W, :]
        col_ref[0:TH * W, t * Cp:(t + 1) * Cp] = patch.reshape(TH * W, Cp)
    acc2 = jnp.dot(col_ref[0:TH * W, :], w2_ref[...],
                   preferred_element_type=jnp.float32)         # (TH*W, Cp)

    # ---- bn2 (folded) + residual add + relu (f32 epilogue) ----
    ident = x_ref[pl.ds(r0, TH), :, :].reshape(TH * W, Cp).astype(jnp.float32)
    res = jnp.maximum(acc2 * s2_ref[...] + b2_ref[...] + ident, 0.0)
    o_ref[...] = res.reshape(TH, W, Cp).astype(o_ref.dtype)


def _fold_bn(gamma, beta, mean, var, eps):
    inv = gamma / jnp.sqrt(var + eps)
    return inv, beta - mean * inv


def basic_block_forward(x_nhwc, w1_hwio, w2_hwio,
                        g1, be1, m1, v1, g2, be2, m2, v2,
                        eps=1e-5, *, block_h=8, lane=128,
                        compute_dtype=jnp.float32):
    N, H, W, Cin = x_nhwc.shape
    C = w1_hwio.shape[-1]
    assert Cin == C, "residual add requires inplanes == planes (no downsample)"

    TH = min(block_h, H)
    assert H % TH == 0, "H must be divisible by the row-strip height"
    S = H // TH

    # Pad channels to a lane-dense multiple of 128 (dense output stores,
    # MXU-friendly K/N).  Padded channels carry zero weights/scale/bias.
    Cp = ((C + lane - 1) // lane) * lane
    pc = Cp - C

    s1, b1 = _fold_bn(g1, be1, m1, v1, eps)
    s2, b2 = _fold_bn(g2, be2, m2, v2, eps)
    s1 = jnp.pad(s1, (0, pc)).reshape(1, Cp).astype(jnp.float32)
    b1 = jnp.pad(b1, (0, pc)).reshape(1, Cp).astype(jnp.float32)
    s2 = jnp.pad(s2, (0, pc)).reshape(1, Cp).astype(jnp.float32)
    b2 = jnp.pad(b2, (0, pc)).reshape(1, Cp).astype(jnp.float32)

    # Single (channel-padded) copy of the input; spatial halo built in-kernel.
    xp = jnp.pad(x_nhwc, ((0, 0), (0, 0), (0, 0), (0, pc))).astype(compute_dtype)
    # (3,3,Cin,Cout) -> channel-pad -> (9*Cp, Cp) im2col weight matrix (once).
    w1p = jnp.pad(w1_hwio, ((0, 0), (0, 0), (0, pc), (0, pc))
                  ).reshape(9 * Cp, Cp).astype(compute_dtype)
    w2p = jnp.pad(w2_hwio, ((0, 0), (0, 0), (0, pc), (0, pc))
                  ).reshape(9 * Cp, Cp).astype(compute_dtype)

    out = pl.pallas_call(
        basic_block_kernel,
        out_shape=jax.ShapeDtypeStruct((N, H, W, Cp), jnp.float32),
        grid_spec=pltpu.PrefetchScalarGridSpec(
            num_scalar_prefetch=0,
            grid=(N, S),
            in_specs=[
                # full image per batch element; block index constant in s,
                # so it is DMA'd once per batch element
                pl.BlockSpec((None, H, W, Cp), lambda n, s: (n, 0, 0, 0)),
                pl.BlockSpec((9 * Cp, Cp), lambda n, s: (0, 0)),
                pl.BlockSpec((9 * Cp, Cp), lambda n, s: (0, 0)),
                pl.BlockSpec((1, Cp), lambda n, s: (0, 0)),
                pl.BlockSpec((1, Cp), lambda n, s: (0, 0)),
                pl.BlockSpec((1, Cp), lambda n, s: (0, 0)),
                pl.BlockSpec((1, Cp), lambda n, s: (0, 0)),
            ],
            out_specs=pl.BlockSpec((None, TH, W, Cp),
                                   lambda n, s: (n, s, 0, 0)),
            scratch_shapes=[
                pltpu.VMEM((TH + 4, W + 2, Cp), compute_dtype),     # xpad
                pltpu.VMEM((TH + 2, W + 2, Cp), compute_dtype),     # midpad
                pltpu.VMEM(((TH + 2) * W, 9 * Cp), compute_dtype),  # im2col
            ],
        ),
        compiler_params=pltpu.CompilerParams(
            dimension_semantics=("parallel", "parallel"),
            vmem_limit_bytes=32 * 1024 * 1024,
        ),
    )(xp, w1p, w2p, s1, b1, s2, b2)
    return out[..., :C]


def basic_block_reference(x_nhwc, w1_hwio, w2_hwio,
                          g1, be1, m1, v1, g2, be2, m2, v2, eps=1e-5):
    dn = ("NHWC", "HWIO", "NHWC")
    s1 = g1 / jnp.sqrt(v1 + eps)
    b1 = be1 - m1 * s1
    s2 = g2 / jnp.sqrt(v2 + eps)
    b2 = be2 - m2 * s2
    out = lax.conv_general_dilated(x_nhwc, w1_hwio, (1, 1), "SAME",
                                   dimension_numbers=dn)
    out = jnp.maximum(out * s1 + b1, 0.0)
    out = lax.conv_general_dilated(out, w2_hwio, (1, 1), "SAME",
                                   dimension_numbers=dn)
    out = out * s2 + b2
    return jnp.maximum(out + x_nhwc, 0.0)


if __name__ == "__main__":
    # Small shapes consistent with BasicBlock(inplanes=4, planes=4, stride=1).
    N, C, H, W = 2, 4, 16, 16

    key = jax.random.PRNGKey(0)
    ks = jax.random.split(key, 11)
    x_nchw = jax.random.normal(ks[0], (N, C, H, W), jnp.float32)

    # Conv weights in HWIO layout (equivalent to PyTorch OIHW transposed).
    w1 = jax.random.normal(ks[1], (3, 3, C, C), jnp.float32) * 0.2
    w2 = jax.random.normal(ks[2], (3, 3, C, C), jnp.float32) * 0.2

    # Deterministic BatchNorm parameters (inference-mode stats).
    g1 = jax.random.uniform(ks[3], (C,), jnp.float32, 0.5, 1.5)
    be1 = jax.random.normal(ks[4], (C,), jnp.float32) * 0.1
    m1 = jax.random.normal(ks[5], (C,), jnp.float32) * 0.1
    v1 = jax.random.uniform(ks[6], (C,), jnp.float32, 0.5, 1.5)
    g2 = jax.random.uniform(ks[7], (C,), jnp.float32, 0.5, 1.5)
    be2 = jax.random.normal(ks[8], (C,), jnp.float32) * 0.1
    m2 = jax.random.normal(ks[9], (C,), jnp.float32) * 0.1
    v2 = jax.random.uniform(ks[10], (C,), jnp.float32, 0.5, 1.5)

    # NCHW -> NHWC (kernel layout).
    x_nhwc = jnp.transpose(x_nchw, (0, 2, 3, 1))

    ref = basic_block_reference(x_nhwc, w1, w2,
                                g1, be1, m1, v1, g2, be2, m2, v2)

    # f32 matmul path (bit-for-bit-ish vs the XLA reference).
    out = basic_block_forward(x_nhwc, w1, w2,
                              g1, be1, m1, v1, g2, be2, m2, v2,
                              compute_dtype=jnp.float32)
    out = jax.block_until_ready(out)
    assert out.shape == (N, H, W, C)
    assert jnp.allclose(out, ref, rtol=1e-2, atol=1e-2), (
        float(jnp.max(jnp.abs(out - ref))))

    # bf16 matmul path (recommended on v6e/v7x): bf16 MXU inputs,
    # f32 accumulation + f32 BN/residual/ReLU epilogue.
    out_bf16 = basic_block_forward(x_nhwc, w1, w2,
                                   g1, be1, m1, v1, g2, be2, m2, v2,
                                   compute_dtype=jnp.bfloat16)
    out_bf16 = jax.block_until_ready(out_bf16)
    assert jnp.allclose(out_bf16, ref, rtol=5e-2, atol=5e-2), (
        float(jnp.max(jnp.abs(out_bf16 - ref))))

    print("KERNEL_OK")
</pallas_src>

<mosaic_0001>
module attributes {stable_mosaic.version = 11 : i64} {
  func.func @basic_block_kernel(%arg0: i32, %arg1: i32, %arg2: memref<1x16x16x128xf32, #tpu.memory_space<vmem>>, %arg3: memref<1152x128xf32, #tpu.memory_space<vmem>>, %arg4: memref<1152x128xf32, #tpu.memory_space<vmem>>, %arg5: memref<1x128xf32, #tpu.memory_space<vmem>>, %arg6: memref<1x128xf32, #tpu.memory_space<vmem>>, %arg7: memref<1x128xf32, #tpu.memory_space<vmem>>, %arg8: memref<1x128xf32, #tpu.memory_space<vmem>>, %arg9: memref<1x8x16x128xf32, #tpu.memory_space<vmem>>, %arg10: memref<12x18x128xf32, #tpu.memory_space<vmem>>, %arg11: memref<10x18x128xf32, #tpu.memory_space<vmem>>, %arg12: memref<160x1152xf32, #tpu.memory_space<vmem>>) attributes {dimension_semantics = [#tpu.dimension_semantics<parallel>, #tpu.dimension_semantics<parallel>], iteration_bounds = array<i64: 2, 2>, scalar_prefetch = 0 : i64, scratch_operands = 3 : i64, tpu.core_type = #tpu.core_type<tc>, window_params = [{transform_indices = @transform_0, window_bounds = array<i64: 1, 16, 16, 128>}, {pipeline_mode = #tpu.pipeline_mode<synchronous>, transform_indices = @transform_1, window_bounds = array<i64: 1152, 128>}, {pipeline_mode = #tpu.pipeline_mode<synchronous>, transform_indices = @transform_2, window_bounds = array<i64: 1152, 128>}, {pipeline_mode = #tpu.pipeline_mode<synchronous>, transform_indices = @transform_3, window_bounds = array<i64: 1, 128>}, {pipeline_mode = #tpu.pipeline_mode<synchronous>, transform_indices = @transform_4, window_bounds = array<i64: 1, 128>}, {pipeline_mode = #tpu.pipeline_mode<synchronous>, transform_indices = @transform_5, window_bounds = array<i64: 1, 128>}, {pipeline_mode = #tpu.pipeline_mode<synchronous>, transform_indices = @transform_6, window_bounds = array<i64: 1, 128>}, {transform_indices = @transform_7, window_bounds = array<i64: 1, 8, 16, 128>}]} {
    %c8_i32 = arith.constant 8 : i32
    %0 = arith.muli %arg1, %c8_i32 : i32
    %1 = tpu.assume_multiple %0, 8 : i32
    %cst = arith.constant 0.000000e+00 : f32
    %2 = vector.broadcast %cst : f32 to vector<12x1x128xf32>
    %c0 = arith.constant 0 : index
    %c0_0 = arith.constant 0 : index
    %c0_1 = arith.constant 0 : index
    %3 = vector.load %arg10[%c0, %c0_0, %c0_1] : memref<12x18x128xf32, #tpu.memory_space<vmem>>, vector<12x1x128xf32>
    tpu.vector_store %arg10[%c0, %c0_0, %c0_1], %2 {strides = array<i32>} : memref<12x18x128xf32, #tpu.memory_space<vmem>>, vector<12x1x128xf32>,
    %cst_2 = arith.constant 0.000000e+00 : f32
    %4 = vector.broadcast %cst_2 : f32 to vector<12x1x128xf32>
    %c0_3 = arith.constant 0 : index
    %c17 = arith.constant 17 : index
    %c0_4 = arith.constant 0 : index
    %5 = vector.load %arg10[%c0_3, %c17, %c0_4] : memref<12x18x128xf32, #tpu.memory_space<vmem>>, vector<12x1x128xf32>
    tpu.vector_store %arg10[%c0_3, %c17, %c0_4], %4 {strides = array<i32>} : memref<12x18x128xf32, #tpu.memory_space<vmem>>, vector<12x1x128xf32>,
    %cst_5 = arith.constant 0.000000e+00 : f32
    %6 = vector.broadcast %cst_5 : f32 to vector<10x1x128xf32>
    %c0_6 = arith.constant 0 : index
    %c0_7 = arith.constant 0 : index
    %c0_8 = arith.constant 0 : index
    %7 = vector.load %arg11[%c0_6, %c0_7, %c0_8] : memref<10x18x128xf32, #tpu.memory_space<vmem>>, vector<10x1x128xf32>
    tpu.vector_store %arg11[%c0_6, %c0_7, %c0_8], %6 {strides = array<i32>} : memref<10x18x128xf32, #tpu.memory_space<vmem>>, vector<10x1x128xf32>,
    %cst_9 = arith.constant 0.000000e+00 : f32
    %8 = vector.broadcast %cst_9 : f32 to vector<10x1x128xf32>
    %c0_10 = arith.constant 0 : index
    %c17_11 = arith.constant 17 : index
    %c0_12 = arith.constant 0 : index
    %9 = vector.load %arg11[%c0_10, %c17_11, %c0_12] : memref<10x18x128xf32, #tpu.memory_space<vmem>>, vector<10x1x128xf32>
    tpu.vector_store %arg11[%c0_10, %c17_11, %c0_12], %8 {strides = array<i32>} : memref<10x18x128xf32, #tpu.memory_space<vmem>>, vector<10x1x128xf32>,
    %c0_i32 = arith.constant 0 : i32
    %c12_i32 = arith.constant 12 : i32
    %10 = arith.addi %c0_i32, %c12_i32 : i32
    %c1_i32 = arith.constant 1 : i32
    scf.for %arg13 = %c0_i32 to %10 step %c1_i32  : i32 {
      %c1_i32_128 = arith.constant 1 : i32
      %104 = arith.muli %arg13, %c1_i32_128 : i32
      %c0_i32_129 = arith.constant 0 : i32
      %105 = arith.addi %c0_i32_129, %104 : i32
      %c2_i32 = arith.constant 2 : i32
      %106 = arith.subi %1, %c2_i32 : i32
      %107 = arith.addi %106, %105 : i32
      %c0_i32_130 = arith.constant 0 : i32
      %108 = arith.cmpi sge, %107, %c0_i32_130 : i32
      %c16_i32 = arith.constant 16 : i32
      %109 = arith.cmpi slt, %107, %c16_i32 : i32
      %110 = arith.andi %108, %109 : i1
      %c0_i32_131 = arith.constant 0 : i32
      %c15_i32 = arith.constant 15 : i32
      %111 = arith.maxsi %c0_i32_131, %107 : i32
      %112 = arith.minsi %c15_i32, %111 : i32
      %c0_132 = arith.constant 0 : index
      %113 = arith.index_cast %112 : i32 to index
      %c0_133 = arith.constant 0 : index
      %c0_134 = arith.constant 0 : index
      %114 = vector.load %arg2[%c0_132, %113, %c0_133, %c0_134] : memref<1x16x16x128xf32, #tpu.memory_space<vmem>>, vector<1x1x16x128xf32>
      %115 = vector.shape_cast %114 : vector<1x1x16x128xf32> to vector<1x16x128xf32>
      %cst_135 = arith.constant 0.000000e+00 : f32
      %116 = vector.broadcast %cst_135 : f32 to vector<1x16x128xf32>
      %117 = arith.select %110, %115, %116 : vector<1x16x128xf32>
      %118 = arith.index_cast %105 : i32 to index
      %c1_136 = arith.constant 1 : index
      %c0_137 = arith.constant 0 : index
      %119 = vector.load %arg10[%118, %c1_136, %c0_137] : memref<12x18x128xf32, #tpu.memory_space<vmem>>, vector<1x16x128xf32>
      tpu.vector_store %arg10[%118, %c1_136, %c0_137], %117 {strides = array<i32>} : memref<12x18x128xf32, #tpu.memory_space<vmem>>, vector<1x16x128xf32>,
    }
    %c12_i32_13 = arith.constant 12 : i32
    %c0_14 = arith.constant 0 : index
    %c0_15 = arith.constant 0 : index
    %c0_16 = arith.constant 0 : index
    %11 = vector.load %arg10[%c0_14, %c0_15, %c0_16] : memref<12x18x128xf32, #tpu.memory_space<vmem>>, vector<10x16x128xf32>
    %12 = vector.shape_cast %11 : vector<10x16x128xf32> to vector<160x128xf32>
    %c0_17 = arith.constant 0 : index
    %c0_18 = arith.constant 0 : index
    %13 = vector.load %arg12[%c0_17, %c0_18] : memref<160x1152xf32, #tpu.memory_space<vmem>>, vector<160x128xf32>
    tpu.vector_store %arg12[%c0_17, %c0_18], %12 {strides = array<i32>} : memref<160x1152xf32, #tpu.memory_space<vmem>>, vector<160x128xf32>,
    %c0_19 = arith.constant 0 : index
    %c1 = arith.constant 1 : index
    %c0_20 = arith.constant 0 : index
    %14 = vector.load %arg10[%c0_19, %c1, %c0_20] : memref<12x18x128xf32, #tpu.memory_space<vmem>>, vector<10x16x128xf32>
    %15 = vector.shape_cast %14 : vector<10x16x128xf32> to vector<160x128xf32>
    %c0_21 = arith.constant 0 : index
    %c128 = arith.constant 128 : index
    %16 = vector.load %arg12[%c0_21, %c128] : memref<160x1152xf32, #tpu.memory_space<vmem>>, vector<160x128xf32>
    tpu.vector_store %arg12[%c0_21, %c128], %15 {strides = array<i32>} : memref<160x1152xf32, #tpu.memory_space<vmem>>, vector<160x128xf32>,
    %c0_22 = arith.constant 0 : index
    %c2 = arith.constant 2 : index
    %c0_23 = arith.constant 0 : index
    %17 = vector.load %arg10[%c0_22, %c2, %c0_23] : memref<12x18x128xf32, #tpu.memory_space<vmem>>, vector<10x16x128xf32>
    %18 = vector.shape_cast %17 : vector<10x16x128xf32> to vector<160x128xf32>
    %c0_24 = arith.constant 0 : index
    %c256 = arith.constant 256 : index
    %19 = vector.load %arg12[%c0_24, %c256] : memref<160x1152xf32, #tpu.memory_space<vmem>>, vector<160x128xf32>
    tpu.vector_store %arg12[%c0_24, %c256], %18 {strides = array<i32>} : memref<160x1152xf32, #tpu.memory_space<vmem>>, vector<160x128xf32>,
    %c1_25 = arith.constant 1 : index
    %c0_26 = arith.constant 0 : index
    %c0_27 = arith.constant 0 : index
    %20 = vector.load %arg10[%c1_25, %c0_26, %c0_27] : memref<12x18x128xf32, #tpu.memory_space<vmem>>, vector<10x16x128xf32>
    %21 = vector.shape_cast %20 : vector<10x16x128xf32> to vector<160x128xf32>
    %c0_28 = arith.constant 0 : index
    %c384 = arith.constant 384 : index
    %22 = vector.load %arg12[%c0_28, %c384] : memref<160x1152xf32, #tpu.memory_space<vmem>>, vector<160x128xf32>
    tpu.vector_store %arg12[%c0_28, %c384], %21 {strides = array<i32>} : memref<160x1152xf32, #tpu.memory_space<vmem>>, vector<160x128xf32>,
    %c1_29 = arith.constant 1 : index
    %c1_30 = arith.constant 1 : index
    %c0_31 = arith.constant 0 : index
    %23 = vector.load %arg10[%c1_29, %c1_30, %c0_31] : memref<12x18x128xf32, #tpu.memory_space<vmem>>, vector<10x16x128xf32>
    %24 = vector.shape_cast %23 : vector<10x16x128xf32> to vector<160x128xf32>
    %c0_32 = arith.constant 0 : index
    %c512 = arith.constant 512 : index
    %25 = vector.load %arg12[%c0_32, %c512] : memref<160x1152xf32, #tpu.memory_space<vmem>>, vector<160x128xf32>
    tpu.vector_store %arg12[%c0_32, %c512], %24 {strides = array<i32>} : memref<160x1152xf32, #tpu.memory_space<vmem>>, vector<160x128xf32>,
    %c1_33 = arith.constant 1 : index
    %c2_34 = arith.constant 2 : index
    %c0_35 = arith.constant 0 : index
    %26 = vector.load %arg10[%c1_33, %c2_34, %c0_35] : memref<12x18x128xf32, #tpu.memory_space<vmem>>, vector<10x16x128xf32>
    %27 = vector.shape_cast %26 : vector<10x16x128xf32> to vector<160x128xf32>
    %c0_36 = arith.constant 0 : index
    %c640 = arith.constant 640 : index
    %28 = vector.load %arg12[%c0_36, %c640] : memref<160x1152xf32, #tpu.memory_space<vmem>>, vector<160x128xf32>
    tpu.vector_store %arg12[%c0_36, %c640], %27 {strides = array<i32>} : memref<160x1152xf32, #tpu.memory_space<vmem>>, vector<160x128xf32>,
    %c2_37 = arith.constant 2 : index
    %c0_38 = arith.constant 0 : index
    %c0_39 = arith.constant 0 : index
    %29 = vector.load %arg10[%c2_37, %c0_38, %c0_39] : memref<12x18x128xf32, #tpu.memory_space<vmem>>, vector<10x16x128xf32>
    %30 = vector.shape_cast %29 : vector<10x16x128xf32> to vector<160x128xf32>
    %c0_40 = arith.constant 0 : index
    %c768 = arith.constant 768 : index
    %31 = vector.load %arg12[%c0_40, %c768] : memref<160x1152xf32, #tpu.memory_space<vmem>>, vector<160x128xf32>
    tpu.vector_store %arg12[%c0_40, %c768], %30 {strides = array<i32>} : memref<160x1152xf32, #tpu.memory_space<vmem>>, vector<160x128xf32>,
    %c2_41 = arith.constant 2 : index
    %c1_42 = arith.constant 1 : index
    %c0_43 = arith.constant 0 : index
    %32 = vector.load %arg10[%c2_41, %c1_42, %c0_43] : memref<12x18x128xf32, #tpu.memory_space<vmem>>, vector<10x16x128xf32>
    %33 = vector.shape_cast %32 : vector<10x16x128xf32> to vector<160x128xf32>
    %c0_44 = arith.constant 0 : index
    %c896 = arith.constant 896 : index
    %34 = vector.load %arg12[%c0_44, %c896] : memref<160x1152xf32, #tpu.memory_space<vmem>>, vector<160x128xf32>
    tpu.vector_store %arg12[%c0_44, %c896], %33 {strides = array<i32>} : memref<160x1152xf32, #tpu.memory_space<vmem>>, vector<160x128xf32>,
    %c2_45 = arith.constant 2 : index
    %c2_46 = arith.constant 2 : index
    %c0_47 = arith.constant 0 : index
    %35 = vector.load %arg10[%c2_45, %c2_46, %c0_47] : memref<12x18x128xf32, #tpu.memory_space<vmem>>, vector<10x16x128xf32>
    %36 = vector.shape_cast %35 : vector<10x16x128xf32> to vector<160x128xf32>
    %c0_48 = arith.constant 0 : index
    %c1024 = arith.constant 1024 : index
    %37 = vector.load %arg12[%c0_48, %c1024] : memref<160x1152xf32, #tpu.memory_space<vmem>>, vector<160x128xf32>
    tpu.vector_store %arg12[%c0_48, %c1024], %36 {strides = array<i32>} : memref<160x1152xf32, #tpu.memory_space<vmem>>, vector<160x128xf32>,
    %c0_49 = arith.constant 0 : index
    %c0_50 = arith.constant 0 : index
    %38 = vector.load %arg12[%c0_49, %c0_50] : memref<160x1152xf32, #tpu.memory_space<vmem>>, vector<160x1152xf32>
    %c0_51 = arith.constant 0 : index
    %c0_52 = arith.constant 0 : index
    %39 = vector.load %arg3[%c0_51, %c0_52] : memref<1152x128xf32, #tpu.memory_space<vmem>>, vector<1152x128xf32>
    %cst_53 = arith.constant dense<0.000000e+00> : vector<160x128xf32>
    %40 = tpu.matmul %38, %39, %cst_53 {dimension_numbers = #tpu.dot_dimension_numbers<[1], [0], [0], [1], [0, 0, 1, 1], [], []>} : vector<160x1152xf32>, vector<1152x128xf32>, vector<160x128xf32> -> vector<160x128xf32>
    %c0_54 = arith.constant 0 : index
    %c0_55 = arith.constant 0 : index
    %41 = vector.load %arg5[%c0_54, %c0_55] : memref<1x128xf32, #tpu.memory_space<vmem>>, vector<1x128xf32>
    %42 = vector.broadcast %41 : vector<1x128xf32> to vector<160x128xf32>
    %43 = arith.mulf %40, %42 : vector<160x128xf32>
    %c0_56 = arith.constant 0 : index
    %c0_57 = arith.constant 0 : index
    %44 = vector.load %arg6[%c0_56, %c0_57] : memref<1x128xf32, #tpu.memory_space<vmem>>, vector<1x128xf32>
    %45 = vector.broadcast %44 : vector<1x128xf32> to vector<160x128xf32>
    %46 = arith.addf %43, %45 : vector<160x128xf32>
    %cst_58 = arith.constant 0.000000e+00 : f32
    %47 = vector.broadcast %cst_58 : f32 to vector<160x128xf32>
    %48 = arith.maximumf %46, %47 : vector<160x128xf32>
    %49 = vector.shape_cast %48 : vector<160x128xf32> to vector<10x16x128xf32>
    %c0_59 = arith.constant 0 : index
    %c1_60 = arith.constant 1 : index
    %c0_61 = arith.constant 0 : index
    %50 = vector.load %arg11[%c0_59, %c1_60, %c0_61] : memref<10x18x128xf32, #tpu.memory_space<vmem>>, vector<10x16x128xf32>
    tpu.vector_store %arg11[%c0_59, %c1_60, %c0_61], %49 {strides = array<i32>} : memref<10x18x128xf32, #tpu.memory_space<vmem>>, vector<10x16x128xf32>,
    %c0_i32_62 = arith.constant 0 : i32
    %51 = arith.cmpi eq, %arg1, %c0_i32_62 : i32
    %52 = arith.extui %51 : i1 to i32
    %c0_i32_63 = arith.constant 0 : i32
    %53 = arith.cmpi ne, %52, %c0_i32_63 : i32
    scf.if %53 {
      %cst_128 = arith.constant 0.000000e+00 : f32
      %104 = vector.broadcast %cst_128 : f32 to vector<1x18x128xf32>
      %c0_129 = arith.constant 0 : index
      %c0_130 = arith.constant 0 : index
      %c0_131 = arith.constant 0 : index
      %105 = vector.load %arg11[%c0_129, %c0_130, %c0_131] : memref<10x18x128xf32, #tpu.memory_space<vmem>>, vector<1x18x128xf32>
      tpu.vector_store %arg11[%c0_129, %c0_130, %c0_131], %104 {strides = array<i32>} : memref<10x18x128xf32, #tpu.memory_space<vmem>>, vector<1x18x128xf32>,
    } else {
    }
    %c1_i32_64 = arith.constant 1 : i32
    %54 = arith.cmpi eq, %arg1, %c1_i32_64 : i32
    %55 = arith.extui %54 : i1 to i32
    %c0_i32_65 = arith.constant 0 : i32
    %56 = arith.cmpi ne, %55, %c0_i32_65 : i32
    scf.if %56 {
      %cst_128 = arith.constant 0.000000e+00 : f32
      %104 = vector.broadcast %cst_128 : f32 to vector<1x18x128xf32>
      %c9 = arith.constant 9 : index
      %c0_129 = arith.constant 0 : index
      %c0_130 = arith.constant 0 : index
      %105 = vector.load %arg11[%c9, %c0_129, %c0_130] : memref<10x18x128xf32, #tpu.memory_space<vmem>>, vector<1x18x128xf32>
      tpu.vector_store %arg11[%c9, %c0_129, %c0_130], %104 {strides = array<i32>} : memref<10x18x128xf32, #tpu.memory_space<vmem>>, vector<1x18x128xf32>,
    } else {
    }
    %c0_66 = arith.constant 0 : index
    %c0_67 = arith.constant 0 : index
    %c0_68 = arith.constant 0 : index
    %57 = vector.load %arg11[%c0_66, %c0_67, %c0_68] : memref<10x18x128xf32, #tpu.memory_space<vmem>>, vector<8x16x128xf32>
    %58 = vector.shape_cast %57 : vector<8x16x128xf32> to vector<128x128xf32>
    %c0_69 = arith.constant 0 : index
    %c0_70 = arith.constant 0 : index
    %59 = vector.load %arg12[%c0_69, %c0_70] : memref<160x1152xf32, #tpu.memory_space<vmem>>, vector<128x128xf32>
    tpu.vector_store %arg12[%c0_69, %c0_70], %58 {strides = array<i32>} : memref<160x1152xf32, #tpu.memory_space<vmem>>, vector<128x128xf32>,
    %c0_71 = arith.constant 0 : index
    %c1_72 = arith.constant 1 : index
    %c0_73 = arith.constant 0 : index
    %60 = vector.load %arg11[%c0_71, %c1_72, %c0_73] : memref<10x18x128xf32, #tpu.memory_space<vmem>>, vector<8x16x128xf32>
    %61 = vector.shape_cast %60 : vector<8x16x128xf32> to vector<128x128xf32>
    %c0_74 = arith.constant 0 : index
    %c128_75 = arith.constant 128 : index
    %62 = vector.load %arg12[%c0_74, %c128_75] : memref<160x1152xf32, #tpu.memory_space<vmem>>, vector<128x128xf32>
    tpu.vector_store %arg12[%c0_74, %c128_75], %61 {strides = array<i32>} : memref<160x1152xf32, #tpu.memory_space<vmem>>, vector<128x128xf32>,
    %c0_76 = arith.constant 0 : index
    %c2_77 = arith.constant 2 : index
    %c0_78 = arith.constant 0 : index
    %63 = vector.load %arg11[%c0_76, %c2_77, %c0_78] : memref<10x18x128xf32, #tpu.memory_space<vmem>>, vector<8x16x128xf32>
    %64 = vector.shape_cast %63 : vector<8x16x128xf32> to vector<128x128xf32>
    %c0_79 = arith.constant 0 : index
    %c256_80 = arith.constant 256 : index
    %65 = vector.load %arg12[%c0_79, %c256_80] : memref<160x1152xf32, #tpu.memory_space<vmem>>, vector<128x128xf32>
    tpu.vector_store %arg12[%c0_79, %c256_80], %64 {strides = array<i32>} : memref<160x1152xf32, #tpu.memory_space<vmem>>, vector<128x128xf32>,
    %c1_81 = arith.constant 1 : index
    %c0_82 = arith.constant 0 : index
    %c0_83 = arith.constant 0 : index
    %66 = vector.load %arg11[%c1_81, %c0_82, %c0_83] : memref<10x18x128xf32, #tpu.memory_space<vmem>>, vector<8x16x128xf32>
    %67 = vector.shape_cast %66 : vector<8x16x128xf32> to vector<128x128xf32>
    %c0_84 = arith.constant 0 : index
    %c384_85 = arith.constant 384 : index
    %68 = vector.load %arg12[%c0_84, %c384_85] : memref<160x1152xf32, #tpu.memory_space<vmem>>, vector<128x128xf32>
    tpu.vector_store %arg12[%c0_84, %c384_85], %67 {strides = array<i32>} : memref<160x1152xf32, #tpu.memory_space<vmem>>, vector<128x128xf32>,
    %c1_86 = arith.constant 1 : index
    %c1_87 = arith.constant 1 : index
    %c0_88 = arith.constant 0 : index
    %69 = vector.load %arg11[%c1_86, %c1_87, %c0_88] : memref<10x18x128xf32, #tpu.memory_space<vmem>>, vector<8x16x128xf32>
    %70 = vector.shape_cast %69 : vector<8x16x128xf32> to vector<128x128xf32>
    %c0_89 = arith.constant 0 : index
    %c512_90 = arith.constant 512 : index
    %71 = vector.load %arg12[%c0_89, %c512_90] : memref<160x1152xf32, #tpu.memory_space<vmem>>, vector<128x128xf32>
    tpu.vector_store %arg12[%c0_89, %c512_90], %70 {strides = array<i32>} : memref<160x1152xf32, #tpu.memory_space<vmem>>, vector<128x128xf32>,
    %c1_91 = arith.constant 1 : index
    %c2_92 = arith.constant 2 : index
    %c0_93 = arith.constant 0 : index
    %72 = vector.load %arg11[%c1_91, %c2_92, %c0_93] : memref<10x18x128xf32, #tpu.memory_space<vmem>>, vector<8x16x128xf32>
    %73 = vector.shape_cast %72 : vector<8x16x128xf32> to vector<128x128xf32>
    %c0_94 = arith.constant 0 : index
    %c640_95 = arith.constant 640 : index
    %74 = vector.load %arg12[%c0_94, %c640_95] : memref<160x1152xf32, #tpu.memory_space<vmem>>, vector<128x128xf32>
    tpu.vector_store %arg12[%c0_94, %c640_95], %73 {strides = array<i32>} : memref<160x1152xf32, #tpu.memory_space<vmem>>, vector<128x128xf32>,
    %c2_96 = arith.constant 2 : index
    %c0_97 = arith.constant 0 : index
    %c0_98 = arith.constant 0 : index
    %75 = vector.load %arg11[%c2_96, %c0_97, %c0_98] : memref<10x18x128xf32, #tpu.memory_space<vmem>>, vector<8x16x128xf32>
    %76 = vector.shape_cast %75 : vector<8x16x128xf32> to vector<128x128xf32>
    %c0_99 = arith.constant 0 : index
    %c768_100 = arith.constant 768 : index
    %77 = vector.load %arg12[%c0_99, %c768_100] : memref<160x1152xf32, #tpu.memory_space<vmem>>, vector<128x128xf32>
    tpu.vector_store %arg12[%c0_99, %c768_100], %76 {strides = array<i32>} : memref<160x1152xf32, #tpu.memory_space<vmem>>, vector<128x128xf32>,
    %c2_101 = arith.constant 2 : index
    %c1_102 = arith.constant 1 : index
    %c0_103 = arith.constant 0 : index
    %78 = vector.load %arg11[%c2_101, %c1_102, %c0_103] : memref<10x18x128xf32, #tpu.memory_space<vmem>>, vector<8x16x128xf32>
    %79 = vector.shape_cast %78 : vector<8x16x128xf32> to vector<128x128xf32>
    %c0_104 = arith.constant 0 : index
    %c896_105 = arith.constant 896 : index
    %80 = vector.load %arg12[%c0_104, %c896_105] : memref<160x1152xf32, #tpu.memory_space<vmem>>, vector<128x128xf32>
    tpu.vector_store %arg12[%c0_104, %c896_105], %79 {strides = array<i32>} : memref<160x1152xf32, #tpu.memory_space<vmem>>, vector<128x128xf32>,
    %c2_106 = arith.constant 2 : index
    %c2_107 = arith.constant 2 : index
    %c0_108 = arith.constant 0 : index
    %81 = vector.load %arg11[%c2_106, %c2_107, %c0_108] : memref<10x18x128xf32, #tpu.memory_space<vmem>>, vector<8x16x128xf32>
    %82 = vector.shape_cast %81 : vector<8x16x128xf32> to vector<128x128xf32>
    %c0_109 = arith.constant 0 : index
    %c1024_110 = arith.constant 1024 : index
    %83 = vector.load %arg12[%c0_109, %c1024_110] : memref<160x1152xf32, #tpu.memory_space<vmem>>, vector<128x128xf32>
    tpu.vector_store %arg12[%c0_109, %c1024_110], %82 {strides = array<i32>} : memref<160x1152xf32, #tpu.memory_space<vmem>>, vector<128x128xf32>,
    %c0_111 = arith.constant 0 : index
    %c0_112 = arith.constant 0 : index
    %84 = vector.load %arg12[%c0_111, %c0_112] : memref<160x1152xf32, #tpu.memory_space<vmem>>, vector<128x1152xf32>
    %c0_113 = arith.constant 0 : index
    %c0_114 = arith.constant 0 : index
    %85 = vector.load %arg4[%c0_113, %c0_114] : memref<1152x128xf32, #tpu.memory_space<vmem>>, vector<1152x128xf32>
    %cst_115 = arith.constant dense<0.000000e+00> : vector<128x128xf32>
    %86 = tpu.matmul %84, %85, %cst_115 {dimension_numbers = #tpu.dot_dimension_numbers<[1], [0], [0], [1], [0, 0, 1, 1], [], []>} : vector<128x1152xf32>, vector<1152x128xf32>, vector<128x128xf32> -> vector<128x128xf32>
    %c0_116 = arith.constant 0 : index
    %87 = arith.index_cast %1 : i32 to index
    %c0_117 = arith.constant 0 : index
    %c0_118 = arith.constant 0 : index
    %88 = vector.load %arg2[%c0_116, %87, %c0_117, %c0_118] : memref<1x16x16x128xf32, #tpu.memory_space<vmem>>, vector<1x8x16x128xf32>
    %89 = vector.shape_cast %88 : vector<1x8x16x128xf32> to vector<8x16x128xf32>
    %90 = vector.shape_cast %89 : vector<8x16x128xf32> to vector<128x128xf32>
    %c0_119 = arith.constant 0 : index
    %c0_120 = arith.constant 0 : index
    %91 = vector.load %arg7[%c0_119, %c0_120] : memref<1x128xf32, #tpu.memory_space<vmem>>, vector<1x128xf32>
    %92 = vector.broadcast %91 : vector<1x128xf32> to vector<128x128xf32>
    %93 = arith.mulf %86, %92 : vector<128x128xf32>
    %c0_121 = arith.constant 0 : index
    %c0_122 = arith.constant 0 : index
    %94 = vector.load %arg8[%c0_121, %c0_122] : memref<1x128xf32, #tpu.memory_space<vmem>>, vector<1x128xf32>
    %95 = vector.broadcast %94 : vector<1x128xf32> to vector<128x128xf32>
    %96 = arith.addf %93, %95 : vector<128x128xf32>
    %97 = arith.addf %96, %90 : vector<128x128xf32>
    %cst_123 = arith.constant 0.000000e+00 : f32
    %98 = vector.broadcast %cst_123 : f32 to vector<128x128xf32>
    %99 = arith.maximumf %97, %98 : vector<128x128xf32>
    %100 = vector.shape_cast %99 : vector<128x128xf32> to vector<8x16x128xf32>
    %c0_124 = arith.constant 0 : index
    %c0_125 = arith.constant 0 : index
    %c0_126 = arith.constant 0 : index
    %c0_127 = arith.constant 0 : index
    %101 = vector.load %arg9[%c0_124, %c0_125, %c0_126, %c0_127] : memref<1x8x16x128xf32, #tpu.memory_space<vmem>>, vector<1x8x16x128xf32>
    %102 = vector.shape_cast %101 : vector<1x8x16x128xf32> to vector<8x16x128xf32>
    %103 = vector.shape_cast %100 : vector<8x16x128xf32> to vector<1x8x16x128xf32>
    tpu.vector_store %arg9[%c0_124, %c0_125, %c0_126, %c0_127], %103 {strides = array<i32>} : memref<1x8x16x128xf32, #tpu.memory_space<vmem>>, vector<1x8x16x128xf32>,
    return
  }
  func.func @transform_0(%arg0: i32, %arg1: i32) -> (i32, i32, i32, i32) {
    %c0_i32 = arith.constant 0 : i32
    %c0_i32_0 = arith.constant 0 : i32
    %c0_i32_1 = arith.constant 0 : i32
    %c0_i32_2 = arith.constant 0 : i32
    return %arg0, %c0_i32, %c0_i32_0, %c0_i32_1 : i32, i32, i32, i32
  }
  func.func @transform_1(%arg0: i32, %arg1: i32) -> (i32, i32) {
    %c0_i32 = arith.constant 0 : i32
    %c0_i32_0 = arith.constant 0 : i32
    %c0_i32_1 = arith.constant 0 : i32
    return %c0_i32, %c0_i32_0 : i32, i32
  }
  func.func @transform_2(%arg0: i32, %arg1: i32) -> (i32, i32) {
    %c0_i32 = arith.constant 0 : i32
    %c0_i32_0 = arith.constant 0 : i32
    %c0_i32_1 = arith.constant 0 : i32
    return %c0_i32, %c0_i32_0 : i32, i32
  }
  func.func @transform_3(%arg0: i32, %arg1: i32) -> (i32, i32) {
    %c0_i32 = arith.constant 0 : i32
    %c0_i32_0 = arith.constant 0 : i32
    %c0_i32_1 = arith.constant 0 : i32
    return %c0_i32, %c0_i32_0 : i32, i32
  }
  func.func @transform_4(%arg0: i32, %arg1: i32) -> (i32, i32) {
    %c0_i32 = arith.constant 0 : i32
    %c0_i32_0 = arith.constant 0 : i32
    %c0_i32_1 = arith.constant 0 : i32
    return %c0_i32, %c0_i32_0 : i32, i32
  }
  func.func @transform_5(%arg0: i32, %arg1: i32) -> (i32, i32) {
    %c0_i32 = arith.constant 0 : i32
    %c0_i32_0 = arith.constant 0 : i32
    %c0_i32_1 = arith.constant 0 : i32
    return %c0_i32, %c0_i32_0 : i32, i32
  }
  func.func @transform_6(%arg0: i32, %arg1: i32) -> (i32, i32) {
    %c0_i32 = arith.constant 0 : i32
    %c0_i32_0 = arith.constant 0 : i32
    %c0_i32_1 = arith.constant 0 : i32
    return %c0_i32, %c0_i32_0 : i32, i32
  }
  func.func @transform_7(%arg0: i32, %arg1: i32) -> (i32, i32, i32, i32) {
    %c0_i32 = arith.constant 0 : i32
    %c0_i32_0 = arith.constant 0 : i32
    %c0_i32_1 = arith.constant 0 : i32
    return %arg0, %arg1, %c0_i32, %c0_i32_0 : i32, i32, i32, i32
  }
}

</mosaic_0001>

<bundles_post_ra>
// kernel: tpu_custom_call.1
= control target key start
LH: loop header
LB: loop body
LE: loop exit
PB: predicated region body
PF: predicated region fallthrough
CT: control target
= control target key end

     0   :  { %s5050_s0 = inlined_call_operand.hbm [shape: f32[2,16,16,128], index: 0, kind: input, shape index: {}]   ;;  %s5051_s1 = inlined_call_operand.hbm [shape: f32[1152,128], index: 1, kind: input, shape index: {}]   ;;  %s5052_s2 = inlined_call_operand.hbm [shape: f32[1152,128], index: 2, kind: input, shape index: {}]   ;;  %s5053_s3 = inlined_call_operand.vmem [shape: f32[1,128], index: 3, kind: input, shape index: {}]   ;;  %s5054_s4 = inlined_call_operand.vmem [shape: f32[1,128], index: 4, kind: input, shape index: {}]   ;;  %s5055_s5 = inlined_call_operand.vmem [shape: f32[1,128], index: 5, kind: input, shape index: {}]   ;;  %s5056_s6 = inlined_call_operand.vmem [shape: f32[1,128], index: 6, kind: input, shape index: {}]   ;;  %s5057_s7 = inlined_call_operand.hbm [shape: f32[2,16,16,128], index: 7, kind: output, shape index: {}]  }
   0x1   :  { %5068 = sst [smem:[#allocation57_spill]] %s5051_s1 }
   0x2   :  { %5069 = sst [smem:[#allocation58_spill]] %s5052_s2 }
   0x3   :  { %5070 = sst [smem:[#allocation59_spill]] %s5055_s5 }
   0x4   :  { %5071 = sst [smem:[#allocation60_spill]] %s5056_s6 }
   0x5   :  { %5072 = sst [smem:[#allocation61_spill]] %s5057_s7 }
   0x6   :  { %12 = vsyncpa [#allocation6], 0 }
   0x7   :  { %14 = vsyncpa [#allocation6 + $0x1], 0 }
   0x8   :  { %15 = vsyncpa [#allocation9], 0 }
   0x9   :  { %16 = vsyncpa [#allocation7], 0 }
   0xa   :  { %18 = vsyncpa [#allocation7 + $0x1], 0  ;;  %s3817_s24 = smov 0   ;;  %s3819_s25 = smov 0  }
   0xb   :  { %s3821_s26 = smov 0   ;;  %s3823_s27 = smov 0  }
   0xc   :  { %s3825_s28 = smov 0   ;;  %s3827_s29 = smov 0  }
   0xd   :  { %s3829_s30 = smov 0   ;;  %s3831_s8 = smov 0  }
   0xe   :  { %s3833_s9 = smov 0   ;;  %s3835_s10 = smov 0  }
   0xf   :  { %s3837_s11 = smov 0  }
  0x10 LB: > { %5073 = sst [smem:[#allocation15_spill]] %s3722_s24  ;;  %s3308_s12 = sadd.s32 4294967295, %s3762_s11   ;;  %s3762_s11 = sphi %s3837_s11, %s24_s11   ;;  %s3758_s10 = sphi %s3835_s10, %s5178_s10   ;;  %s3754_s9 = sphi %s3833_s9, %s5169_s9   ;;  %s3750_s8 = sphi %s3831_s8, %s5177_s8   ;;  %s3746_s30 = sphi %s3829_s30, %s5168_s30   ;;  %s3742_s29 = sphi %s3827_s29, %s5176_s29   ;;  %s3738_s28 = sphi %s3825_s28, %s5175_s28   ;;  %s3734_s27 = sphi %s3823_s27, %s5174_s27   ;;  %s3730_s26 = sphi %s3821_s26, %s5173_s26   ;;  %s3726_s25 = sphi %s3819_s25, %s5172_s25   ;;  %s3722_s24 = sphi %s3817_s24, %s5171_s24  }
  0x11   : > { %5074 = sst [smem:[#allocation16_spill]] %s3750_s8  ;;  %s3309_s13 = sadd.s32 4294967294, %s3762_s11  }
  0x12   : > { %5075 = sst [smem:[#allocation17_spill]] %s3754_s9  ;;  %p56_p0 = scmp.ne.s32.totalorder %s3738_s28, %s3734_s27 }
  0x13   : > { %p3873_p1 = scmp.eq.s32.totalorder %s3308_s12, 0  ;;  %p207_p2 = scmp.ne.s32.totalorder %s3730_s26, %s3726_s25 }
  0x14   : > { %p208_p3 = scmp.eq.s32.totalorder %s3308_s12, 3  ;;  %p213_p5 = scmp.ne.s32.totalorder %s3726_s25, %s3722_s24 }
  0x15   : > { %p3881_p4 = por %p3873_p1, %p56_p0  ;;  %p214_p7 = scmp.eq.s32.totalorder %s3309_s13, 3 }
  0x16   : > { %p3887_p6 = por %p208_p3, %p207_p2  ;;  %p3310_p8 = scmp.ge.s32.totalorder %s3762_s11, 1 }
  0x17   : > { %p221_p9 = scmp.lt.s32.totalorder %s3762_s11, 5  ;;  %p3893_p10 = por %p214_p7, %p213_p5 }
  0x18   : > { %s5078_s16 = scalar_select %p3887_p6, 1, 0 }
  0x19   : > { %s5080_s17 = scalar_select %p3893_p10, 1, 0 }
  0x1a   : > { %5079 = sst [smem:[#allocation18_spill]] %s5078_s16  ;;  %p3897_p11 = pnand %p3310_p8, %p221_p9 }
  0x1b   : > { %5081 = sst [smem:[#allocation19_spill]] %s5080_s17  ;;  %s3768_s22 = smov [#allocation8]  }
  0x1c   : > { %s5083_s1 = sld [smem:[#allocation57_spill]]  ;;  %p3406_p12 = pneg %p3897_p11 }
  0x1d   : > { %s234_s23 = sshll.u32 %s3768_s22, 4  ;;  %s5084_s2 = sld [smem:[#allocation58_spill]]  ;;  %s235_s23 = int_to_ptr.vmem [resolvable:$true] %s234_s23 }
  0x1e   : > { %p3407_p13 = pnand %p3406_p12, %p3873_p1  ;;  %s5058_s19 = smov 128  }
  0x1f   : > { %s5059_s20 = smov 8   ;;  %s3771_s22 = smov [#allocation10]  }
  0x20   : > { %s33_s27 = sadd.s32 1, %s3754_s9  ;;  %s36_s12 = sadd.s32 1, %s3758_s10 }
  0x21   : > { %p34_p0 = scmp.ge.s32.totalorder %s33_s27, 2  ;;  %p50_p2 = scmp.ne.s32.totalorder %s3742_s29, %s3738_s28 }
  0x22   : > { %s232_s21 = sshll.u32 %s5083_s1, 4  ;;  %s248_s1 = sshll.u32 %s3771_s22, 4  ;;  %s233_s21 = int_to_ptr.hbm [resolvable:$true] %s232_s21  ;;  %s249_s1 = int_to_ptr.vmem [resolvable:$true] %s248_s1 }
  0x23   : > { %s246_s13 = sshll.u32 %s5084_s2, 4  ;;  %s5180_s27 = smov (%p34_p0, %s33_s27), 0  ;;  %s247_s13 = int_to_ptr.hbm [resolvable:$true] %s246_s13 }
  0x24   : > { %3409 = dma.hbm_to_vmem [thread:$0]  (!%p3407_p13), %s233_s21, 18432, %s235_s23, [#allocation9], %s5058_s19, %s5058_s19, %s5059_s20  }
  0x25   : > { %3412 = dma.hbm_to_vmem [thread:$0]  (!%p3407_p13), %s247_s13, 18432, %s249_s1, [#allocation9], %s5058_s19, %s5058_s19, %s5059_s20  }
  0x26   : > { %5085 = sst [smem:[#allocation20_spill]] %s5180_s27  ;;  %s5182_s12 = smov (!%p34_p0, %s36_s12), %s3758_s10 }
  0x27   : > { %s43_s21 = sadd.s32 1, %s3742_s29  ;;  %p51_p3 = scmp.eq.s32.totalorder %s3762_s11, 0 }
  0x28   : > { %p38_p5 = scmp.ge.s32.totalorder %s5182_s12, 2  ;;  %s193_s23 = ssub.s32 %s3754_s9, %s5180_s27 }
  0x29   : > { %p3928_p7 = por %p51_p3, %p50_p2  ;;  %s197_s1 = sadd.s32 1, %s3730_s26 }
  0x2a   : > { %s5184_s12 = smov (%p38_p5, %s5182_s12), 0  ;;  %p3423_p8 = scmp.lt.s32.totalorder %s3762_s11, 4 }
  0x2b   : > { %5087 = sst [smem:[#allocation21_spill]] %s5184_s12  ;;  %s274_s13 = sand.u32 1, %s3742_s29  }
  0x2c   : > { %s40_s19 = ssub.s32 %s3758_s10, %s5184_s12  ;;  %s3341_s20 = sshll.u32 %s3758_s10, 8 }
  0x2d   : > { %p41_p9 = scmp.eq.s32.totalorder %s40_s19, 0  ;;  %s194_s2 = sor.u32 %s193_s23, %s40_s19 }
  0x2e   : > { %p195_p12 = scmp.eq.s32.totalorder %s194_s2, 0  ;;  %s3314_s17 = sshll.u32 %s274_s13, 8 }
  0x2f   : > { %s3941_s24 = scalar_select %p41_p9, %s3742_s29, %s43_s21  }
  0x30   : > { %s3944_s27 = scalar_select %p195_p12, %s3730_s26, %s197_s1  }
  0x31   : > { %s283_s7 = scalar_lea.hbm %s5050_s0, %s3341_s20  ;;  %s278_s6 = scalar_lea.vmem [#allocation5], %s3314_s17 }
  0x32   : > { %s284_s8 = sshll.u32 %s283_s7, 4  ;;  %s286_s5 = sshll.u32 %s278_s6, 4  ;;  %s285_s8 = int_to_ptr.hbm [resolvable:$true] %s284_s8  ;;  %s287_s5 = int_to_ptr.vmem [resolvable:$true] %s286_s5 }
  0x33   : > { %p3414_p13 = pnand %p3423_p8, %p3928_p7  ;;  %s275_s12 = scalar_lea.sflag [#allocation6], %s274_s13 }
  0x34   : > { %s5088_s19 = smov 8   ;;  %s5089_s2 = smov 128  }
  0x35   : > { %3416 = dma.hbm_to_vmem [thread:$0]  (!%p3414_p13), %s285_s8, 4096, %s287_s5, %s275_s12, %s5089_s2, %s5089_s2, %s5088_s19  }
  0x36   : > { %298 = sbr.rel (%p3897_p11) target bundleno = 1382 (0x566), region = 48 }
  0x3b   : > { %s300_s9 = sand.u32 1, %s3738_s28  }
  0x3c   : > { %s3959_s16 = sshll.u32 %s300_s9, 8  ;;  %s301_s6 = scalar_lea.sflag [#allocation6], %s300_s9 }
  0x3d   : > { %s304_s7 = scalar_lea.vmem [#allocation5], %s3959_s16 }
  0x3e   : > { %3709 = dma.done.wait (%p3881_p4), %s301_s6, 4096  }
  0x3f   : > { %3711 = vsyncadd (%p3881_p4), %s301_s6, 4294963200 }
  0x40   : > { %3713 = dma.done.wait (%p3873_p1), [#allocation9], 36864  }
  0x41   : > { %3715 = vsyncadd (%p3873_p1), [#allocation9], 4294930432  ;;  %s343_s5 = sand.u32 1, %s3726_s25   ;;  %s3322_s8 = sshll.u32 %s3746_s30, 3  ;;  %v3772_v0 = vmov 0.0  }
  0x42   : > { %s3974_s17 = sshll.u32 %s343_s5, 7  ;;  %348 = vst [vmem:[#allocation2] sm:$0x1] %v3772_v0  ;;  %s3764_s15 = smov 0  }
  0x43   : > { %349 = vst [vmem:[#allocation2 + $0x18] sm:$0x1] %v3772_v0  ;;  %s3977_s14 = scalar_lea.vmem [#allocation11], %s3974_s17 }
  0x44   : > { %350 = vst [vmem:[#allocation2 + $0x30] sm:$0x1] %v3772_v0 }
  0x45   : > { %351 = vst [vmem:[#allocation2 + $0x48] sm:$0x1] %v3772_v0 }
  0x46   : > { %352 = vst [vmem:[#allocation2 + $0x60] sm:$0x1] %v3772_v0 }
  0x47   : > { %353 = vst [vmem:[#allocation2 + $0x78] sm:$0x1] %v3772_v0 }
  0x48   : > { %354 = vst [vmem:[#allocation2 + $0x90] sm:$0x1] %v3772_v0 }
  0x49   : > { %355 = vst [vmem:[#allocation2 + $0xa8] sm:$0x1] %v3772_v0 }
  0x4a   : > { %356 = vst [vmem:[#allocation2 + $0xc0] sm:$0x1] %v3772_v0 }
  0x4b   : > { %357 = vst [vmem:[#allocation2 + $0xd8] sm:$0x1] %v3772_v0 }
  0x4c   : > { %358 = vst [vmem:[#allocation2 + $0xf0] sm:$0x1] %v3772_v0 }
  0x4d   : > { %359 = vst [vmem:[#allocation2 + $0x108] sm:$0x1] %v3772_v0 }
  0x4e   : > { %360 = vst [vmem:[#allocation2 + $0x11] sm:$0x1] %v3772_v0 }
  0x4f   : > { %361 = vst [vmem:[#allocation2 + $0x29] sm:$0x1] %v3772_v0 }
  0x50   : > { %362 = vst [vmem:[#allocation2 + $0x41] sm:$0x1] %v3772_v0 }
  0x51   : > { %363 = vst [vmem:[#allocation2 + $0x59] sm:$0x1] %v3772_v0 }
  0x52   : > { %364 = vst [vmem:[#allocation2 + $0x71] sm:$0x1] %v3772_v0 }
  0x53   : > { %365 = vst [vmem:[#allocation2 + $0x89] sm:$0x1] %v3772_v0 }
  0x54   : > { %366 = vst [vmem:[#allocation2 + $0xa1] sm:$0x1] %v3772_v0 }
  0x55   : > { %367 = vst [vmem:[#allocation2 + $0xb9] sm:$0x1] %v3772_v0 }
  0x56   : > { %368 = vst [vmem:[#allocation2 + $0xd1] sm:$0x1] %v3772_v0 }
  0x57   : > { %369 = vst [vmem:[#allocation2 + $0xe9] sm:$0x1] %v3772_v0 }
  0x58   : > { %370 = vst [vmem:[#allocation2 + $0x101] sm:$0x1] %v3772_v0 }
  0x59   : > { %371 = vst [vmem:[#allocation2 + $0x119] sm:$0x1] %v3772_v0 }
  0x5a   : > { %372 = vst [vmem:[#allocation3] sm:$0x1] %v3772_v0 }
  0x5b   : > { %373 = vst [vmem:[#allocation3 + $0x18] sm:$0x1] %v3772_v0 }
  0x5c   : > { %374 = vst [vmem:[#allocation3 + $0x30] sm:$0x1] %v3772_v0 }
  0x5d   : > { %375 = vst [vmem:[#allocation3 + $0x48] sm:$0x1] %v3772_v0 }
  0x5e   : > { %376 = vst [vmem:[#allocation3 + $0x60] sm:$0x1] %v3772_v0 }
  0x5f   : > { %377 = vst [vmem:[#allocation3 + $0x78] sm:$0x1] %v3772_v0 }
  0x60   : > { %378 = vst [vmem:[#allocation3 + $0x90] sm:$0x1] %v3772_v0 }
  0x61   : > { %379 = vst [vmem:[#allocation3 + $0xa8] sm:$0x1] %v3772_v0 }
  0x62   : > { %380 = vst [vmem:[#allocation3 + $0xc0] sm:$0x1] %v3772_v0 }
  0x63   : > { %381 = vst [vmem:[#allocation3 + $0xd8] sm:$0x1] %v3772_v0 }
  0x64   : > { %382 = vst [vmem:[#allocation3 + $0x11] sm:$0x1] %v3772_v0 }
  0x65   : > { %383 = vst [vmem:[#allocation3 + $0x29] sm:$0x1] %v3772_v0 }
  0x66   : > { %384 = vst [vmem:[#allocation3 + $0x41] sm:$0x1] %v3772_v0 }
  0x67   : > { %385 = vst [vmem:[#allocation3 + $0x59] sm:$0x1] %v3772_v0 }
  0x68   : > { %386 = vst [vmem:[#allocation3 + $0x71] sm:$0x1] %v3772_v0 }
  0x69   : > { %387 = vst [vmem:[#allocation3 + $0x89] sm:$0x1] %v3772_v0 }
  0x6a   : > { %388 = vst [vmem:[#allocation3 + $0xa1] sm:$0x1] %v3772_v0 }
  0x6b   : > { %389 = vst [vmem:[#allocation3 + $0xb9] sm:$0x1] %v3772_v0 }
  0x6c   : > { %390 = vst [vmem:[#allocation3 + $0xd1] sm:$0x1] %v3772_v0 }
  0x6d   : > { %391 = vst [vmem:[#allocation3 + $0xe9] sm:$0x1] %v3772_v0 }
  0x6e LB: >> { %s3323_s18 = sadd.s32 4294967294, %s3322_s8  ;;  %s417_s12 = smul.u32 24, %s3766_s15  ;;  %s3766_s15 = sphi %s3764_s15, %s397_s15  }
  0x6f   : >> { %s399_s20 = sadd.s32 %s3766_s15, %s3323_s18  ;;  %s397_s15 = sadd.s32 1, %s3766_s15  }
  0x70   : >> { %p400_p1 = scmp.ge.s32.totalorder %s399_s20, 0  ;;  %p401_p4 = scmp.lt.s32.totalorder %s399_s20, 16 }
  0x71   : >> { %p404_p11 = scmp.gt.s32.totalorder %s399_s20, 0  ;;  %p3324_p0 = scmp.lt.s32.totalorder %s399_s20, 15 }
  0x72   : >> { %p402_p2 = pnand %p401_p4, %p400_p1  ;;  %s418_s13 = scalar_lea.vmem [#allocation2], %s417_s12 }
  0x73   : >> { %s5186_s20 = smov (!%p404_p11, %s399_s20), 0  ;;  %p394_p5 = scmp.ge.s32.totalorder %s397_s15, 12  }
  0x74   : >> { %s3330_s21 = scalar_select %p402_p2, 0, 1  ;;  %v978_v3 = vld [vmem:[#allocation8 + $0x78] sm:$0xff] (%p394_p5)  ;;  %v977_v5 = vld [vmem:[#allocation8 + $0x70] sm:$0xff] (%p394_p5)  ;;  %v976_v7 = vld [vmem:[#allocation8 + $0x68] sm:$0xff] (%p394_p5) }
  0x75   : >> { %s5188_s20 = smov (!%p3324_p0, %s5186_s20), 15  ;;  %v994_v4 = vld [vmem:[#allocation8 + $0xf8] sm:$0xff] (%p394_p5)  ;;  %1107 = vmatpush.msra.mxu0 (%p394_p5), %v978_v3  ;;  %v993_v6 = vld [vmem:[#allocation8 + $0xf0] sm:$0xff] (%p394_p5)  ;;  %v992_v8 = vld [vmem:[#allocation8 + $0xe8] sm:$0xff] (%p394_p5)  ;;  %p3331_p7 = scmp.ne.s32.totalorder (%p394_p5), %s3746_s30, 0 }
  0x76   : >> { %p3532_p3 = scmp.eq.s32.totalorder %s3330_s21, 1  ;;  %s3329_s23 = sshll.u32 %s5188_s20, 4  ;;  %1184 = vmatpush.msra.mxu1 (%p394_p5), %v994_v4  ;;  %3346 = vmatpush.msra.mxu3 (%p394_p5), %v994_v4  ;;  %v975_v9 = vld [vmem:[#allocation8 + $0x60] sm:$0xff] (%p394_p5)  ;;  %v974_v11 = vld [vmem:[#allocation8 + $0x58] sm:$0xff] (%p394_p5)  ;;  %v973_v13 = vld [vmem:[#allocation8 + $0x50] sm:$0xff] (%p394_p5) }
  0x77   : >> { %s409_s22 = scalar_lea.vmem %s304_s7, %s3329_s23 [#allocation5]  ;;  %1108 = vmatpush.msra.mxu0 (%p394_p5), %v977_v5  ;;  %v991_v10 = vld [vmem:[#allocation8 + $0xe0] sm:$0xff] (%p394_p5)  ;;  %v990_v12 = vld [vmem:[#allocation8 + $0xd8] sm:$0xff] (%p394_p5)  ;;  %v989_v14 = vld [vmem:[#allocation8 + $0xd0] sm:$0xff] (%p394_p5) }
  0x78   : >> { %s3533_s1 = scalar_select %p3532_p3, 255, 0  ;;  %1185 = vmatpush.msra.mxu1 (%p394_p5), %v993_v6  ;;  %3347 = vmatpush.msra.mxu3 (%p394_p5), %v993_v6  ;;  %v972_v15 = vld [vmem:[#allocation8 + $0x48] sm:$0xff] (%p394_p5)  ;;  %v971_v18 = vld [vmem:[#allocation8 + $0x40] sm:$0xff] (%p394_p5)  ;;  %v3987_v20 = vld [vmem:[#allocation8 + $0x178] sm:$0xff] (%p394_p5) }
  0x79   : > { %396 = sbr.rel (!%p394_p5) target bundleno = 110 (0x6e), region = 124  ;;  %1109 = vmatpush.msra.mxu0 (%p394_p5), %v976_v7  ;;  %v988_v16 = vld [vmem:[#allocation8 + $0xc8] sm:$0xff] (%p394_p5)  ;;  %v987_v21 = vld [vmem:[#allocation8 + $0xc0] sm:$0xff] (%p394_p5)  ;;  %v970_v22 = vld [vmem:[#allocation8 + $0x38] sm:$0xff] (%p394_p5)  ;;  %3362 = vmatpush.msra.mxu2 (%p394_p5), %v3987_v20 }
  0x7a   : >> { %v3534_v1 = vld [vmem:[%s409_s22] sm:%s3533_s1]  ;;  %v3537_v2 = vld [vmem:[%s409_s22 + $0x8] sm:%s3533_s1]  ;;  %1186 = vmatpush.msra.mxu1 (%p394_p5), %v992_v8  ;;  %3348 = vmatpush.msra.mxu3 (%p394_p5), %v992_v8  ;;  %v4005_v33 = vld [vmem:[#allocation8 + $0x168] sm:$0xff] (%p394_p5) }
  0x7b   : >> { %419 = vst [vmem:[%s418_s13 + $0x1] sm:$0xff] %v3534_v1  ;;  %1110 = vmatpush.msra.mxu0 (%p394_p5), %v975_v9  ;;  %v3994_v25 = vld [vmem:[#allocation8 + $0x170] sm:$0xff] (%p394_p5)  ;;  %v986_v26 = vld [vmem:[#allocation8 + $0xb8] sm:$0xff] (%p394_p5)  ;;  %v968_v34 = vld [vmem:[#allocation8 + $0x28] sm:$0xff] (%p394_p5) }
  0x7c   : >> { %420 = vst [vmem:[%s418_s13 + $0x9] sm:$0xff] %v3537_v2  ;;  %1187 = vmatpush.msra.mxu1 (%p394_p5), %v991_v10  ;;  %3349 = vmatpush.msra.mxu3 (%p394_p5), %v991_v10  ;;  %v969_v29 = vld [vmem:[#allocation8 + $0x30] sm:$0xff] (%p394_p5)  ;;  %v984_v35 = vld [vmem:[#allocation8 + $0xa8] sm:$0xff] (%p394_p5)  ;;  %v967_v38 = vld [vmem:[#allocation8 + $0x20] sm:$0xff] (%p394_p5) }
  0x7d   : > { %1111 = vmatpush.msra.mxu0 (%p394_p5), %v974_v11  ;;  %3363 = vmatpush.msra.mxu2 (%p394_p5), %v3994_v25  ;;  %v985_v30 = vld [vmem:[#allocation8 + $0xb0] sm:$0xff] (%p394_p5)  ;;  %v983_v39 = vld [vmem:[#allocation8 + $0xa0] sm:$0xff] (%p394_p5)  ;;  %v966_v40 = vld [vmem:[#allocation8 + $0x18] sm:$0xff] (%p394_p5) }
  0x7e   : > { %1188 = vmatpush.msra.mxu1 %v990_v12  ;;  %3350 = vmatpush.msra.mxu3 %v990_v12  ;;  %v982_v41 = vld [vmem:[#allocation8 + $0x98] sm:$0xff]  ;;  %v965_v42 = vld [vmem:[#allocation8 + $0x10] sm:$0xff]  ;;  %v1007_v46 = vld [vmem:[#allocation8 + $0x160] sm:$0xff] }
  0x7f   : > { %1112 = vmatpush.msra.mxu0 %v973_v13  ;;  %3364 = vmatpush.msra.mxu2 %v4005_v33  ;;  %v981_v43 = vld [vmem:[#allocation8 + $0x90] sm:$0xff]  ;;  %v964_v47 = vld [vmem:[#allocation8 + $0x8] sm:$0xff]  ;;  %v1006_v49 = vld [vmem:[#allocation8 + $0x158] sm:$0xff] }
  0x80   : > { %1189 = vmatpush.msra.mxu1 %v989_v14  ;;  %3351 = vmatpush.msra.mxu3 %v989_v14  ;;  %v980_v48 = vld [vmem:[#allocation8 + $0x88] sm:$0xff]  ;;  %v1005_v50 = vld [vmem:[#allocation8 + $0x150] sm:$0xff]  ;;  %v963_v52 = vld [vmem:[#allocation8] sm:$0xff] }
  0x81   : > { %1113 = vmatpush.msra.mxu0 %v972_v15  ;;  %3365 = vmatpush.msra.mxu2 %v1007_v46  ;;  %v979_v53 = vld [vmem:[#allocation8 + $0x80] sm:$0xff]  ;;  %v1026_v54 = vld [vmem:[#allocation8 + $0x1f8] sm:$0xff]  ;;  %v1025_v56 = vld [vmem:[#allocation8 + $0x1f0] sm:$0xff] }
  0x82   : > { %1190 = vmatpush.msra.mxu1 %v988_v16  ;;  %3352 = vmatpush.msra.mxu3 %v988_v16  ;;  %v1004_v58 = vld [vmem:[#allocation8 + $0x148] sm:$0xff]  ;;  %v1003_v59 = vld [vmem:[#allocation8 + $0x140] sm:$0xff]  ;;  %v1002_v62 = vld [vmem:[#allocation8 + $0x138] sm:$0xff] }
  0x83   : > { %v3983_v17 = vld [vmem:[#allocation2] sm:$0xff]  ;;  %v3992_v24 = vld [vmem:[#allocation2 + $0x8] sm:$0xff]  ;;  %1114 = vmatpush.msra.mxu0 %v971_v18  ;;  %v4001_v31 = vld [vmem:[#allocation2 + $0x18] sm:$0xff]  ;;  %3366 = vmatpush.msra.mxu2 %v1006_v49 }
  0x84   : > { %v3985_v19 = vld [vmem:[#allocation2 + $0x1] sm:$0xff]  ;;  %v3989_v23 = vld [vmem:[#allocation2 + $0x99] sm:$0xff]  ;;  %v3996_v27 = vld [vmem:[#allocation2 + $0x9] sm:$0xff]  ;;  %1191 = vmatpush.msra.mxu1 %v987_v21  ;;  %3353 = vmatpush.msra.mxu3 %v987_v21 }
  0x85   : > { %v3999_v28 = vld [vmem:[#allocation2 + $0xa9] sm:$0xff]  ;;  %1115 = vmatpush.msra.mxu0 %v970_v22  ;;  %v4003_v32 = vld [vmem:[#allocation2 + $0x19] sm:$0xff]  ;;  %v4007_v36 = vld [vmem:[#allocation2 + $0xb1] sm:$0xff]  ;;  %3367 = vmatpush.msra.mxu2 %v1005_v50 }
  0x86   : > { %1192 = vmatpush.msra.mxu1 %v986_v26  ;;  %3354 = vmatpush.msra.mxu3 %v986_v26  ;;  %v4010_v37 = vld [vmem:[#allocation2 + $0x20] sm:$0xff]  ;;  %v4016_v51 = vld [vmem:[#allocation2 + $0x30] sm:$0xff]  ;;  %v1024_v60 = vld [vmem:[#allocation8 + $0x1e8] sm:$0xff] }
  0x87   : > { %1116 = vmatpush.msra.mxu0 %v969_v29  ;;  %v4012_v44 = vld [vmem:[#allocation2 + $0x21] sm:$0xff]  ;;  %v4019_v55 = vld [vmem:[#allocation2 + $0x31] sm:$0xff]  ;;  %v4023_v57 = vld [vmem:[#allocation2 + $0xc9] sm:$0xff]  ;;  %3368 = vmatpush.msra.mxu2 %v1004_v58 }
  0x88   : > { %1193 = vmatpush.msra.mxu1 %v985_v30  ;;  %3355 = vmatpush.msra.mxu3 %v985_v30  ;;  %v4014_v45 = vld [vmem:[#allocation2 + $0xc1] sm:$0xff]  ;;  %v4026_v61 = vld [vmem:[#allocation2 + $0x38] sm:$0xff]  ;;  %v1023_v63 = vld [vmem:[#allocation8 + $0x1e0] sm:$0xff] }
  0x89   : > { %1117 = vmatpush.msra.mxu0 %v968_v34  ;;  %3369 = vmatpush.msra.mxu2 %v1003_v59  ;;  %v1022_v0 = vld [vmem:[#allocation8 + $0x1d8] sm:$0xff]  ;;  %v1001_v1 = vld [vmem:[#allocation8 + $0x130] sm:$0xff]  ;;  %v1000_v5 = vld [vmem:[#allocation8 + $0x128] sm:$0xff] }
  0x8a   : > { %1194 = vmatpush.msra.mxu1 %v984_v35  ;;  %3356 = vmatpush.msra.mxu3 %v984_v35  ;;  %v4031_v2 = vld [vmem:[#allocation2 + $0x39] sm:$0xff]  ;;  %v4037_v7 = vld [vmem:[#allocation2 + $0x48] sm:$0xff]  ;;  %v999_v8 = vld [vmem:[#allocation8 + $0x120] sm:$0xff] }
  0x8b   : > { %1118 = vmatpush.msra.mxu0 %v967_v38  ;;  %3370 = vmatpush.msra.mxu2 %v1002_v62  ;;  %v1021_v3 = vld [vmem:[#allocation8 + $0x1d0] sm:$0xff]  ;;  %v1020_v6 = vld [vmem:[#allocation8 + $0x1c8] sm:$0xff]  ;;  %v1019_v9 = vld [vmem:[#allocation8 + $0x1c0] sm:$0xff] }
  0x8c   : > { %1195 = vmatpush.msra.mxu1 %v983_v39  ;;  %3357 = vmatpush.msra.mxu3 %v983_v39  ;;  %v4035_v4 = vld [vmem:[#allocation2 + $0xd9] sm:$0xff]  ;;  %v1018_v10 = vld [vmem:[#allocation8 + $0x1b8] sm:$0xff]  ;;  %v995_v22 = vld [vmem:[#allocation8 + $0x100] sm:$0xff] }
  0x8d   : > { %1119 = vmatpush.msra.mxu0 %v966_v40  ;;  %3371 = vmatpush.msra.mxu2 %v1001_v1  ;;  %v998_v11 = vld [vmem:[#allocation8 + $0x118] sm:$0xff]  ;;  %v1017_v13 = vld [vmem:[#allocation8 + $0x1b0] sm:$0xff]  ;;  %v508_v16 = vld [vmem:[#allocation2 + $0x52] sm:$0xff] }
  0x8e   : > { %1196 = vmatpush.msra.mxu1 %v982_v41  ;;  %3358 = vmatpush.msra.mxu3 %v982_v41  ;;  %v4040_v12 = vld [vmem:[#allocation2 + $0x49] sm:$0xff]  ;;  %v997_v14 = vld [vmem:[#allocation8 + $0x110] sm:$0xff]  ;;  %v996_v18 = vld [vmem:[#allocation8 + $0x108] sm:$0xff] }
  0x8f   : > { %1120 = vmatpush.msra.mxu0 %v965_v42  ;;  %3372 = vmatpush.msra.mxu2 %v1000_v5  ;;  %v480_v15 = vld [vmem:[#allocation2 + $0xe1] sm:$0xff]  ;;  %v510_v30 = vld [vmem:[#allocation2 + $0x6a] sm:$0xff]  ;;  %v431_v35 = vld [vmem:[#allocation2 + $0x78] sm:$0xff] }
  0x90   : > { %1197 = vmatpush.msra.mxu1 %v981_v43  ;;  %3359 = vmatpush.msra.mxu3 %v981_v43  ;;  %v1014_v21 = vld [vmem:[#allocation8 + $0x198] sm:$0xff]  ;;  %v4051_v26 = vld [vmem:[#allocation2 + $0x60] sm:$0xff]  ;;  %v513_v41 = vld [vmem:[#allocation2 + $0x92] sm:$0xff] }
  0x91   : > { %1121 = vmatpush.msra.mxu0 %v964_v47  ;;  %3373 = vmatpush.msra.mxu2 %v999_v8  ;;  %v4054_v29 = vld [vmem:[#allocation2 + $0x61] sm:$0xff]  ;;  %v433_v42 = vld [vmem:[#allocation2 + $0x90] sm:$0xff] }
  0x92   : > { %1198 = vmatpush.msra.mxu1 %v980_v48  ;;  %3360 = vmatpush.msra.mxu3 %v980_v48  ;;  %v511_v34 = vld [vmem:[#allocation2 + $0x7a] sm:$0xff]  ;;  %v512_v38 = vld [vmem:[#allocation2 + $0x82] sm:$0xff]  ;;  %v473_v43 = vld [vmem:[#allocation2 + $0x91] sm:$0xff] }
  0x93   : > { %1122 = vmatpush.msra.mxu0 %v963_v52  ;;  %3374 = vmatpush.msra.mxu2 %v998_v11  ;;  %v432_v39 = vld [vmem:[#allocation2 + $0x80] sm:$0xff]  ;;  %v516_v47 = vld [vmem:[#allocation2 + $0xb2] sm:$0xff]  ;;  %v4082_v52 = vld [vmem:[#allocation2 + $0xc8] sm:$0xff] }
  0x94   : > { %1199 = vmatpush.msra.mxu1 %v979_v53  ;;  %3361 = vmatpush.msra.mxu3 %v979_v53  ;;  %v472_v40 = vld [vmem:[#allocation2 + $0x81] sm:$0xff]  ;;  %v4076_v48 = vld [vmem:[#allocation2 + $0xb0] sm:$0xff] }
  0x95   : > { %1123 = vmatmul.f32.vlgmr.msra.gmra.mxu0 %v3983_v17  ;;  %1200 = vmatmul.f32.vlgmr.msra.gmra.mxu1 %v3985_v19  ;;  %v1016_v17 = vld [vmem:[#allocation8 + $0x1a8] sm:$0xff]  ;;  %v4044_v19 = vld [vmem:[#allocation2 + $0x50] sm:$0xff] }
  0x96   : > { %1239 = vmatmul.f32.vlgmr.msra.gmra.mxu3 %v3989_v23  ;;  %1261 = vmatpush.msrb.mxu0 %v3987_v20  ;;  %v1015_v20 = vld [vmem:[#allocation8 + $0x1a0] sm:$0xff]  ;;  %v519_v53 = vld [vmem:[#allocation2 + $0xda] sm:$0xff] }
  0x97   : > { %1338 = vmatpush.msrb.mxu3 %v1026_v54  ;;  %3375 = vmatpush.msra.mxu2 %v997_v14  ;;  %v4047_v23 = vld [vmem:[#allocation2 + $0x51] sm:$0xff] }
  0x98   : > { %1262 = vmatpush.msrb.mxu0 %v3994_v25  ;;  %v509_v25 = vld [vmem:[#allocation2 + $0x62] sm:$0xff]  ;;  %v4085_v54 = vld [vmem:[#allocation2 + $0xd8] sm:$0xff] }
  0x99   : > { %1339 = vmatpush.msrb.mxu3 %v1025_v56  ;;  %3376 = vmatpush.msra.mxu2 %v996_v18  ;;  %v4089_v56 = vld [vmem:[#allocation2 + $0xe0] sm:$0xff] }
  0x9a   : > { %1263 = vmatpush.msrb.mxu0 %v4005_v33  ;;  %v470_v33 = vld [vmem:[#allocation2 + $0x69] sm:$0xff] }
  0x9b   : > { %1340 = vmatpush.msrb.mxu3 %v1024_v60  ;;  %3377 = vmatpush.msra.mxu2 %v995_v22 }
  0x9c   : > { %1264 = vmatpush.msrb.mxu0 %v1007_v46  ;;  %1298 = vmatmul.f32.vlgmr.msra.gmra.mxu2 %v508_v16  ;;  %v515_v46 = vld [vmem:[#allocation2 + $0xaa] sm:$0xff]  ;;  %v1073_v16 = vld [vmem:[#allocation8 + $0x370] sm:$0xff] }
  0x9d   : > { %1126 = vmatmul.f32.gmra.mxu0 %v3992_v24  ;;  %1341 = vmatpush.msrb.mxu3 %v1023_v63  ;;  %v1013_v24 = vld [vmem:[#allocation8 + $0x190] sm:$0xff] }
  0x9e   : > { %1203 = vmatmul.f32.gmra.mxu1 %v3996_v27  ;;  %1242 = vmatmul.f32.gmra.mxu3 %v3999_v28  ;;  %v1012_v27 = vld [vmem:[#allocation8 + $0x188] sm:$0xff]  ;;  %v1011_v28 = vld [vmem:[#allocation8 + $0x180] sm:$0xff] }
  0x9f   : > { %1342 = vmatpush.msrb.mxu3 %v1022_v0  ;;  %1265 = vmatpush.msrb.mxu0 %v1006_v49  ;;  %v4079_v49 = vld [vmem:[#allocation2 + $0xc0] sm:$0xff]  ;;  %v1040_v0 = vld [vmem:[#allocation8 + $0x268] sm:$0xff] }
  0xa1   : > { %1343 = vmatpush.msrb.mxu3 %v1021_v3  ;;  %1266 = vmatpush.msrb.mxu0 %v1005_v50  ;;  %v518_v50 = vld [vmem:[#allocation2 + $0xca] sm:$0xff] }
  0xa2   : > { %v1039_v3 = vld [vmem:[#allocation8 + $0x260] sm:$0xff] }
  0xa3   : > { %1344 = vmatpush.msrb.mxu3 %v1020_v6  ;;  %1267 = vmatpush.msrb.mxu0 %v1004_v58  ;;  %v501_v58 = vld [vmem:[#allocation2 + $0x2] sm:$0xff]  ;;  %v4106_v6 = vld [vmem:[#allocation2 + $0x1a] sm:$0xff] }
  0xa4   : > { %1301 = vmatmul.f32.gmra.mxu2 %v509_v25 }
  0xa5   : > { %1129 = vmatmul.f32.gmra.mxu0 %v4001_v31  ;;  %1345 = vmatpush.msrb.mxu3 %v1019_v9 }
  0xa6   : > { %1206 = vmatmul.f32.gmra.mxu1 %v4003_v32  ;;  %1245 = vmatmul.f32.gmra.mxu3 %v4007_v36  ;;  %v4058_v32 = vld [vmem:[#allocation2 + $0x68] sm:$0xff]  ;;  %v471_v36 = vld [vmem:[#allocation2 + $0x79] sm:$0xff] }
  0xa7   : > { %1346 = vmatpush.msrb.mxu3 %v1018_v10  ;;  %1268 = vmatpush.msrb.mxu0 %v1003_v59  ;;  %v1042_v59 = vld [vmem:[#allocation8 + $0x278] sm:$0xff] }
  0xa9   : > { %1347 = vmatpush.msrb.mxu3 %v1017_v13  ;;  %1269 = vmatpush.msrb.mxu0 %v1002_v62  ;;  %v1041_v62 = vld [vmem:[#allocation8 + $0x270] sm:$0xff]  ;;  %v1074_v13 = vld [vmem:[#allocation8 + $0x378] sm:$0xff] }
  0xaa   : > { %1569 = vmatpush.msrb.mxu2 %v1074_v13  ;;  %v1082_v13 = vld [vmem:[#allocation8 + $0x3b8] sm:$0xff] }
  0xab   : > { %1348 = vmatpush.msrb.mxu3 %v1016_v17  ;;  %1270 = vmatpush.msrb.mxu0 %v1001_v1  ;;  %v4099_v1 = vld [vmem:[#allocation2 + $0xa] sm:$0xff] }
  0xac   : > { %1304 = vmatmul.f32.gmra.mxu2 %v510_v30  ;;  %v1090_v17 = vld [vmem:[#allocation8 + $0x3f8] sm:$0xff]  ;;  %v1088_v30 = vld [vmem:[#allocation8 + $0x3e8] sm:$0xff] }
  0xad   : > { %1132 = vmatmul.f32.gmra.mxu0 %v4010_v37  ;;  %1349 = vmatpush.msrb.mxu3 %v1015_v20  ;;  %v1072_v20 = vld [vmem:[#allocation8 + $0x368] sm:$0xff] }
  0xae   : > { %1209 = vmatmul.f32.gmra.mxu1 %v4012_v44  ;;  %1248 = vmatmul.f32.gmra.mxu3 %v4014_v45  ;;  %v514_v44 = vld [vmem:[#allocation2 + $0x9a] sm:$0xff] }
  0xaf   : > { %1350 = vmatpush.msrb.mxu3 %v1014_v21  ;;  %1271 = vmatpush.msrb.mxu0 %v1000_v5  ;;  %v434_v45 = vld [vmem:[#allocation2 + $0x98] sm:$0xff]  ;;  %v1038_v5 = vld [vmem:[#allocation8 + $0x258] sm:$0xff]  ;;  %v1089_v21 = vld [vmem:[#allocation8 + $0x3f0] sm:$0xff] }
  0xb0   : > { %1570 = vmatpush.msrb.mxu2 %v1073_v16  ;;  %v1064_v16 = vld [vmem:[#allocation8 + $0x328] sm:$0xff] }
  0xb1   : > { %1351 = vmatpush.msrb.mxu3 %v1013_v24  ;;  %1272 = vmatpush.msrb.mxu0 %v999_v8  ;;  %v1037_v8 = vld [vmem:[#allocation8 + $0x250] sm:$0xff]  ;;  %v1034_v24 = vld [vmem:[#allocation8 + $0x238] sm:$0xff] }
  0xb2   : > { %1571 = vmatpush.msrb.mxu2 %v1072_v20  ;;  %v1063_v20 = vld [vmem:[#allocation8 + $0x320] sm:$0xff] }
  0xb3   : > { %1352 = vmatpush.msrb.mxu3 %v1012_v27  ;;  %1273 = vmatpush.msrb.mxu0 %v998_v11  ;;  %v1036_v11 = vld [vmem:[#allocation8 + $0x248] sm:$0xff]  ;;  %v1057_v27 = vld [vmem:[#allocation8 + $0x2f0] sm:$0xff] }
  0xb4   : > { %1307 = vmatmul.f32.gmra.mxu2 %v511_v34  ;;  %v1056_v34 = vld [vmem:[#allocation8 + $0x2e8] sm:$0xff] }
  0xb5   : > { %1135 = vmatmul.f32.gmra.mxu0 %v4016_v51  ;;  %1353 = vmatpush.msrb.mxu3 %v1011_v28  ;;  %v1071_v28 = vld [vmem:[#allocation8 + $0x360] sm:$0xff] }
  0xb6   : > { %1212 = vmatmul.f32.gmra.mxu1 %v4019_v55  ;;  %1251 = vmatmul.f32.gmra.mxu3 %v4023_v57  ;;  %v520_v55 = vld [vmem:[#allocation2 + $0xe2] sm:$0xff] }
  0xb7   : > { %1274 = vmatpush.msrb.mxu0 %v997_v14  ;;  %v4114_v14 = vld [vmem:[#allocation2 + $0x22] sm:$0xff]  ;;  %1646 = vmatpush.msra.mxu3 %v1090_v17 }
  0xb8   : > { %1572 = vmatpush.msrb.mxu2 %v1071_v28  ;;  %v1062_v28 = vld [vmem:[#allocation8 + $0x318] sm:$0xff] }
  0xb9   : > { %1275 = vmatpush.msrb.mxu0 %v996_v18  ;;  %v1058_v18 = vld [vmem:[#allocation8 + $0x2f8] sm:$0xff]  ;;  %1647 = vmatpush.msra.mxu3 %v1089_v21  ;;  %v1080_v21 = vld [vmem:[#allocation8 + $0x3a8] sm:$0xff] }
  0xba   : > { %1492 = vmatpush.msrb.mxu1 %v1058_v18  ;;  %v1049_v18 = vld [vmem:[#allocation8 + $0x2b0] sm:$0xff] }
  0xbb   : > { %1276 = vmatpush.msrb.mxu0 %v995_v22  ;;  %1648 = vmatpush.msra.mxu3 %v1088_v30  ;;  %v4143_v30 = vld [vmem:[#allocation2 + $0x4a] sm:$0xff] }
  0xbc   : > { %1310 = vmatmul.f32.gmra.mxu2 %v512_v38  ;;  %1493 = vmatpush.msrb.mxu1 %v1057_v27  ;;  %v4123_v38 = vld [vmem:[#allocation2 + $0x32] sm:$0xff] }
  0xbd   : > { %1138 = vmatmul.f32.gmra.mxu0 %v4026_v61  ;;  %v1048_v27 = vld [vmem:[#allocation8 + $0x2a8] sm:$0xff] }
  0xbe   : > { %1215 = vmatmul.f32.gmra.mxu1 %v4031_v2  ;;  %1254 = vmatmul.f32.gmra.mxu3 %v4035_v4 }
  0xbf   : > { %1415 = vmatpush.msra.mxu0 %v1042_v59  ;;  %1494 = vmatpush.msrb.mxu1 %v1056_v34  ;;  %v1083_v59 = vld [vmem:[#allocation8 + $0x3c0] sm:$0xff] }
  0xc0   : > { %v1079_v34 = vld [vmem:[#allocation8 + $0x3a0] sm:$0xff] }
  0xc1   : > { %1416 = vmatpush.msra.mxu0 %v1041_v62  ;;  %v4133_v62 = vld [vmem:[#allocation2 + $0x3a] sm:$0xff] }
  0xc3   : > { %1417 = vmatpush.msra.mxu0 %v1040_v0  ;;  %v1031_v0 = vld [vmem:[#allocation8 + $0x220] sm:$0xff] }
  0xc4   : > { %1313 = vmatmul.f32.gmra.mxu2 %v513_v41  ;;  %v1069_v41 = vld [vmem:[#allocation8 + $0x350] sm:$0xff] }
  0xc5   : > { %1141 = vmatmul.f32.gmra.mxu0 %v4037_v7 }
  0xc6   : > { %1218 = vmatmul.f32.gmra.mxu1 %v4040_v12  ;;  %1257 = vmatmul.f32.gmra.mxu3 %v480_v15  ;;  %v1035_v15 = vld [vmem:[#allocation8 + $0x240] sm:$0xff] }
  0xc7   : > { %1418 = vmatpush.msra.mxu0 %v1039_v3  ;;  %v4136_v3 = vld [vmem:[#allocation2 + $0xf0] sm:$0xff] }
  0xc9   : > { %1419 = vmatpush.msra.mxu0 %v1038_v5  ;;  %v1051_v5 = vld [vmem:[#allocation8 + $0x2c0] sm:$0xff] }
  0xcb   : > { %1420 = vmatpush.msra.mxu0 %v1037_v8  ;;  %v1065_v8 = vld [vmem:[#allocation8 + $0x330] sm:$0xff] }
  0xcc   : > { %1316 = vmatmul.f32.gmra.mxu2 %v514_v44  ;;  %v1068_v44 = vld [vmem:[#allocation8 + $0x348] sm:$0xff] }
  0xcd   : > { %1144 = vmatmul.f32.gmra.mxu0 %v4044_v19 }
  0xce   : > { %1221 = vmatmul.f32.gmra.mxu1 %v4047_v23  ;;  %1354 = vmatmul.f32.vlgmr.msrb.gmra.mxu3 %v4001_v31  ;;  %v4073_v31 = vld [vmem:[#allocation2 + $0xa8] sm:$0xff] }
  0xcf   : > { %1421 = vmatpush.msra.mxu0 %v1036_v11  ;;  %v1030_v11 = vld [vmem:[#allocation8 + $0x218] sm:$0xff] }
  0xd1   : > { %1422 = vmatpush.msra.mxu0 %v1035_v15 }
  0xd3   : > { %1423 = vmatpush.msra.mxu0 %v1034_v24  ;;  %v1029_v24 = vld [vmem:[#allocation8 + $0x210] sm:$0xff] }
  0xd4   : > { %1319 = vmatmul.f32.gmra.mxu2 %v515_v46 }
  0xd5   : > { %1147 = vmatmul.f32.gmra.mxu0 %v4051_v26 }
  0xd6   : > { %1224 = vmatmul.f32.gmra.mxu1 %v4054_v29  ;;  %1357 = vmatmul.f32.gmra.mxu3 %v4010_v37  ;;  %v517_v37 = vld [vmem:[#allocation2 + $0xc2] sm:$0xff] }
  0xdc   : > { %1322 = vmatmul.f32.gmra.mxu2 %v516_v47 }
  0xdd   : > { %1150 = vmatmul.f32.gmra.mxu0 %v4058_v32 }
  0xde   : > { %1227 = vmatmul.f32.gmra.mxu1 %v470_v33  ;;  %1360 = vmatmul.f32.gmra.mxu3 %v4016_v51 }
  0xe4   : > { %1325 = vmatmul.f32.gmra.mxu2 %v517_v37  ;;  %v1067_v37 = vld [vmem:[#allocation8 + $0x340] sm:$0xff] }
  0xe5   : > { %1153 = vmatmul.f32.gmra.mxu0 %v431_v35 }
  0xe6   : > { %1230 = vmatmul.f32.gmra.mxu1 %v471_v36  ;;  %1363 = vmatmul.f32.gmra.mxu3 %v4026_v61  ;;  %v1087_v36 = vld [vmem:[#allocation8 + $0x3e0] sm:$0xff] }
  0xe7   : > { %1649 = vmatpush.msra.mxu3 %v1087_v36  ;;  %v1028_v36 = vld [vmem:[#allocation8 + $0x208] sm:$0xff] }
  0xec   : > { %1328 = vmatmul.f32.gmra.mxu2 %v518_v50  ;;  %v1084_v50 = vld [vmem:[#allocation8 + $0x3c8] sm:$0xff] }
  0xed   : > { %1156 = vmatmul.f32.gmra.mxu0 %v432_v39 }
  0xee   : > { %1233 = vmatmul.f32.gmra.mxu1 %v472_v40  ;;  %1366 = vmatmul.f32.gmra.mxu3 %v4037_v7  ;;  %v1055_v40 = vld [vmem:[#allocation8 + $0x2e0] sm:$0xff] }
  0xef   : > { %1495 = vmatpush.msrb.mxu1 %v1055_v40  ;;  %v1047_v40 = vld [vmem:[#allocation8 + $0x2a0] sm:$0xff] }
  0xf4   : > { %1331 = vmatmul.f32.gmra.mxu2 %v519_v53  ;;  %v1052_v53 = vld [vmem:[#allocation8 + $0x2c8] sm:$0xff] }
  0xf5   : > { %1159 = vmatmul.f32.gmra.mxu0 %v433_v42 }
  0xf6   : > { %1236 = vmatmul.f32.gmra.mxu1 %v473_v43  ;;  %1369 = vmatmul.f32.gmra.mxu3 %v4044_v19  ;;  %v1054_v43 = vld [vmem:[#allocation8 + $0x2d8] sm:$0xff] }
  0xf7   : > { %1496 = vmatpush.msrb.mxu1 %v1054_v43 }
  0xfc   : > { %1334 = vmatmul.f32.gmra.mxu2 %v520_v55 }
  0xfd   : > { %1162 = vmatmul.f32.gmra.mxu0 %v434_v45 }
  0xfe   : > { %1372 = vmatmul.f32.gmra.mxu3 %v4051_v26 }
 0x105   : > { %1165 = vmatmul.f32.gmra.mxu0 %v4073_v31 }
 0x106   : > { %1375 = vmatmul.f32.gmra.mxu3 %v4058_v32 }
 0x10d   : > { %1168 = vmatmul.f32.gmra.mxu0 %v4076_v48 }
 0x10e   : > { %1378 = vmatmul.f32.gmra.mxu3 %v431_v35  ;;  %v1070_v35 = vld [vmem:[#allocation8 + $0x358] sm:$0xff] }
 0x10f   : > { %1573 = vmatpush.msrb.mxu2 %v1070_v35  ;;  %v4146_v35 = vld [vmem:[#allocation2 + $0xf8] sm:$0xff] }
 0x111   : > { %1574 = vmatpush.msrb.mxu2 %v1069_v41  ;;  %v1061_v41 = vld [vmem:[#allocation8 + $0x310] sm:$0xff] }
 0x112   : > { %v4092_v57 = vpop.f32.mrf.mxu0  ;;  %v4121_v33 = vpop.f32.mrf.mxu1 }
 0x113   : > { %1575 = vmatpush.msrb.mxu2 %v1068_v44  ;;  %v1046_v44 = vld [vmem:[#allocation8 + $0x298] sm:$0xff] }
 0x115   : > { %1171 = vmatmul.f32.gmra.mxu0 %v4079_v49  ;;  %1576 = vmatpush.msrb.mxu2 %v1067_v37  ;;  %v1045_v37 = vld [vmem:[#allocation8 + $0x290] sm:$0xff] }
 0x116   : > { %1381 = vmatmul.f32.gmra.mxu3 %v432_v39  ;;  %v1033_v39 = vld [vmem:[#allocation8 + $0x230] sm:$0xff] }
 0x117   : > { %1424 = vmatpush.msra.mxu0 %v1033_v39 }
 0x119   : > { %v4095_v60 = vpop.f32.mrf.mxu3 }
 0x11a   : > { %5090 = vst [vmem:[#allocation22_spill] sm:$0xff] %v4095_v60  ;;  %v4097_v63 = vpop.f32.mrf.mxu0 }
 0x11b   : > { %v4130_v55 = vpop.f32.mrf.mxu1 }
 0x11d   : > { %1174 = vmatmul.f32.gmra.mxu0 %v4082_v52 }
 0x11e   : > { %1384 = vmatmul.f32.gmra.mxu3 %v433_v42  ;;  %v1086_v42 = vld [vmem:[#allocation8 + $0x3d8] sm:$0xff] }
 0x11f   : > { %1650 = vmatpush.msra.mxu3 %v1086_v42  ;;  %v1078_v42 = vld [vmem:[#allocation8 + $0x398] sm:$0xff] }
 0x121   : > { %v4102_v2 = vpop.f32.mrf.mxu3 }
 0x122   : > { %5091 = vst [vmem:[#allocation23_spill] sm:$0xff] %v4102_v2  ;;  %v4104_v4 = vpop.f32.mrf.mxu0 }
 0x123   : > { %v4148_v39 = vpop.f32.mrf.mxu1 }
 0x125   : > { %1177 = vmatmul.f32.gmra.mxu0 %v4085_v54 }
 0x126   : > { %1387 = vmatmul.f32.gmra.mxu3 %v434_v45  ;;  %v1085_v45 = vld [vmem:[#allocation8 + $0x3d0] sm:$0xff] }
 0x127   : > { %1651 = vmatpush.msra.mxu3 %v1085_v45 }
 0x129   : > { %v4109_v9 = vpop.f32.mrf.mxu3  ;;  %1652 = vmatpush.msra.mxu3 %v1084_v50  ;;  %v1059_v50 = vld [vmem:[#allocation8 + $0x300] sm:$0xff] }
 0x12a   : > { %5092 = vst [vmem:[#allocation24_spill] sm:$0xff] %v4109_v9  ;;  %v4111_v10 = vpop.f32.mrf.mxu0  ;;  %v1099_v9 = vld [vmem:[#allocation8 + $0x440] sm:$0xff] }
 0x12b   : > { %1653 = vmatpush.msra.mxu3 %v1083_v59  ;;  %v1044_v59 = vld [vmem:[#allocation8 + $0x288] sm:$0xff] }
 0x12d   : > { %1180 = vmatmul.f32.gmra.mxu0 %v4089_v56  ;;  %1654 = vmatpush.msra.mxu3 %v1082_v13  ;;  %v4159_v13 = vpop.f32.mrf.mxu1 }
 0x12e   : > { %1390 = vmatmul.f32.gmra.mxu3 %v4073_v31  ;;  %v1032_v31 = vld [vmem:[#allocation8 + $0x228] sm:$0xff] }
 0x12f   : > { %1425 = vmatpush.msra.mxu0 %v1032_v31  ;;  %v1077_v31 = vld [vmem:[#allocation8 + $0x390] sm:$0xff] }
 0x131   : > { %v4117_v22 = vpop.f32.mrf.mxu3  ;;  %1426 = vmatpush.msra.mxu0 %v1031_v0  ;;  %v4156_v0 = vld [vmem:[#allocation2 + $0x31] sm:$0xff] }
 0x132   : > { %v4119_v25 = vpop.f32.mrf.mxu0 }
 0x133   : > { %1427 = vmatpush.msra.mxu0 %v1030_v11  ;;  %v1043_v11 = vld [vmem:[#allocation8 + $0x280] sm:$0xff] }
 0x135   : > { %1277 = vmatmul.f32.vlgmr.msrb.gmra.mxu0 %v501_v58  ;;  %v1066_v58 = vld [vmem:[#allocation8 + $0x338] sm:$0xff] }
 0x136   : > { %1393 = vmatmul.f32.gmra.mxu3 %v4076_v48  ;;  %v1053_v48 = vld [vmem:[#allocation8 + $0x2d0] sm:$0xff]  ;;  %1577 = vmatpush.msrb.mxu2 %v1066_v58 }
 0x137   : > { %1497 = vmatpush.msrb.mxu1 %v1053_v48  ;;  %1428 = vmatpush.msra.mxu0 %v1029_v24  ;;  %v1027_v48 = vld [vmem:[#allocation8 + $0x200] sm:$0xff]  ;;  %v582_v58 = vld [vmem:[#allocation2 + $0x19] sm:$0xff] }
 0x138   : > { %1578 = vmatpush.msrb.mxu2 %v1065_v8  ;;  %v1075_v8 = vld [vmem:[#allocation8 + $0x380] sm:$0xff] }
 0x139   : > { %v4126_v46 = vpop.f32.mrf.mxu3  ;;  %1498 = vmatpush.msrb.mxu1 %v1052_v53  ;;  %1429 = vmatpush.msra.mxu0 %v1028_v36  ;;  %v1076_v53 = vld [vmem:[#allocation8 + $0x388] sm:$0xff] }
 0x13a   : > { %v4128_v47 = vpop.f32.mrf.mxu0  ;;  %1579 = vmatpush.msrb.mxu2 %v1064_v16 }
 0x13b   : > { %1499 = vmatpush.msrb.mxu1 %v1051_v5  ;;  %1430 = vmatpush.msra.mxu0 %v1027_v48  ;;  %v1106_v5 = vld [vmem:[#allocation8 + $0x478] sm:$0xff] }
 0x13c   : > { %1580 = vmatpush.msrb.mxu2 %v1063_v20  ;;  %v588_v48 = vld [vmem:[#allocation2 + $0x61] sm:$0xff] }
 0x13d   : > { %1280 = vmatmul.f32.gmra.mxu0 %v4099_v1  ;;  %v1050_v1 = vld [vmem:[#allocation8 + $0x2b8] sm:$0xff] }
 0x13e   : > { %1396 = vmatmul.f32.gmra.mxu3 %v4079_v49  ;;  %1500 = vmatpush.msrb.mxu1 %v1050_v1  ;;  %v1081_v49 = vld [vmem:[#allocation8 + $0x3b0] sm:$0xff] }
 0x13f   : > { %1655 = vmatpush.msra.mxu3 %v1081_v49  ;;  %1581 = vmatpush.msrb.mxu2 %v1062_v28  ;;  %v704_v49 = vld [vmem:[#allocation2 + $0x39] sm:$0xff]  ;;  %v4194_v28 = vpop.f32.mrf.mxu2 }
 0x140   : > { %1501 = vmatpush.msrb.mxu1 %v1049_v18  ;;  %1723 = vmatpush.msrb.mxu0 %v1106_v5  ;;  %5094 = vst [vmem:[#allocation26_spill] sm:$0xff] %v4194_v28 }
 0x141   : > { %v4138_v15 = vpop.f32.mrf.mxu3  ;;  %1656 = vmatpush.msra.mxu3 %v1080_v21  ;;  %1582 = vmatpush.msrb.mxu2 %v1061_v41  ;;  %v4173_v21 = vpop.f32.mrf.mxu1  ;;  %v1102_v41 = vld [vmem:[#allocation8 + $0x458] sm:$0xff] }
 0x142   : > { %v4140_v17 = vpop.f32.mrf.mxu0  ;;  %1502 = vmatpush.msrb.mxu1 %v1048_v27 }
 0x143   : > { %1657 = vmatpush.msra.mxu3 %v1079_v34 }
 0x144   : > { %1503 = vmatpush.msrb.mxu1 %v1047_v40  ;;  %v587_v40 = vld [vmem:[#allocation2 + $0x51] sm:$0xff] }
 0x145   : > { %1283 = vmatmul.f32.gmra.mxu0 %v4106_v6  ;;  %1658 = vmatpush.msra.mxu3 %v1078_v42 }
 0x146   : > { %1399 = vmatmul.f32.gmra.mxu3 %v4082_v52  ;;  %v1060_v52 = vld [vmem:[#allocation8 + $0x308] sm:$0xff]  ;;  %1504 = vmatpush.msrb.mxu1 %v1046_v44 }
 0x147   : > { %1583 = vmatpush.msrb.mxu2 %v1060_v52  ;;  %1659 = vmatpush.msra.mxu3 %v1077_v31  ;;  %v4207_v42 = vpop.f32.mrf.mxu2  ;;  %v4209_v44 = vld [vmem:[#allocation2 + $0x52] sm:$0xff] }
 0x148   : > { %1505 = vmatpush.msrb.mxu1 %v1045_v37  ;;  %5096 = vst [vmem:[#allocation28_spill] sm:$0xff] %v4207_v42  ;;  %v4221_v37 = vld [vmem:[#allocation2 + $0x79] sm:$0xff] }
 0x149   : > { %v4150_v43 = vpop.f32.mrf.mxu3  ;;  %1584 = vmatpush.msrb.mxu2 %v1059_v50  ;;  %1660 = vmatpush.msra.mxu3 %v1076_v53  ;;  %v1101_v50 = vld [vmem:[#allocation8 + $0x450] sm:$0xff] }
 0x14a   : > { %v4152_v45 = vpop.f32.mrf.mxu0  ;;  %1585 = vmatmul.f32.vlgmr.msrb.gmra.mxu2 %v4016_v51  ;;  %1506 = vmatpush.msrb.mxu1 %v1044_v59  ;;  %v1105_v51 = vld [vmem:[#allocation8 + $0x470] sm:$0xff] }
 0x14b   : > { %1661 = vmatpush.msra.mxu3 %v1075_v8  ;;  %1724 = vmatpush.msrb.mxu0 %v1105_v51  ;;  %v4223_v53 = vld [vmem:[#allocation2 + $0x62] sm:$0xff]  ;;  %v1100_v51 = vld [vmem:[#allocation8 + $0x448] sm:$0xff] }
 0x14c   : > { %1507 = vmatpush.msrb.mxu1 %v1043_v11  ;;  %v670_v8 = vld [vmem:[#allocation2 + $0x80] sm:$0xff] }
 0x14d   : > { %1286 = vmatmul.f32.gmra.mxu0 %v4114_v14  ;;  %1508 = vmatmul.f32.vlgmr.msrb.gmra.mxu1 %v4106_v6  ;;  %v1104_v6 = vld [vmem:[#allocation8 + $0x468] sm:$0xff] }
 0x14e   : > { %1402 = vmatmul.f32.gmra.mxu3 %v4085_v54  ;;  %v583_v54 = vld [vmem:[#allocation2 + $0x21] sm:$0xff]  ;;  %1725 = vmatpush.msrb.mxu0 %v1104_v6 }
 0x151   : > { %v4161_v1 = vpop.f32.mrf.mxu3 }
 0x152   : > { %v4163_v16 = vpop.f32.mrf.mxu0  ;;  %1588 = vmatmul.f32.gmra.mxu2 %v4026_v61  ;;  %v4184_v61 = vpop.f32.mrf.mxu1 }
 0x153   : > { %5093 = vst [vmem:[#allocation25_spill] sm:$0xff] %v4163_v16  ;;  %v1093_v16 = vld [vmem:[#allocation8 + $0x410] sm:$0xff] }
 0x155   : > { %1289 = vmatmul.f32.gmra.mxu0 %v4123_v38  ;;  %1511 = vmatmul.f32.gmra.mxu1 %v4114_v14 }
 0x156   : > { %1405 = vmatmul.f32.gmra.mxu3 %v4089_v56 }
 0x159   : > { %v4169_v18 = vpop.f32.mrf.mxu3 }
 0x15a   : > { %v4171_v20 = vpop.f32.mrf.mxu0  ;;  %1591 = vmatmul.f32.gmra.mxu2 %v4037_v7  ;;  %v1103_v7 = vld [vmem:[#allocation8 + $0x460] sm:$0xff]  ;;  %v4197_v34 = vpop.f32.mrf.mxu1 }
 0x15b   : > { %1726 = vmatpush.msrb.mxu0 %v1103_v7  ;;  %v671_v7 = vld [vmem:[#allocation2 + $0x90] sm:$0xff] }
 0x15d   : > { %1292 = vmatmul.f32.gmra.mxu0 %v4133_v62  ;;  %1514 = vmatmul.f32.gmra.mxu1 %v4123_v38  ;;  %v586_v38 = vld [vmem:[#allocation2 + $0x49] sm:$0xff] }
 0x15e   : > { %1408 = vmatmul.f32.gmra.mxu3 %v4136_v3  ;;  %1727 = vmatpush.msrb.mxu0 %v1102_v41 }
 0x160   : > { %1728 = vmatpush.msrb.mxu0 %v1101_v50 }
 0x161   : > { %v4179_v56 = vpop.f32.mrf.mxu3 }
 0x162   : > { %v4181_v24 = vpop.f32.mrf.mxu0  ;;  %1594 = vmatmul.f32.gmra.mxu2 %v4044_v19  ;;  %1729 = vmatpush.msrb.mxu0 %v1100_v51 }
 0x164   : > { %1730 = vmatpush.msrb.mxu0 %v1099_v9  ;;  %v4264_v9 = vld [vmem:[#allocation2 + $0xa9] sm:$0xff] }
 0x165   : > { %1295 = vmatmul.f32.gmra.mxu0 %v4143_v30  ;;  %1517 = vmatmul.f32.gmra.mxu1 %v4133_v62  ;;  %v4205_v62 = vld [vmem:[#allocation2 + $0x69] sm:$0xff] }
 0x166   : > { %1411 = vmatmul.f32.gmra.mxu3 %v4146_v35 }
 0x169   : > { %v4189_v14 = vpop.f32.mrf.mxu3 }
 0x16a   : > { %v4191_v27 = vpop.f32.mrf.mxu0  ;;  %1597 = vmatmul.f32.gmra.mxu2 %v4051_v26  ;;  %v4212_v26 = vpop.f32.mrf.mxu1 }
 0x16b   : > { %5097 = vst [vmem:[#allocation29_spill] sm:$0xff] %v4212_v26  ;;  %v1091_v26 = vld [vmem:[#allocation8 + $0x400] sm:$0xff] }
 0x16d   : > { %1431 = vmatmul.f32.vlgmr.msra.gmra.mxu0 %v582_v58  ;;  %1520 = vmatmul.f32.gmra.mxu1 %v4143_v30  ;;  %v669_v30 = vld [vmem:[#allocation2 + $0x78] sm:$0xff] }
 0x16e   : > { %1662 = vmatmul.f32.vlgmr.msra.gmra.mxu3 %v4156_v0 }
 0x171   : > { %v4200_v36 = vpop.f32.mrf.mxu3 }
 0x172   : > { %v4202_v19 = vpop.f32.mrf.mxu0  ;;  %1600 = vmatmul.f32.gmra.mxu2 %v4058_v32  ;;  %v1305_v32 = vpop.f32.mrf.mxu2 }
 0x173   : > { %5095 = vst [vmem:[#allocation27_spill] sm:$0xff] %v4202_v19  ;;  %v4229_v5 = vpop.f32.mrf.mxu1  ;;  %v4267_v19 = vld [vmem:[#allocation2 + $0x92] sm:$0xff] }
 0x174   : > { %5100 = vst [vmem:[#allocation32_spill] sm:$0xff] %v4229_v5  ;;  %v4342_v5 = vld [vmem:[#allocation2 + $0xda] sm:$0xff] }
 0x175   : > { %1434 = vmatmul.f32.gmra.mxu0 %v583_v54  ;;  %1523 = vmatmul.f32.gmra.mxu1 %v4209_v44 }
 0x176   : > { %1665 = vmatmul.f32.gmra.mxu3 %v704_v49 }
 0x179   : > { %v4214_v52 = vpop.f32.mrf.mxu3 }
 0x17a   : > { %v4216_v31 = vpop.f32.mrf.mxu0  ;;  %1603 = vmatmul.f32.gmra.mxu2 %v669_v30  ;;  %v1308_v6 = vpop.f32.mrf.mxu2 }
 0x17b   : > { %5098 = vst [vmem:[#allocation30_spill] sm:$0xff] %v4216_v31  ;;  %v1228_v41 = vpop.f32.mrf.mxu1 }
 0x17c   : > { %v1229_v51 = vadd.f32 %v1228_v41, %v4171_v20  ;;  %v673_v20 = vld [vmem:[#allocation2 + $0xa8] sm:$0xff] }
 0x17d   : > { %1437 = vmatmul.f32.gmra.mxu0 %v4156_v0  ;;  %1526 = vmatmul.f32.gmra.mxu1 %v4223_v53  ;;  %v4232_v0 = vld [vmem:[#allocation2 + $0x81] sm:$0xff] }
 0x17e   : > { %1668 = vmatmul.f32.gmra.mxu3 %v4040_v12  ;;  %v4235_v12 = vld [vmem:[#allocation2 + $0x6a] sm:$0xff]  ;;  %v1306_v2 = vadd.f32 %v1305_v32, %v1229_v51 }
 0x181   : > { %v4225_v58 = vpop.f32.mrf.mxu3 }
 0x182   : > { %v4227_v59 = vpop.f32.mrf.mxu0  ;;  %1606 = vmatmul.f32.gmra.mxu2 %v670_v8  ;;  %v672_v8 = vld [vmem:[#allocation2 + $0x98] sm:$0xff] }
 0x183   : > { %5099 = vst [vmem:[#allocation31_spill] sm:$0xff] %v4227_v59 }
 0x185   : > { %1440 = vmatmul.f32.gmra.mxu0 %v704_v49  ;;  %1529 = vmatmul.f32.gmra.mxu1 %v4235_v12  ;;  %v4242_v49 = vld [vmem:[#allocation2 + $0x91] sm:$0xff] }
 0x186   : > { %1671 = vmatmul.f32.gmra.mxu3 %v4047_v23  ;;  %v4245_v23 = vld [vmem:[#allocation2 + $0x7a] sm:$0xff] }
 0x189   : > { %v4237_v11 = vpop.f32.mrf.mxu3 }
 0x18a   : > { %5101 = vst [vmem:[#allocation33_spill] sm:$0xff] %v4237_v11  ;;  %v4239_v54 = vpop.f32.mrf.mxu0  ;;  %1609 = vmatmul.f32.gmra.mxu2 %v671_v7  ;;  %v1231_v7 = vpop.f32.mrf.mxu1 }
 0x18b   : > { %5102 = vst [vmem:[#allocation34_spill] sm:$0xff] %v4239_v54  ;;  %v1311_v54 = vpop.f32.mrf.mxu2  ;;  %v1232_v41 = vadd.f32 %v1231_v7, %v4181_v24  ;;  %v674_v7 = vld [vmem:[#allocation2 + $0xb0] sm:$0xff] }
 0x18d   : > { %1443 = vmatmul.f32.gmra.mxu0 %v586_v38  ;;  %1532 = vmatmul.f32.gmra.mxu1 %v4245_v23  ;;  %v4253_v38 = vld [vmem:[#allocation2 + $0x99] sm:$0xff] }
 0x18e   : > { %1674 = vmatmul.f32.gmra.mxu3 %v4054_v29  ;;  %v4256_v29 = vld [vmem:[#allocation2 + $0x82] sm:$0xff] }
 0x191   : > { %v4247_v30 = vpop.f32.mrf.mxu3 }
 0x192   : > { %5103 = vst [vmem:[#allocation35_spill] sm:$0xff] %v4247_v30  ;;  %v4249_v50 = vpop.f32.mrf.mxu0  ;;  %1612 = vmatmul.f32.gmra.mxu2 %v672_v8 }
 0x193   : > { %v4269_v32 = vpop.f32.mrf.mxu2  ;;  %v1250_v42 = vadd.f32 %v4117_v22, %v4249_v50  ;;  %v720_v50 = vld [vmem:[#allocation2 + $0xf9] sm:$0xff] }
 0x194   : > { %5105 = vst [vmem:[#allocation37_spill] sm:$0xff] %v4269_v32  ;;  %v4294_v32 = vld [vmem:[#allocation2 + $0xaa] sm:$0xff] }
 0x195   : > { %1446 = vmatmul.f32.gmra.mxu0 %v587_v40  ;;  %1535 = vmatmul.f32.gmra.mxu1 %v4256_v29  ;;  %v1098_v40 = vld [vmem:[#allocation8 + $0x438] sm:$0xff] }
 0x196   : > { %1677 = vmatmul.f32.gmra.mxu3 %v4205_v62  ;;  %1731 = vmatpush.msrb.mxu0 %v1098_v40  ;;  %v4281_v40 = vld [vmem:[#allocation2 + $0x9a] sm:$0xff] }
 0x199   : > { %v1382_v59 = vpop.f32.mrf.mxu3 }
 0x19a   : > { %v4258_v60 = vadd.f32 %v1382_v59, %v1306_v2  ;;  %v4260_v31 = vpop.f32.mrf.mxu0  ;;  %v1309_v2 = vadd.f32 %v1308_v6, %v1232_v41  ;;  %1615 = vmatmul.f32.gmra.mxu2 %v673_v20  ;;  %v1234_v59 = vpop.f32.mrf.mxu1  ;;  %v1097_v6 = vld [vmem:[#allocation8 + $0x430] sm:$0xff] }
 0x19b   : > { %1732 = vmatpush.msrb.mxu0 %v1097_v6  ;;  %v4283_v41 = vpop.f32.mrf.mxu2  ;;  %v1253_v22 = vadd.f32 %v4126_v46, %v4260_v31  ;;  %v681_v46 = vld [vmem:[#allocation2 + $0x108] sm:$0xff] }
 0x19c   : > { %5104 = vst [vmem:[#allocation36_spill] sm:$0xff] %v4258_v60  ;;  %v4278_v60 = vld [vmem:[#allocation2 + $0xb1] sm:$0xff]  ;;  %v721_v31 = vld [vmem:[#allocation2 + $0x109] sm:$0xff] }
 0x19d   : > { %1449 = vmatmul.f32.gmra.mxu0 %v588_v48  ;;  %v1235_v48 = vadd.f32 %v1234_v59, %v4191_v27  ;;  %1538 = vmatmul.f32.gmra.mxu1 %v4267_v19  ;;  %5107 = vst [vmem:[#allocation39_spill] sm:$0xff] %v4283_v41  ;;  %v675_v59 = vld [vmem:[#allocation2 + $0xc0] sm:$0xff] }
 0x19e   : > { %1680 = vmatmul.f32.gmra.mxu3 %v4221_v37 }
 0x19f   : > { %v1312_v20 = vadd.f32 %v1311_v54, %v1235_v48  ;;  %v1096_v48 = vld [vmem:[#allocation8 + $0x428] sm:$0xff] }
 0x1a0   : > { %1733 = vmatpush.msrb.mxu0 %v1096_v48 }
 0x1a1   : > { %v1385_v8 = vpop.f32.mrf.mxu3 }
 0x1a2   : > { %v4271_v51 = vadd.f32 %v1385_v8, %v1309_v2  ;;  %v4273_v24 = vpop.f32.mrf.mxu0  ;;  %1618 = vmatmul.f32.gmra.mxu2 %v674_v7 }
 0x1a3   : > { %v4300_v6 = vpop.f32.mrf.mxu2 }
 0x1a4   : > { %5106 = vst [vmem:[#allocation38_spill] sm:$0xff] %v4271_v51  ;;  %v678_v51 = vld [vmem:[#allocation2 + $0xe0] sm:$0xff] }
 0x1a5   : > { %1452 = vmatmul.f32.gmra.mxu0 %v4205_v62  ;;  %1541 = vmatmul.f32.gmra.mxu1 %v4281_v40  ;;  %v4291_v62 = vld [vmem:[#allocation2 + $0xc1] sm:$0xff]  ;;  %5110 = vst [vmem:[#allocation42_spill] sm:$0xff] %v4300_v6 }
 0x1a6   : > { %1683 = vmatmul.f32.gmra.mxu3 %v4232_v0  ;;  %v4320_v6 = vld [vmem:[#allocation2 + $0xc2] sm:$0xff] }
 0x1a9   : > { %v1388_v2 = vpop.f32.mrf.mxu3 }
 0x1aa   : > { %v4285_v8 = vadd.f32 %v1388_v2, %v1312_v20  ;;  %v4287_v27 = vpop.f32.mrf.mxu0  ;;  %1621 = vmatmul.f32.gmra.mxu2 %v675_v59  ;;  %v676_v20 = vld [vmem:[#allocation2 + $0xc8] sm:$0xff]  ;;  %v4307_v2 = vld [vmem:[#allocation2 + $0xb2] sm:$0xff] }
 0x1ab   : > { %v4314_v48 = vpop.f32.mrf.mxu2 }
 0x1ac   : > { %5108 = vst [vmem:[#allocation40_spill] sm:$0xff] %v4285_v8  ;;  %v1095_v8 = vld [vmem:[#allocation8 + $0x420] sm:$0xff] }
 0x1ad   : > { %1455 = vmatmul.f32.gmra.mxu0 %v4221_v37  ;;  %1544 = vmatmul.f32.gmra.mxu1 %v4294_v32  ;;  %v4304_v37 = vld [vmem:[#allocation2 + $0xc9] sm:$0xff]  ;;  %5112 = vst [vmem:[#allocation44_spill] sm:$0xff] %v4314_v48 }
 0x1ae   : > { %1686 = vmatmul.f32.gmra.mxu3 %v4242_v49  ;;  %1734 = vmatpush.msrb.mxu0 %v1095_v8  ;;  %v4328_v8 = vld [vmem:[#allocation2 + $0xe1] sm:$0xff]  ;;  %v4331_v48 = vld [vmem:[#allocation2 + $0xca] sm:$0xff] }
 0x1b1   : > { %v4296_v54 = vpop.f32.mrf.mxu3 }
 0x1b2   : > { %5109 = vst [vmem:[#allocation41_spill] sm:$0xff] %v4296_v54  ;;  %v4298_v7 = vpop.f32.mrf.mxu0  ;;  %1624 = vmatmul.f32.gmra.mxu2 %v676_v20  ;;  %v677_v54 = vld [vmem:[#allocation2 + $0xd8] sm:$0xff] }
 0x1b3   : > { %v1326_v30 = vpop.f32.mrf.mxu2 }
 0x1b4   : > { %v1327_v11 = vadd.f32 %v1326_v30, %v1250_v42  ;;  %v4354_v42 = vld [vmem:[#allocation2 + $0xe2] sm:$0xff] }
 0x1b5   : > { %1458 = vmatmul.f32.gmra.mxu0 %v4232_v0  ;;  %1547 = vmatmul.f32.gmra.mxu1 %v4307_v2  ;;  %v4317_v0 = vld [vmem:[#allocation2 + $0xd9] sm:$0xff] }
 0x1b6   : > { %1689 = vmatmul.f32.gmra.mxu3 %v4253_v38 }
 0x1b9   : > { %v4309_v59 = vpop.f32.mrf.mxu3 }
 0x1ba   : > { %5111 = vst [vmem:[#allocation43_spill] sm:$0xff] %v4309_v59  ;;  %v4311_v41 = vpop.f32.mrf.mxu0  ;;  %1627 = vmatmul.f32.gmra.mxu2 %v677_v54 }
 0x1bd   : > { %1461 = vmatmul.f32.gmra.mxu0 %v4242_v49  ;;  %1550 = vmatmul.f32.gmra.mxu1 %v4320_v6  ;;  %v1094_v49 = vld [vmem:[#allocation8 + $0x418] sm:$0xff] }
 0x1be   : > { %1692 = vmatmul.f32.gmra.mxu3 %v4264_v9  ;;  %1735 = vmatpush.msrb.mxu0 %v1094_v49 }
 0x1c0   : > { %1736 = vmatpush.msrb.mxu0 %v1093_v16 }
 0x1c1   : > { %v4322_v20 = vpop.f32.mrf.mxu3 }
 0x1c2   : > { %5113 = vst [vmem:[#allocation45_spill] sm:$0xff] %v4322_v20  ;;  %v4324_v59 = vpop.f32.mrf.mxu0  ;;  %1630 = vmatmul.f32.gmra.mxu2 %v678_v51  ;;  %v1329_v51 = vpop.f32.mrf.mxu2 }
 0x1c5   : > { %1464 = vmatmul.f32.gmra.mxu0 %v4253_v38  ;;  %1553 = vmatmul.f32.gmra.mxu1 %v4331_v48  ;;  %v719_v38 = vld [vmem:[#allocation2 + $0xf1] sm:$0xff] }
 0x1c6   : > { %1695 = vmatmul.f32.gmra.mxu3 %v4278_v60 }
 0x1c9   : > { %v4333_v54 = vpop.f32.mrf.mxu3 }
 0x1ca   : > { %5114 = vst [vmem:[#allocation46_spill] sm:$0xff] %v4333_v54  ;;  %v4335_v20 = vpop.f32.mrf.mxu0  ;;  %1633 = vmatmul.f32.gmra.mxu2 %v4136_v3  ;;  %v1330_v3 = vadd.f32 %v1329_v51, %v1253_v22 }
 0x1cd   : > { %1467 = vmatmul.f32.gmra.mxu0 %v4264_v9  ;;  %1556 = vmatmul.f32.gmra.mxu1 %v4342_v5  ;;  %v1092_v9 = vld [vmem:[#allocation8 + $0x408] sm:$0xff] }
 0x1ce   : > { %1698 = vmatmul.f32.gmra.mxu3 %v4291_v62  ;;  %1737 = vmatpush.msrb.mxu0 %v1092_v9  ;;  %v682_v9 = vld [vmem:[#allocation2 + $0x110] sm:$0xff] }
 0x1d0   : > { %1738 = vmatpush.msrb.mxu0 %v1091_v26 }
 0x1d1   : > { %v1403_v49 = vpop.f32.mrf.mxu3 }
 0x1d2   : > { %v4345_v54 = vadd.f32 %v1403_v49, %v1327_v11  ;;  %v4347_v28 = vpop.f32.mrf.mxu0  ;;  %1636 = vmatmul.f32.gmra.mxu2 %v4146_v35  ;;  %v1332_v49 = vpop.f32.mrf.mxu2  ;;  %v4366_v35 = vld [vmem:[#allocation2 + $0xf2] sm:$0xff] }
 0x1d5   : > { %1470 = vmatmul.f32.gmra.mxu0 %v4278_v60  ;;  %v1256_v60 = vadd.f32 %v4138_v15, %v4273_v24  ;;  %1559 = vmatmul.f32.gmra.mxu1 %v4354_v42  ;;  %v1259_v15 = vadd.f32 %v4150_v43, %v4287_v27  ;;  %v743_v43 = vld [vmem:[#allocation2 + $0x32] sm:$0xff]  ;;  %v744_v27 = vld [vmem:[#allocation2 + $0x3a] sm:$0xff] }
 0x1d6   : > { %1701 = vmatmul.f32.gmra.mxu3 %v4304_v37 }
 0x1d7   : > { %v1333_v51 = vadd.f32 %v1332_v49, %v1256_v60  ;;  %v4377_v49 = vld [vmem:[#allocation2 + $0xfa] sm:$0xff] }
 0x1d9   : > { %v1406_v16 = vpop.f32.mrf.mxu3 }
 0x1da   : > { %v4357_v11 = vadd.f32 %v1406_v16, %v1330_v3  ;;  %v4359_v30 = vpop.f32.mrf.mxu0  ;;  %1639 = vmatmul.f32.gmra.mxu2 %v681_v46  ;;  %v1335_v24 = vpop.f32.mrf.mxu2 }
 0x1db   : > { %v1336_v46 = vadd.f32 %v1335_v24, %v1259_v15 }
 0x1dd   : > { %1473 = vmatmul.f32.gmra.mxu0 %v4291_v62  ;;  %1562 = vmatmul.f32.gmra.mxu1 %v4366_v35  ;;  %v722_v62 = vld [vmem:[#allocation2 + $0x111] sm:$0xff] }
 0x1de   : > { %1704 = vmatmul.f32.gmra.mxu3 %v4317_v0 }
 0x1e1   : > { %v1409_v22 = vpop.f32.mrf.mxu3 }
 0x1e2   : > { %v4368_v3 = vadd.f32 %v1409_v22, %v1333_v51  ;;  %v4370_v16 = vpop.f32.mrf.mxu0  ;;  %1642 = vmatmul.f32.gmra.mxu2 %v682_v9  ;;  %v745_v9 = vld [vmem:[#allocation2 + $0x4a] sm:$0xff] }
 0x1e5   : > { %1476 = vmatmul.f32.gmra.mxu0 %v4304_v37  ;;  %1565 = vmatmul.f32.gmra.mxu1 %v4377_v49 }
 0x1e6   : > { %1707 = vmatmul.f32.gmra.mxu3 %v4328_v8 }
 0x1e9   : > { %v1412_v60 = vpop.f32.mrf.mxu3 }
 0x1ea   : > { %v4379_v51 = vadd.f32 %v1412_v60, %v1336_v46  ;;  %v4381_v22 = vpop.f32.mrf.mxu0 }
 0x1ed   : > { %1479 = vmatmul.f32.gmra.mxu0 %v4317_v0 }
 0x1ee   : > { %1710 = vmatmul.f32.gmra.mxu3 %v719_v38 }
 0x1f2   : > { %v4385_v26 = vpop.f32.mrf.mxu0 }
 0x1f5   : > { %1482 = vmatmul.f32.gmra.mxu0 %v4328_v8 }
 0x1f6   : > { %1713 = vmatmul.f32.gmra.mxu3 %v720_v50 }
 0x1fa   : > { %v4388_v37 = vpop.f32.mrf.mxu0 }
 0x1fd   : > { %1485 = vmatmul.f32.gmra.mxu0 %v719_v38 }
 0x1fe   : > { %1716 = vmatmul.f32.gmra.mxu3 %v721_v31 }
 0x202   : > { %v4390_v15 = vpop.f32.mrf.mxu0 }
 0x205   : > { %1488 = vmatmul.f32.gmra.mxu0 %v720_v50 }
 0x206   : > { %1719 = vmatmul.f32.gmra.mxu3 %v722_v62 }
 0x20a   : > { %v4392_v24 = vpop.f32.mrf.mxu0 }
 0x20d   : > { %1739 = vmatmul.f32.vlgmr.msrb.gmra.mxu0 %v743_v43 }
 0x212   : > { %v4394_v0 = vpop.f32.mrf.mxu0 }
 0x215   : > { %1742 = vmatmul.f32.gmra.mxu0 %v744_v27  ;;  %v1586_v27 = vpop.f32.mrf.mxu2 }
 0x21a   : > { %v4396_v46 = vpop.f32.mrf.mxu0 }
 0x21d   : > { %1745 = vmatmul.f32.gmra.mxu0 %v745_v9 }
 0x222   : > { %v4398_v8 = vpop.f32.mrf.mxu0 }
 0x225   : > { %1748 = vmatmul.f32.gmra.mxu0 %v4209_v44  ;;  %v4416_v44 = vpop.f32.mrf.mxu1 }
 0x226   : > { %5120 = vst [vmem:[#allocation52_spill] sm:$0xff] %v4416_v44 }
 0x22a   : > { %v4401_v38 = vpop.f32.mrf.mxu0 }
 0x22b   : > { %5115 = vst [vmem:[#allocation47_spill] sm:$0xff] %v4401_v38 }
 0x22d   : > { %1751 = vmatmul.f32.gmra.mxu0 %v4223_v53  ;;  %v1509_v53 = vpop.f32.mrf.mxu1 }
 0x232   : > { %v4404_v31 = vpop.f32.mrf.mxu0 }
 0x233   : > { %5116 = vst [vmem:[#allocation48_spill] sm:$0xff] %v4404_v31 }
 0x235   : > { %1754 = vmatmul.f32.gmra.mxu0 %v4235_v12  ;;  %v1512_v9 = vpop.f32.mrf.mxu1 }
 0x23a   : > { %v4407_v50 = vpop.f32.mrf.mxu0 }
 0x23b   : > { %5117 = vst [vmem:[#allocation49_spill] sm:$0xff] %v4407_v50 }
 0x23d   : > { %1757 = vmatmul.f32.gmra.mxu0 %v4245_v23  ;;  %v1663_v23 = vpop.f32.mrf.mxu3 }
 0x242   : > { %v4410_v62 = vpop.f32.mrf.mxu0 }
 0x243   : > { %5118 = vst [vmem:[#allocation50_spill] sm:$0xff] %v4410_v62 }
 0x245   : > { %1760 = vmatmul.f32.gmra.mxu0 %v4256_v29  ;;  %v1589_v29 = vpop.f32.mrf.mxu2 }
 0x24a   : > { %v4413_v60 = vpop.f32.mrf.mxu0 }
 0x24b   : > { %5119 = vst [vmem:[#allocation51_spill] sm:$0xff] %v4413_v60 }
 0x24d   : > { %1763 = vmatmul.f32.gmra.mxu0 %v4267_v19  ;;  %v1666_v19 = vpop.f32.mrf.mxu3 }
 0x252   : > { %v4418_v43 = vpop.f32.mrf.mxu0 }
 0x253   : > { %5121 = vst [vmem:[#allocation53_spill] sm:$0xff] %v4418_v43  ;;  %v1515_v43 = vpop.f32.mrf.mxu1 }
 0x255   : > { %1766 = vmatmul.f32.gmra.mxu0 %v4281_v40  ;;  %v1592_v40 = vpop.f32.mrf.mxu2 }
 0x25a   : > { %v4421_v12 = vpop.f32.mrf.mxu0 }
 0x25b   : > { %5122 = vst [vmem:[#allocation54_spill] sm:$0xff] %v4421_v12 }
 0x25d   : > { %1769 = vmatmul.f32.gmra.mxu0 %v4294_v32  ;;  %v1669_v32 = vpop.f32.mrf.mxu3  ;;  %v4438_v38 = vpop.f32.mrf.mxu2 }
 0x262   : > { %v4424_v62 = vpop.f32.mrf.mxu0 }
 0x263   : > { %5123 = vst [vmem:[#allocation55_spill] sm:$0xff] %v4424_v62  ;;  %v1202_v62 = vadd.f32 %v4121_v33, %v4092_v57  ;;  %v761_v57 = vld [vmem:[#allocation2 + $0x10a] sm:$0xff] }
 0x265   : > { %1772 = vmatmul.f32.gmra.mxu0 %v4307_v2  ;;  %v1518_v2 = vpop.f32.mrf.mxu1  ;;  %v1279_v31 = vadd.f32 %v4298_v7, %v1202_v62  ;;  %v4448_v33 = vpop.f32.mrf.mxu3 }
 0x26a   : > { %v1480_v60 = vpop.f32.mrf.mxu0 }
 0x26b   : > { %v4428_v44 = vadd.f32 %v1480_v60, %v4345_v54  ;;  %v1356_v60 = vadd.f32 %v4161_v1, %v1279_v31  ;;  %v4457_v31 = vpop.f32.mrf.mxu2 }
 0x26d   : > { %1775 = vmatmul.f32.gmra.mxu0 %v4320_v6 }
 0x272   : > { %v1483_v12 = vpop.f32.mrf.mxu0 }
 0x273   : > { %v4432_v50 = vadd.f32 %v1483_v12, %v4357_v11  ;;  %v1205_v11 = vadd.f32 %v4130_v55, %v4097_v63  ;;  %v1433_v12 = vadd.f32 %v4381_v22, %v1356_v60  ;;  %v1208_v63 = vadd.f32 %v4148_v39, %v4104_v4  ;;  %v1601_v60 = vpop.f32.mrf.mxu2 }
 0x275   : > { %5124 = vst [vmem:[#allocation56_spill] sm:$0xff] %v4432_v50  ;;  %1778 = vmatmul.f32.gmra.mxu0 %v4331_v48  ;;  %v1282_v7 = vadd.f32 %v4311_v41, %v1205_v11  ;;  %v4451_v48 = vpop.f32.mrf.mxu1  ;;  %v1510_v62 = vadd.f32 %v1509_v53, %v1433_v12  ;;  %v4463_v41 = vld [vmem:[#allocation2 + $0x112] sm:$0xff]  ;;  %v1285_v22 = vadd.f32 %v4324_v59, %v1208_v63  ;;  %v4466_v53 = vpop.f32.mrf.mxu3 }
 0x276   : > { %v1211_v59 = vadd.f32 %v4159_v13, %v4111_v10 }
 0x277   : > { %v1359_v1 = vadd.f32 %v4169_v18, %v1282_v7  ;;  %v1587_v55 = vadd.f32 %v1586_v27, %v1510_v62  ;;  %v1362_v39 = vadd.f32 %v4179_v56, %v1285_v22 }
 0x278   : > { %v1288_v11 = vadd.f32 %v4335_v20, %v1211_v59 }
 0x279   : > { %v1664_v18 = vadd.f32 %v1663_v23, %v1587_v55  ;;  %v1439_v23 = vadd.f32 %v4388_v37, %v1362_v39  ;;  %v1214_v37 = vadd.f32 %v4173_v21, %v4119_v25 }
 0x27a   : > { %v1486_v54 = vpop.f32.mrf.mxu0  ;;  %v1365_v55 = vadd.f32 %v4189_v14, %v1288_v11 }
 0x27b   : > { %v4442_v6 = vadd.f32 %v1486_v54, %v4368_v3  ;;  %v1516_v7 = vadd.f32 %v1515_v43, %v1439_v23  ;;  %v1291_v43 = vadd.f32 %v4347_v28, %v1214_v37 }
 0x27d   : > { %1781 = vmatmul.f32.gmra.mxu0 %v4342_v5  ;;  %v1436_v5 = vadd.f32 %v4385_v26, %v1359_v1  ;;  %v1678_v1 = vpop.f32.mrf.mxu3 }
 0x27f   : > { %v1513_v54 = vadd.f32 %v1512_v9, %v1436_v5  ;;  %v1604_v5 = vpop.f32.mrf.mxu2 }
 0x281   : > { %v1590_v27 = vadd.f32 %v1589_v29, %v1513_v54  ;;  %v1593_v29 = vadd.f32 %v1592_v40, %v1516_v7  ;;  %v5125_v7 = vld [vmem:[#allocation29_spill] sm:$0xff] }
 0x282   : > { %v1489_v50 = vpop.f32.mrf.mxu0 }
 0x283   : > { %v4455_v3 = vadd.f32 %v1489_v50, %v4379_v51  ;;  %v4471_v51 = vld [vmem:[%s5053_s3] ss:$0 sm:$0xff]  ;;  %v4473_v50 = vpop.f32.mrf.mxu1  ;;  %v1667_v12 = vadd.f32 %v1666_v19, %v1590_v27  ;;  %v1670_v22 = vadd.f32 %v1669_v32, %v1593_v29 }
 0x285   : > { %1784 = vmatmul.f32.gmra.mxu0 %v4354_v42  ;;  %v4479_v42 = vld [vmem:[%s5054_s4] ss:$0 sm:$0xff]  ;;  %v1681_v21 = vpop.f32.mrf.mxu3 }
 0x287   : > { %v1607_v27 = vpop.f32.mrf.mxu2 }
 0x28a   : > { %v1740_v4 = vpop.f32.mrf.mxu0 }
 0x28b   : > { %v1741_v26 = vadd.f32 %v1740_v4, %v1664_v18  ;;  %v1527_v13 = vpop.f32.mrf.mxu1  ;;  %v1368_v4 = vadd.f32 %v4200_v36, %v1291_v43  ;;  %v5127_v43 = vld [vmem:[#allocation33_spill] sm:$0xff] }
 0x28d   : > { %v1804_v9 = vmul.f32 %v4471_v51, %v1741_v26  ;;  %1787 = vmatmul.f32.gmra.mxu0 %v4366_v35  ;;  %v1442_v35 = vadd.f32 %v4390_v15, %v1365_v55  ;;  %v1217_v15 = vadd.f32 %v4184_v61, %v4128_v47 }
 0x28f   : > { %v1828_v56 = vadd.f32 %v4479_v42, %v1804_v9  ;;  %v1519_v14 = vadd.f32 %v1518_v2, %v1442_v35  ;;  %v1294_v32 = vadd.f32 %v4359_v30, %v1217_v15 }
 0x291   : > { %v1848_v62 = vmax.f32 %v1828_v56, 0.0  ;;  %v1596_v40 = vadd.f32 %v4438_v38, %v1519_v14  ;;  %v1371_v47 = vadd.f32 %v4214_v52, %v1294_v32 }
 0x292   : > { %v1743_v63 = vpop.f32.mrf.mxu0 }
 0x293   : > { %1868 = vst [vmem:[#allocation3 + $0x1] sm:$0xff] %v1848_v62  ;;  %v1744_v10 = vadd.f32 %v1743_v63, %v1667_v12  ;;  %v1530_v39 = vpop.f32.mrf.mxu1  ;;  %v1673_v36 = vadd.f32 %v4448_v33, %v1596_v40  ;;  %v1448_v30 = vadd.f32 %v4394_v0, %v1371_v47  ;;  %v1684_v33 = vpop.f32.mrf.mxu3 }
 0x295   : > { %v1805_v20 = vmul.f32 %v4471_v51, %v1744_v10  ;;  %1790 = vmatmul.f32.gmra.mxu0 %v4377_v49  ;;  %v1445_v49 = vadd.f32 %v4392_v24, %v1368_v4  ;;  %v1220_v24 = vadd.f32 %v4197_v34, %v4140_v17  ;;  %v1525_v56 = vadd.f32 %v4473_v50, %v1448_v30  ;;  %v5126_v10 = vld [vmem:[#allocation26_spill] sm:$0xff] }
 0x297   : > { %v1829_v19 = vadd.f32 %v4479_v42, %v1805_v20  ;;  %v1522_v26 = vadd.f32 %v4451_v48, %v1445_v49  ;;  %v1297_v48 = vadd.f32 %v4370_v16, %v1220_v24  ;;  %v1602_v62 = vadd.f32 %v1601_v60, %v1525_v56  ;;  %v5129_v60 = vld [vmem:[#allocation32_spill] sm:$0xff] }
 0x298   : > { %v5134_v56 = vld [vmem:[#allocation48_spill] sm:$0xff] }
 0x299   : > { %v1849_v18 = vmax.f32 %v1829_v19, 0.0  ;;  %v1599_v38 = vadd.f32 %v4457_v31, %v1522_v26  ;;  %v1374_v34 = vadd.f32 %v4225_v58, %v1297_v48  ;;  %v1610_v31 = vpop.f32.mrf.mxu2  ;;  %v1679_v37 = vadd.f32 %v1678_v1, %v1602_v62  ;;  %v5130_v1 = vld [vmem:[#allocation28_spill] sm:$0xff] }
 0x29a   : > { %v1746_v54 = vpop.f32.mrf.mxu0 }
 0x29b   : > { %1869 = vst [vmem:[#allocation3 + $0x9] sm:$0xff] %v1849_v18  ;;  %v1747_v25 = vadd.f32 %v1746_v54, %v1670_v22  ;;  %v1533_v11 = vpop.f32.mrf.mxu1  ;;  %v1676_v52 = vadd.f32 %v4466_v53, %v1599_v38  ;;  %v1451_v16 = vadd.f32 %v4396_v46, %v1374_v34  ;;  %v1687_v53 = vpop.f32.mrf.mxu3 }
 0x29d   : > { %v1806_v28 = vmul.f32 %v4471_v51, %v1747_v25  ;;  %1793 = vmatmul.f32.gmra.mxu0 %v761_v57  ;;  %v1528_v29 = vadd.f32 %v1527_v13, %v1451_v16 }
 0x29f   : > { %v1830_v2 = vadd.f32 %v4479_v42, %v1806_v28  ;;  %v1605_v46 = vadd.f32 %v1604_v5, %v1528_v29 }
 0x2a1   : > { %v1850_v59 = vmax.f32 %v1830_v2, 0.0  ;;  %v1613_v4 = vpop.f32.mrf.mxu2  ;;  %v1682_v15 = vadd.f32 %v1681_v21, %v1605_v46  ;;  %v5131_v2 = vld [vmem:[#allocation35_spill] sm:$0xff]  ;;  %v5139_v46 = vld [vmem:[#allocation40_spill] sm:$0xff] }
 0x2a2   : > { %v1749_v23 = vpop.f32.mrf.mxu0 }
 0x2a3   : > { %1870 = vst [vmem:[#allocation3 + $0x19] sm:$0xff] %v1850_v59  ;;  %v1750_v61 = vadd.f32 %v1749_v23, %v1673_v36  ;;  %v1536_v58 = vpop.f32.mrf.mxu1  ;;  %v1690_v28 = vpop.f32.mrf.mxu3  ;;  %v5132_v23 = vld [vmem:[#allocation47_spill] sm:$0xff] }
 0x2a5   : > { %v1807_v57 = vmul.f32 %v4471_v51, %v1750_v61  ;;  %1796 = vmatmul.f32.gmra.mxu0 %v4463_v41  ;;  %v1223_v41 = vadd.f32 %v5125_v7, %v4152_v45  ;;  %v5128_v45 = vld [vmem:[#allocation25_spill] sm:$0xff] }
 0x2a6   : > { %v1226_v14 = vadd.f32 %v5129_v60, %v5128_v45  ;;  %v5138_v45 = vld [vmem:[#allocation52_spill] sm:$0xff] }
 0x2a7   : > { %v1831_v9 = vadd.f32 %v4479_v42, %v1807_v57  ;;  %v1300_v50 = vadd.f32 %v5126_v10, %v1223_v41 }
 0x2a8   : > { %v1303_v13 = vadd.f32 %v5130_v1, %v1226_v14 }
 0x2a9   : > { %v1851_v12 = vmax.f32 %v1831_v9, 0.0  ;;  %v1377_v19 = vadd.f32 %v5127_v43, %v1300_v50  ;;  %v1616_v24 = vpop.f32.mrf.mxu2 }
 0x2aa   : > { %v1752_v17 = vpop.f32.mrf.mxu0  ;;  %v1380_v36 = vadd.f32 %v5131_v2, %v1303_v13  ;;  %v5141_v13 = vld [vmem:[#allocation37_spill] sm:$0xff] }
 0x2ab   : > { %1871 = vst [vmem:[#allocation3 + $0x21] sm:$0xff] %v1851_v12  ;;  %v1753_v0 = vadd.f32 %v1752_v17, %v1676_v52  ;;  %v1454_v18 = vadd.f32 %v4398_v8, %v1377_v19  ;;  %v1539_v59 = vpop.f32.mrf.mxu1  ;;  %v1693_v48 = vpop.f32.mrf.mxu3  ;;  %v5133_v52 = vld [vmem:[#allocation36_spill] sm:$0xff] }
 0x2ac   : > { %v1457_v8 = vadd.f32 %v5132_v23, %v1380_v36  ;;  %v1460_v12 = vadd.f32 %v5134_v56, %v5133_v52  ;;  %v5142_v36 = vld [vmem:[#allocation41_spill] sm:$0xff]  ;;  %v5144_v23 = vld [vmem:[#allocation22_spill] sm:$0xff] }
 0x2ad   : > { %v1808_v63 = vmul.f32 %v4471_v51, %v1753_v0  ;;  %v1531_v40 = vadd.f32 %v1530_v39, %v1454_v18  ;;  %v5140_v18 = vld [vmem:[#allocation50_spill] sm:$0xff] }
 0x2ae   : > { %v1534_v30 = vadd.f32 %v1533_v11, %v1457_v8  ;;  %v1537_v7 = vadd.f32 %v1536_v58, %v1460_v12 }
 0x2af   : > { %v1832_v55 = vadd.f32 %v4479_v42, %v1808_v63  ;;  %v1608_v5 = vadd.f32 %v1607_v27, %v1531_v40  ;;  %v5135_v63 = vld [vmem:[#allocation38_spill] sm:$0xff] }
 0x2b0   : > { %v1611_v9 = vadd.f32 %v1610_v31, %v1534_v30  ;;  %v1614_v16 = vadd.f32 %v1613_v4, %v1537_v7  ;;  %v5148_v7 = vld [vmem:[#allocation31_spill] sm:$0xff] }
 0x2b1   : > { %v1852_v35 = vmax.f32 %v1832_v55, 0.0  ;;  %v1685_v38 = vadd.f32 %v1684_v33, %v1608_v5  ;;  %v1619_v62 = vpop.f32.mrf.mxu2  ;;  %v5136_v55 = vld [vmem:[#allocation49_spill] sm:$0xff]  ;;  %v5143_v5 = vld [vmem:[#allocation30_spill] sm:$0xff] }
 0x2b2   : > { %v1755_v20 = vpop.f32.mrf.mxu0  ;;  %v1688_v0 = vadd.f32 %v1687_v53, %v1611_v9  ;;  %v1463_v10 = vadd.f32 %v5136_v55, %v5135_v63  ;;  %v1241_v8 = vadd.f32 %v5144_v23, %v5143_v5  ;;  %v5158_v5 = vld [vmem:[#allocation55_spill] sm:$0xff] }
 0x2b3   : > { %1872 = vst [vmem:[#allocation3 + $0x31] sm:$0xff] %v1852_v35  ;;  %v1756_v22 = vadd.f32 %v1755_v20, %v1679_v37  ;;  %v1542_v17 = vpop.f32.mrf.mxu1  ;;  %v1696_v50 = vpop.f32.mrf.mxu3  ;;  %v1691_v35 = vadd.f32 %v1690_v28, %v1614_v16 }
 0x2b4   : > { %v1540_v20 = vadd.f32 %v1539_v59, %v1463_v10 }
 0x2b5   : > { %v1809_v54 = vmul.f32 %v4471_v51, %v1756_v22  ;;  %v5137_v22 = vld [vmem:[#allocation27_spill] sm:$0xff] }
 0x2b6   : > { %v1238_v60 = vadd.f32 %v5138_v45, %v5137_v22  ;;  %v1617_v14 = vadd.f32 %v1616_v24, %v1540_v20  ;;  %v5153_v45 = vld [vmem:[#allocation34_spill] sm:$0xff] }
 0x2b7   : > { %v1833_v25 = vadd.f32 %v4479_v42, %v1809_v54  ;;  %v1466_v54 = vadd.f32 %v5140_v18, %v5139_v46  ;;  %v5155_v46 = vld [vmem:[#allocation54_spill] sm:$0xff] }
 0x2b8   : > { %v1694_v40 = vadd.f32 %v1693_v48, %v1617_v14 }
 0x2b9   : > { %v1853_v49 = vmax.f32 %v1833_v25, 0.0  ;;  %v1622_v19 = vpop.f32.mrf.mxu2 }
 0x2ba   : > { %v1758_v32 = vpop.f32.mrf.mxu0 }
 0x2bb   : > { %1873 = vst [vmem:[#allocation3 + $0x39] sm:$0xff] %v1853_v49  ;;  %v1759_v26 = vadd.f32 %v1758_v32, %v1682_v15  ;;  %v1545_v29 = vpop.f32.mrf.mxu1  ;;  %v1699_v1 = vpop.f32.mrf.mxu3  ;;  %v1315_v15 = vadd.f32 %v5141_v13, %v1238_v60  ;;  %v1543_v49 = vadd.f32 %v1542_v17, %v1466_v54 }
 0x2bd   : > { %v1810_v47 = vmul.f32 %v4471_v51, %v1759_v26  ;;  %v1392_v26 = vadd.f32 %v5142_v36, %v1315_v15 }
 0x2bf   : > { %v1834_v61 = vadd.f32 %v4479_v42, %v1810_v47  ;;  %v1620_v47 = vadd.f32 %v1619_v62, %v1543_v49 }
 0x2c1   : > { %v1854_v21 = vmax.f32 %v1834_v61, 0.0  ;;  %v5145_v61 = vld [vmem:[#allocation51_spill] sm:$0xff]  ;;  %v1625_v30 = vpop.f32.mrf.mxu2  ;;  %v1697_v48 = vadd.f32 %v1696_v50, %v1620_v47 }
 0x2c2   : > { %v1761_v39 = vpop.f32.mrf.mxu0  ;;  %v1469_v24 = vadd.f32 %v5145_v61, %v1392_v26 }
 0x2c3   : > { %1874 = vst [vmem:[#allocation3 + $0x49] sm:$0xff] %v1854_v21  ;;  %v1762_v57 = vadd.f32 %v1761_v39, %v1685_v38  ;;  %v1548_v32 = vpop.f32.mrf.mxu1  ;;  %v5146_v39 = vld [vmem:[#allocation39_spill] sm:$0xff]  ;;  %v1702_v56 = vpop.f32.mrf.mxu3 }
 0x2c4   : > { %v1546_v9 = vadd.f32 %v1545_v29, %v1469_v24 }
 0x2c5   : > { %v1811_v27 = vmul.f32 %v4471_v51, %v1762_v57  ;;  %v1318_v57 = vadd.f32 %v5146_v39, %v1241_v8 }
 0x2c7   : > { %v1835_v34 = vadd.f32 %v4479_v42, %v1811_v27  ;;  %v5147_v27 = vld [vmem:[#allocation43_spill] sm:$0xff] }
 0x2c8   : > { %v1395_v17 = vadd.f32 %v5147_v27, %v1318_v57 }
 0x2c9   : > { %v1855_v41 = vmax.f32 %v1835_v34, 0.0  ;;  %v1628_v10 = vpop.f32.mrf.mxu2 }
 0x2ca   : > { %v1764_v33 = vpop.f32.mrf.mxu0 }
 0x2cb   : > { %1875 = vst [vmem:[#allocation3 + $0x51] sm:$0xff] %v1855_v41  ;;  %v1765_v11 = vadd.f32 %v1764_v33, %v1688_v0  ;;  %v1551_v0 = vpop.f32.mrf.mxu1  ;;  %v5149_v41 = vld [vmem:[#allocation23_spill] sm:$0xff]  ;;  %v1623_v33 = vadd.f32 %v1622_v19, %v1546_v9  ;;  %v1705_v22 = vpop.f32.mrf.mxu3  ;;  %v5154_v19 = vld [vmem:[#allocation24_spill] sm:$0xff] }
 0x2cc   : > { %v1244_v62 = vadd.f32 %v5149_v41, %v5148_v7  ;;  %v1247_v60 = vadd.f32 %v5154_v19, %v5153_v45 }
 0x2cd   : > { %v1812_v31 = vmul.f32 %v4471_v51, %v1765_v11  ;;  %v5150_v11 = vld [vmem:[#allocation53_spill] sm:$0xff] }
 0x2ce   : > { %v1472_v16 = vadd.f32 %v5150_v11, %v1395_v17 }
 0x2cf   : > { %v1836_v37 = vadd.f32 %v4479_v42, %v1812_v31  ;;  %v5151_v31 = vld [vmem:[#allocation42_spill] sm:$0xff] }
 0x2d0   : > { %v1321_v50 = vadd.f32 %v5151_v31, %v1244_v62  ;;  %v1549_v29 = vadd.f32 %v1548_v32, %v1472_v16 }
 0x2d1   : > { %v1856_v43 = vmax.f32 %v1836_v37, 0.0  ;;  %v1700_v37 = vadd.f32 %v1699_v1, %v1623_v33  ;;  %v5156_v1 = vld [vmem:[#allocation44_spill] sm:$0xff] }
 0x2d2   : > { %v1767_v53 = vpop.f32.mrf.mxu0  ;;  %v1626_v14 = vadd.f32 %v1625_v30, %v1549_v29  ;;  %v1324_v13 = vadd.f32 %v5156_v1, %v1247_v60 }
 0x2d3   : > { %1876 = vst [vmem:[#allocation3 + $0x61] sm:$0xff] %v1856_v43  ;;  %v1768_v58 = vadd.f32 %v1767_v53, %v1691_v35  ;;  %v5152_v43 = vld [vmem:[#allocation45_spill] sm:$0xff]  ;;  %v1708_v47 = vpop.f32.mrf.mxu3 }
 0x2d4   : > { %v1398_v53 = vadd.f32 %v5152_v43, %v1321_v50  ;;  %v1703_v15 = vadd.f32 %v1702_v56, %v1626_v14 }
 0x2d5   : > { %v1813_v4 = vmul.f32 %v4471_v51, %v1768_v58 }
 0x2d6   : > { %v1475_v18 = vadd.f32 %v5155_v46, %v1398_v53 }
 0x2d7   : > { %v1837_v25 = vadd.f32 %v4479_v42, %v1813_v4  ;;  %v1554_v4 = vpop.f32.mrf.mxu1 }
 0x2d9   : > { %v1857_v28 = vmax.f32 %v1837_v25, 0.0 }
 0x2da   : > { %v1770_v2 = vpop.f32.mrf.mxu0 }
 0x2db   : > { %1877 = vst [vmem:[#allocation3 + $0x69] sm:$0xff] %v1857_v28  ;;  %v1771_v59 = vadd.f32 %v1770_v2, %v1694_v40  ;;  %v1552_v40 = vadd.f32 %v1551_v0, %v1475_v18  ;;  %v1631_v28 = vpop.f32.mrf.mxu2  ;;  %v5157_v2 = vld [vmem:[#allocation46_spill] sm:$0xff] }
 0x2dc   : > { %v1401_v36 = vadd.f32 %v5157_v2, %v1324_v13 }
 0x2dd   : > { %v1814_v38 = vmul.f32 %v4471_v51, %v1771_v59  ;;  %v1629_v59 = vadd.f32 %v1628_v10, %v1552_v40 }
 0x2de   : > { %v1478_v23 = vadd.f32 %v5158_v5, %v1401_v36 }
 0x2df   : > { %v1838_v21 = vadd.f32 %v4479_v42, %v1814_v38  ;;  %v1557_v24 = vpop.f32.mrf.mxu1  ;;  %v1706_v38 = vadd.f32 %v1705_v22, %v1629_v59 }
 0x2e0   : > { %v1555_v30 = vadd.f32 %v1554_v4, %v1478_v23  ;;  %v1558_v17 = vadd.f32 %v1557_v24, %v4428_v44 }
 0x2e1   : > { %v1858_v52 = vmax.f32 %v1838_v21, 0.0 }
 0x2e2   : > { %v1773_v12 = vpop.f32.mrf.mxu0  ;;  %v1632_v9 = vadd.f32 %v1631_v28, %v1555_v30 }
 0x2e3   : > { %1878 = vst [vmem:[#allocation3 + $0x79] sm:$0xff] %v1858_v52  ;;  %v1774_v34 = vadd.f32 %v1773_v12, %v1697_v48  ;;  %v1634_v48 = vpop.f32.mrf.mxu2  ;;  %v1711_v12 = vpop.f32.mrf.mxu3 }
 0x2e4   : > { %v1709_v27 = vadd.f32 %v1708_v47, %v1632_v9  ;;  %v1635_v62 = vadd.f32 %v1634_v48, %v1558_v17 }
 0x2e5   : > { %v1815_v63 = vmul.f32 %v4471_v51, %v1774_v34 }
 0x2e7   : > { %v1839_v55 = vadd.f32 %v4479_v42, %v1815_v63  ;;  %v1560_v0 = vpop.f32.mrf.mxu1  ;;  %v1712_v63 = vadd.f32 %v1711_v12, %v1635_v62 }
 0x2e9   : > { %v1859_v35 = vmax.f32 %v1839_v55, 0.0  ;;  %v5159_v55 = vld [vmem:[#allocation56_spill] sm:$0xff] }
 0x2ea   : > { %v1776_v20 = vpop.f32.mrf.mxu0  ;;  %v1561_v10 = vadd.f32 %v1560_v0, %v5159_v55 }
 0x2eb   : > { %1879 = vst [vmem:[#allocation3 + $0x81] sm:$0xff] %v1859_v35  ;;  %v1777_v58 = vadd.f32 %v1776_v20, %v1700_v37  ;;  %v1637_v11 = vpop.f32.mrf.mxu2  ;;  %v1714_v50 = vpop.f32.mrf.mxu3 }
 0x2ec   : > { %v1638_v35 = vadd.f32 %v1637_v11, %v1561_v10 }
 0x2ed   : > { %v1816_v54 = vmul.f32 %v4471_v51, %v1777_v58 }
 0x2ee   : > { %v1715_v58 = vadd.f32 %v1714_v50, %v1638_v35 }
 0x2ef   : > { %v1840_v25 = vadd.f32 %v4479_v42, %v1816_v54  ;;  %v1563_v44 = vpop.f32.mrf.mxu1 }
 0x2f0   : > { %v1564_v22 = vadd.f32 %v1563_v44, %v4442_v6 }
 0x2f1   : > { %v1860_v49 = vmax.f32 %v1840_v25, 0.0 }
 0x2f2   : > { %v1779_v32 = vpop.f32.mrf.mxu0 }
 0x2f3   : > { %1880 = vst [vmem:[#allocation3 + $0x91] sm:$0xff] %v1860_v49  ;;  %v1780_v26 = vadd.f32 %v1779_v32, %v1703_v15  ;;  %v1640_v53 = vpop.f32.mrf.mxu2  ;;  %v1717_v14 = vpop.f32.mrf.mxu3 }
 0x2f4   : > { %v1641_v46 = vadd.f32 %v1640_v53, %v1564_v22 }
 0x2f5   : > { %v1817_v8 = vmul.f32 %v4471_v51, %v1780_v26 }
 0x2f6   : > { %v1718_v25 = vadd.f32 %v1717_v14, %v1641_v46 }
 0x2f7   : > { %v1841_v61 = vadd.f32 %v4479_v42, %v1817_v8  ;;  %v1566_v54 = vpop.f32.mrf.mxu1 }
 0x2f8   : > { %v1567_v1 = vadd.f32 %v1566_v54, %v4455_v3 }
 0x2f9   : > { %v1861_v21 = vmax.f32 %v1841_v61, 0.0 }
 0x2fa   : > { %v1782_v39 = vpop.f32.mrf.mxu0 }
 0x2fb   : > { %1881 = vst [vmem:[#allocation3 + $0x99] sm:$0xff] %v1861_v21  ;;  %v1783_v57 = vadd.f32 %v1782_v39, %v1706_v38  ;;  %v1643_v15 = vpop.f32.mrf.mxu2  ;;  %v1720_v32 = vpop.f32.mrf.mxu3 }
 0x2fc   : > { %v1644_v6 = vadd.f32 %v1643_v15, %v1567_v1 }
 0x2fd   : > { %v1818_v52 = vmul.f32 %v4471_v51, %v1783_v57 }
 0x2fe   : > { %v1721_v36 = vadd.f32 %v1720_v32, %v1644_v6 }
 0x2ff   : > { %v1842_v56 = vadd.f32 %v4479_v42, %v1818_v52 }
 0x301   : > { %v1862_v34 = vmax.f32 %v1842_v56, 0.0 }
 0x302   : > { %v1785_v7 = vpop.f32.mrf.mxu0 }
 0x303   : > { %1882 = vst [vmem:[#allocation3 + $0xa9] sm:$0xff] %v1862_v34  ;;  %v1786_v41 = vadd.f32 %v1785_v7, %v1709_v27 }
 0x305   : > { %v1819_v33 = vmul.f32 %v4471_v51, %v1786_v41 }
 0x307   : > { %v1843_v16 = vadd.f32 %v4479_v42, %v1819_v33 }
 0x309   : > { %v1863_v31 = vmax.f32 %v1843_v16, 0.0 }
 0x30a   : > { %v1788_v37 = vpop.f32.mrf.mxu0 }
 0x30b   : > { %1883 = vst [vmem:[#allocation3 + $0xb1] sm:$0xff] %v1863_v31  ;;  %v1789_v29 = vadd.f32 %v1788_v37, %v1712_v63 }
 0x30d   : > { %v1820_v20 = vmul.f32 %v4471_v51, %v1789_v29 }
 0x30f   : > { %v1844_v43 = vadd.f32 %v4479_v42, %v1820_v20 }
 0x311   : > { %v1864_v45 = vmax.f32 %v1844_v43, 0.0 }
 0x312   : > { %v1791_v19 = vpop.f32.mrf.mxu0 }
 0x313   : > { %1884 = vst [vmem:[#allocation3 + $0xc1] sm:$0xff] %v1864_v45  ;;  %v1792_v60 = vadd.f32 %v1791_v19, %v1715_v58 }
 0x315   : > { %v1821_v18 = vmul.f32 %v4471_v51, %v1792_v60 }
 0x317   : > { %v1845_v4 = vadd.f32 %v4479_v42, %v1821_v18 }
 0x319   : > { %v1865_v13 = vmax.f32 %v1845_v4, 0.0 }
 0x31a   : > { %v1794_v40 = vpop.f32.mrf.mxu0 }
 0x31b   : > { %1885 = vst [vmem:[#allocation3 + $0xc9] sm:$0xff] %v1865_v13  ;;  %v1795_v49 = vadd.f32 %v1794_v40, %v1718_v25 }
 0x31d   : > { %v1822_v28 = vmul.f32 %v4471_v51, %v1795_v49 }
 0x31f   : > { %v1846_v2 = vadd.f32 %v4479_v42, %v1822_v28 }
 0x321   : > { %v1866_v26 = vmax.f32 %v1846_v2, 0.0 }
 0x322   : > { %v1797_v59 = vpop.f32.mrf.mxu0 }
 0x323   : > { %1886 = vst [vmem:[#allocation3 + $0xd9] sm:$0xff] %v1866_v26  ;;  %v1798_v5 = vadd.f32 %v1797_v59, %v1721_v36 }
 0x325   : > { %v1823_v23 = vmul.f32 %v4471_v51, %v1798_v5 }
 0x327   : > { %v1847_v3 = vadd.f32 %v4479_v42, %v1823_v23  ;;  %1891 = sbr.rel (%p3331_p7) target bundleno = 816 (0x330), region = 71 }
 0x329   : > { %v1867_v8 = vmax.f32 %v1847_v3, 0.0 }
 0x32b   : > { %1887 = vst [vmem:[#allocation3 + $0xe1] sm:$0xff] %v1867_v8 }
 0x32c   : > { %v3773_v47 = vmov 0.0  }
 0x32d   : > { %1892 = vst [vmem:[#allocation3] sm:$0xff] %v3773_v47 }
 0x32e   : > { %1893 = vst [vmem:[#allocation3 + $0x8] sm:$0xff] %v3773_v47 }
 0x32f   : > { %1894 = vst [vmem:[#allocation3 + $0x10] sm:$0x3] %v3773_v47 }
 0x330 PF: > { %p3332_p8 = scmp.ne.s32.totalorder %s3746_s30, 1 }
 0x332   : > { %1898 = sbr.rel (%p3332_p8) target bundleno = 827 (0x33b), region = 75 }
 0x337   : > { %v3774_v61 = vmov 0.0  }
 0x338   : > { %1900 = vst [vmem:[#allocation3 + $0xd8] sm:$0xff] %v3774_v61 }
 0x339   : > { %1901 = vst [vmem:[#allocation3 + $0xe0] sm:$0xff] %v3774_v61 }
 0x33a   : > { %1902 = vst [vmem:[#allocation3 + $0xe8] sm:$0x3] %v3774_v61 }
 0x33b PF: > { %v2352_v51 = vld [vmem:[#allocation10 + $0x78] sm:$0xff]  ;;  %v2351_v38 = vld [vmem:[#allocation10 + $0x70] sm:$0xff]  ;;  %v2350_v39 = vld [vmem:[#allocation10 + $0x68] sm:$0xff]  ;;  %s3344_s8 = sshll.u32 %s3746_s30, 7  ;;  %s5160_s18 = sld [smem:[#allocation59_spill]] }
 0x33c   : > { %v2368_v42 = vld [vmem:[#allocation10 + $0xf8] sm:$0xff]  ;;  %2481 = vmatpush.msra.mxu1 %v2352_v51  ;;  %v2367_v30 = vld [vmem:[#allocation10 + $0xf0] sm:$0xff]  ;;  %v2366_v57 = vld [vmem:[#allocation10 + $0xe8] sm:$0xff]  ;;  %s4910_s20 = scalar_lea.vmem %s304_s7, %s3344_s8 [#allocation5]  ;;  %s5161_s23 = sld [smem:[#allocation60_spill]] }
 0x33d   : > { %v2384_v24 = vld [vmem:[#allocation10 + $0x178] sm:$0xff]  ;;  %2546 = vmatpush.msra.mxu2 %v2368_v42  ;;  %v2383_v21 = vld [vmem:[#allocation10 + $0x170] sm:$0xff]  ;;  %v2382_v48 = vld [vmem:[#allocation10 + $0x168] sm:$0xff]  ;;  %s5162_s16 = sld [smem:[#allocation16_spill]]  ;;  %s3345_s7 = sshll.u32 %s3746_s30, 4 }
 0x33e   : > { %2611 = vmatpush.msrb.mxu3 %v2384_v24  ;;  %2482 = vmatpush.msra.mxu1 %v2351_v38  ;;  %v2349_v9 = vld [vmem:[#allocation10 + $0x60] sm:$0xff]  ;;  %v2348_v12 = vld [vmem:[#allocation10 + $0x58] sm:$0xff]  ;;  %v2347_v34 = vld [vmem:[#allocation10 + $0x50] sm:$0xff]  ;;  %s5163_s2 = sld [smem:[#allocation61_spill]]  ;;  %s3188_s8 = sshll.u32 %s3977_s14, 4  ;;  %s3189_s8 = int_to_ptr.vmem [resolvable:$true] %s3188_s8 }
 0x33f   : > { %2547 = vmatpush.msra.mxu2 %v2367_v30  ;;  %v2365_v52 = vld [vmem:[#allocation10 + $0xe0] sm:$0xff]  ;;  %v2364_v27 = vld [vmem:[#allocation10 + $0xd8] sm:$0xff]  ;;  %v2363_v0 = vld [vmem:[#allocation10 + $0xd0] sm:$0xff]  ;;  %s3173_s15 = scalar_lea.sflag [#allocation7], %s343_s5 }
 0x340   : > { %2612 = vmatpush.msrb.mxu3 %v2383_v21  ;;  %2483 = vmatpush.msra.mxu1 %v2350_v39  ;;  %v2381_v56 = vld [vmem:[#allocation10 + $0x160] sm:$0xff]  ;;  %v2380_v17 = vld [vmem:[#allocation10 + $0x158] sm:$0xff]  ;;  %v2379_v7 = vld [vmem:[#allocation10 + $0x150] sm:$0xff] }
 0x341   : > { %2548 = vmatpush.msra.mxu2 %v2366_v57  ;;  %v2346_v41 = vld [vmem:[#allocation10 + $0x48] sm:$0xff]  ;;  %v2345_v11 = vld [vmem:[#allocation10 + $0x40] sm:$0xff]  ;;  %v2344_v55 = vld [vmem:[#allocation10 + $0x38] sm:$0xff] }
 0x342   : > { %2613 = vmatpush.msrb.mxu3 %v2382_v48  ;;  %2484 = vmatpush.msra.mxu1 %v2349_v9  ;;  %v2362_v62 = vld [vmem:[#allocation10 + $0xc8] sm:$0xff]  ;;  %v2361_v16 = vld [vmem:[#allocation10 + $0xc0] sm:$0xff]  ;;  %v2360_v10 = vld [vmem:[#allocation10 + $0xb8] sm:$0xff] }
 0x343   : > { %2549 = vmatpush.msra.mxu2 %v2365_v52  ;;  %v2378_v33 = vld [vmem:[#allocation10 + $0x148] sm:$0xff]  ;;  %v2377_v63 = vld [vmem:[#allocation10 + $0x140] sm:$0xff]  ;;  %v2376_v31 = vld [vmem:[#allocation10 + $0x138] sm:$0xff]  ;;  %s3337_s22 = sshll.u32 %s5162_s16, 5 }
 0x344   : > { %2614 = vmatpush.msrb.mxu3 %v2381_v56  ;;  %2485 = vmatpush.msra.mxu1 %v2348_v12  ;;  %v2343_v50 = vld [vmem:[#allocation10 + $0x30] sm:$0xff]  ;;  %v2342_v20 = vld [vmem:[#allocation10 + $0x28] sm:$0xff]  ;;  %v2341_v22 = vld [vmem:[#allocation10 + $0x20] sm:$0xff]  ;;  %s3185_s1 = sadd.s32 %s3345_s7, %s3337_s22 }
 0x345   : > { %2550 = vmatpush.msra.mxu2 %v2364_v27  ;;  %v2359_v37 = vld [vmem:[#allocation10 + $0xb0] sm:$0xff]  ;;  %v2358_v43 = vld [vmem:[#allocation10 + $0xa8] sm:$0xff]  ;;  %v4593_v45 = vld [vmem:[#allocation3 + $0x8] sm:$0xff]  ;;  %s3338_s30 = sshll.u32 %s3185_s1, 3 }
 0x346   : > { %2615 = vmatpush.msrb.mxu3 %v2380_v17  ;;  %2486 = vmatpush.msra.mxu1 %v2347_v34  ;;  %v1903_v29 = vld [vmem:[#allocation3] sm:$0xff]  ;;  %v2374_v58 = vld [vmem:[#allocation10 + $0x128] sm:$0xff]  ;;  %v2357_v19 = vld [vmem:[#allocation10 + $0xa0] sm:$0xff]  ;;  %s3187_s9 = scalar_lea.hbm %s5163_s2, %s3338_s30 }
 0x347   : > { %2551 = vmatpush.msra.mxu2 %v2363_v0  ;;  %v2375_v44 = vld [vmem:[#allocation10 + $0x130] sm:$0xff]  ;;  %v2373_v60 = vld [vmem:[#allocation10 + $0x120] sm:$0xff]  ;;  %v2340_v18 = vld [vmem:[#allocation10 + $0x18] sm:$0xff]  ;;  %s3190_s17 = sshll.u32 %s3187_s9, 4  ;;  %s3191_s17 = int_to_ptr.hbm [resolvable:$true] %s3190_s17 }
 0x348   : > { %2616 = vmatpush.msrb.mxu3 %v2379_v7  ;;  %2487 = vmatpush.msra.mxu1 %v2346_v41  ;;  %v1935_v35 = vld [vmem:[#allocation3 + $0x1] sm:$0xff]  ;;  %v1936_v14 = vld [vmem:[#allocation3 + $0x9] sm:$0xff]  ;;  %v4595_v4 = vld [vmem:[#allocation3 + $0x18] sm:$0xff] }
 0x349   : > { %2552 = vmatpush.msra.mxu2 %v2362_v62  ;;  %v1967_v53 = vld [vmem:[#allocation3 + $0x2] sm:$0xff]  ;;  %v1968_v46 = vld [vmem:[#allocation3 + $0xa] sm:$0xff]  ;;  %v4597_v1 = vld [vmem:[#allocation3 + $0x19] sm:$0xff] }
 0x34a   : > { %2617 = vmatpush.msrb.mxu3 %v2378_v33  ;;  %2488 = vmatpush.msra.mxu1 %v2345_v11  ;;  %v2356_v54 = vld [vmem:[#allocation10 + $0x98] sm:$0xff]  ;;  %v2339_v13 = vld [vmem:[#allocation10 + $0x10] sm:$0xff]  ;;  %v2338_v28 = vld [vmem:[#allocation10 + $0x8] sm:$0xff] }
 0x34b   : > { %2553 = vmatpush.msra.mxu2 %v2361_v16  ;;  %v2372_v25 = vld [vmem:[#allocation10 + $0x118] sm:$0xff]  ;;  %v2355_v15 = vld [vmem:[#allocation10 + $0x90] sm:$0xff]  ;;  %v2354_v32 = vld [vmem:[#allocation10 + $0x88] sm:$0xff] }
 0x34c   : > { %2618 = vmatpush.msrb.mxu3 %v2377_v63  ;;  %2489 = vmatpush.msra.mxu1 %v2344_v55  ;;  %v4599_v40 = vld [vmem:[#allocation3 + $0x1a] sm:$0xff]  ;;  %v4605_v26 = vld [vmem:[#allocation3 + $0x22] sm:$0xff]  ;;  %v2337_v59 = vld [vmem:[#allocation10] sm:$0xff] }
 0x34d   : > { %2554 = vmatpush.msra.mxu2 %v2360_v10  ;;  %v2371_v49 = vld [vmem:[#allocation10 + $0x110] sm:$0xff]  ;;  %v2370_v36 = vld [vmem:[#allocation10 + $0x108] sm:$0xff]  ;;  %v2353_v5 = vld [vmem:[#allocation10 + $0x80] sm:$0xff] }
 0x34e   : > { %2619 = vmatpush.msrb.mxu3 %v2376_v31  ;;  %2490 = vmatpush.msra.mxu1 %v2343_v50  ;;  %v4601_v6 = vld [vmem:[#allocation3 + $0x20] sm:$0xff]  ;;  %v4607_v23 = vld [vmem:[#allocation3 + $0x30] sm:$0xff]  ;;  %v2416_v8 = vld [vmem:[#allocation10 + $0x278] sm:$0xff] }
 0x34f   : > { %2555 = vmatpush.msra.mxu2 %v2359_v37  ;;  %v4603_v2 = vld [vmem:[#allocation3 + $0x21] sm:$0xff]  ;;  %v2369_v3 = vld [vmem:[#allocation10 + $0x100] sm:$0xff]  ;;  %v4613_v38 = vld [vmem:[#allocation3 + $0x38] sm:$0xff] }
 0x350   : > { %2620 = vmatpush.msrb.mxu3 %v2375_v44  ;;  %2491 = vmatpush.msra.mxu1 %v2342_v20  ;;  %v2400_v47 = vld [vmem:[#allocation10 + $0x1f8] sm:$0xff]  ;;  %v4609_v61 = vld [vmem:[#allocation3 + $0x31] sm:$0xff]  ;;  %v2415_v51 = vld [vmem:[#allocation10 + $0x270] sm:$0xff] }
 0x351   : > { %2556 = vmatpush.msra.mxu2 %v2358_v43  ;;  %v2399_v42 = vld [vmem:[#allocation10 + $0x1f0] sm:$0xff]  ;;  %v4611_v24 = vld [vmem:[#allocation3 + $0x32] sm:$0xff]  ;;  %v2412_v48 = vld [vmem:[#allocation10 + $0x258] sm:$0xff] }
 0x352   : > { %2621 = vmatpush.msrb.mxu3 %v2374_v58  ;;  %2492 = vmatpush.msra.mxu1 %v2341_v22  ;;  %v2414_v30 = vld [vmem:[#allocation10 + $0x268] sm:$0xff]  ;;  %v2413_v39 = vld [vmem:[#allocation10 + $0x260] sm:$0xff]  ;;  %v2396_v52 = vld [vmem:[#allocation10 + $0x1d8] sm:$0xff] }
 0x353   : > { %2557 = vmatpush.msra.mxu2 %v2357_v19  ;;  %v2398_v21 = vld [vmem:[#allocation10 + $0x1e8] sm:$0xff]  ;;  %v2397_v57 = vld [vmem:[#allocation10 + $0x1e0] sm:$0xff]  ;;  %v2411_v12 = vld [vmem:[#allocation10 + $0x250] sm:$0xff] }
 0x354   : > { %2622 = vmatpush.msrb.mxu3 %v2373_v60  ;;  %2493 = vmatpush.msra.mxu1 %v2340_v18  ;;  %v4616_v9 = vld [vmem:[#allocation3 + $0x39] sm:$0xff]  ;;  %v4620_v27 = vld [vmem:[#allocation3 + $0x48] sm:$0xff]  ;;  %v4629_v62 = vld [vmem:[#allocation3 + $0x50] sm:$0xff] }
 0x355   : > { %2558 = vmatpush.msra.mxu2 %v2356_v54  ;;  %v4618_v56 = vld [vmem:[#allocation3 + $0x3a] sm:$0xff]  ;;  %v4623_v34 = vld [vmem:[#allocation3 + $0x49] sm:$0xff]  ;;  %v4632_v33 = vld [vmem:[#allocation3 + $0x51] sm:$0xff] }
 0x356   : > { %2623 = vmatpush.msrb.mxu3 %v2372_v25  ;;  %2494 = vmatpush.msra.mxu1 %v2339_v13  ;;  %v2395_v17 = vld [vmem:[#allocation10 + $0x1d0] sm:$0xff]  ;;  %v4627_v0 = vld [vmem:[#allocation3 + $0x4a] sm:$0xff]  ;;  %v2410_v7 = vld [vmem:[#allocation10 + $0x248] sm:$0xff] }
 0x357   : > { %2559 = vmatpush.msra.mxu2 %v2355_v15  ;;  %v2394_v41 = vld [vmem:[#allocation10 + $0x1c8] sm:$0xff]  ;;  %v2409_v16 = vld [vmem:[#allocation10 + $0x240] sm:$0xff]  ;;  %v4638_v55 = vld [vmem:[#allocation3 + $0x60] sm:$0xff] }
 0x358   : > { %2624 = vmatpush.msrb.mxu3 %v2371_v49  ;;  %2495 = vmatpush.msra.mxu1 %v2338_v28  ;;  %v4636_v11 = vld [vmem:[#allocation3 + $0x52] sm:$0xff]  ;;  %v4641_v10 = vld [vmem:[#allocation3 + $0x61] sm:$0xff]  ;;  %v4650_v44 = vld [vmem:[#allocation3 + $0x69] sm:$0xff] }
 0x359   : > { %2560 = vmatpush.msra.mxu2 %v2354_v32  ;;  %v2393_v63 = vld [vmem:[#allocation10 + $0x1c0] sm:$0xff]  ;;  %v4645_v31 = vld [vmem:[#allocation3 + $0x62] sm:$0xff]  ;;  %v4659_v58 = vld [vmem:[#allocation3 + $0x79] sm:$0xff] }
 0x35a   : > { %2625 = vmatpush.msrb.mxu3 %v2370_v36  ;;  %2496 = vmatpush.msra.mxu1 %v2337_v59  ;;  %v2408_v50 = vld [vmem:[#allocation10 + $0x238] sm:$0xff]  ;;  %v2407_v20 = vld [vmem:[#allocation10 + $0x230] sm:$0xff]  ;;  %v2390_v19 = vld [vmem:[#allocation10 + $0x1a8] sm:$0xff] }
 0x35b   : > { %2561 = vmatpush.msra.mxu2 %v2353_v5  ;;  %2497 = vmatmul.f32.vlgmr.msra.gmra.mxu1 %v1903_v29  ;;  %v2392_v37 = vld [vmem:[#allocation10 + $0x1b8] sm:$0xff]  ;;  %v2391_v43 = vld [vmem:[#allocation10 + $0x1b0] sm:$0xff]  ;;  %v2405_v18 = vld [vmem:[#allocation10 + $0x220] sm:$0xff] }
 0x35c   : > { %2626 = vmatpush.msrb.mxu3 %v2369_v3  ;;  %2562 = vmatmul.f32.vlgmr.msra.gmra.mxu2 %v1935_v35  ;;  %v4647_v29 = vld [vmem:[#allocation3 + $0x68] sm:$0xff]  ;;  %v4663_v22 = vld [vmem:[#allocation3 + $0x7a] sm:$0xff]  ;;  %v2389_v54 = vld [vmem:[#allocation10 + $0x1a0] sm:$0xff] }
 0x35d   : > { %2627 = vmatmul.f32.vlgmr.msrb.gmra.mxu3 %v1967_v53  ;;  %2741 = vmatpush.msrb.mxu2 %v2416_v8  ;;  %v4654_v35 = vld [vmem:[#allocation3 + $0x6a] sm:$0xff]  ;;  %v4656_v53 = vld [vmem:[#allocation3 + $0x78] sm:$0xff]  ;;  %v4665_v60 = vld [vmem:[#allocation3 + $0x80] sm:$0xff] }
 0x35e   : > { %2676 = vmatpush.msrb.mxu1 %v2400_v47  ;;  %v4674_v25 = vld [vmem:[#allocation3 + $0x90] sm:$0xff]  ;;  %v2404_v49 = vld [vmem:[#allocation10 + $0x218] sm:$0xff]  ;;  %v2431_v32 = vld [vmem:[#allocation10 + $0x2f0] sm:$0xff] }
 0x35f   : > { %2742 = vmatpush.msrb.mxu2 %v2415_v51  ;;  %v4677_v13 = vld [vmem:[#allocation3 + $0x91] sm:$0xff]  ;;  %v2432_v28 = vld [vmem:[#allocation10 + $0x2f8] sm:$0xff]  ;;  %v4686_v8 = vld [vmem:[#allocation3 + $0x99] sm:$0xff] }
 0x360   : > { %2677 = vmatpush.msrb.mxu1 %v2399_v42  ;;  %v4679_v15 = vld [vmem:[#allocation3 + $0x92] sm:$0xff]  ;;  %2806 = vmatpush.msra.mxu3 %v2432_v28  ;;  %v2388_v36 = vld [vmem:[#allocation10 + $0x198] sm:$0xff]  ;;  %v4688_v47 = vld [vmem:[#allocation3 + $0x9a] sm:$0xff] }
 0x361   : > { %2743 = vmatpush.msrb.mxu2 %v2414_v30  ;;  %v2430_v59 = vld [vmem:[#allocation10 + $0x2e8] sm:$0xff]  ;;  %v2429_v3 = vld [vmem:[#allocation10 + $0x2e0] sm:$0xff]  ;;  %v2403_v51 = vld [vmem:[#allocation10 + $0x210] sm:$0xff] }
 0x362   : > { %2678 = vmatpush.msrb.mxu1 %v2398_v21  ;;  %v4683_v5 = vld [vmem:[#allocation3 + $0x98] sm:$0xff]  ;;  %2807 = vmatpush.msra.mxu3 %v2431_v32  ;;  %v2428_v42 = vld [vmem:[#allocation10 + $0x2d8] sm:$0xff]  ;;  %v2427_v30 = vld [vmem:[#allocation10 + $0x2d0] sm:$0xff] }
 0x363   : > { %2500 = vmatmul.f32.gmra.mxu1 %v4593_v45  ;;  %2744 = vmatpush.msrb.mxu2 %v2413_v39  ;;  %v2406_v45 = vld [vmem:[#allocation10 + $0x228] sm:$0xff]  ;;  %v4692_v21 = vld [vmem:[#allocation10 + $0x378] sm:$0xff]  ;;  %v2387_v39 = vld [vmem:[#allocation10 + $0x190] sm:$0xff] }
 0x364   : > { %2565 = vmatmul.f32.gmra.mxu2 %v1936_v14  ;;  %2679 = vmatpush.msrb.mxu1 %v2397_v57  ;;  %v4668_v14 = vld [vmem:[#allocation3 + $0x81] sm:$0xff]  ;;  %v2426_v57 = vld [vmem:[#allocation10 + $0x2c8] sm:$0xff] }
 0x365   : > { %2630 = vmatmul.f32.gmra.mxu3 %v1968_v46  ;;  %2745 = vmatpush.msrb.mxu2 %v2412_v48  ;;  %v4672_v46 = vld [vmem:[#allocation3 + $0x82] sm:$0xff]  ;;  %v4721_v28 = vld [vmem:[#allocation3 + $0xb1] sm:$0xff] }
 0x366   : > { %2680 = vmatpush.msrb.mxu1 %v2396_v52  ;;  %2808 = vmatpush.msra.mxu3 %v2430_v59  ;;  %v4695_v48 = vld [vmem:[#allocation10 + $0x370] sm:$0xff]  ;;  %v4697_v52 = vld [vmem:[#allocation10 + $0x368] sm:$0xff]  ;;  %v2420_v59 = vld [vmem:[#allocation10 + $0x298] sm:$0xff] }
 0x367   : > { %2746 = vmatpush.msrb.mxu2 %v2411_v12  ;;  %2871 = vmatpush.msra.mxu0 %v4692_v21  ;;  %v4699_v12 = vld [vmem:[#allocation3 + $0xa8] sm:$0xff]  ;;  %v4723_v32 = vld [vmem:[#allocation3 + $0xb2] sm:$0xff] }
 0x368   : > { %2681 = vmatpush.msrb.mxu1 %v2395_v17  ;;  %2809 = vmatpush.msra.mxu3 %v2429_v3  ;;  %v2425_v17 = vld [vmem:[#allocation10 + $0x2c0] sm:$0xff] }
 0x369   : > { %2747 = vmatpush.msrb.mxu2 %v2410_v7  ;;  %2872 = vmatpush.msra.mxu0 %v4695_v48  ;;  %v4704_v7 = vld [vmem:[#allocation3 + $0xa9] sm:$0xff] }
 0x36a   : > { %2682 = vmatpush.msrb.mxu1 %v2394_v41  ;;  %2810 = vmatpush.msra.mxu3 %v2428_v42  ;;  %v4706_v41 = vld [vmem:[#allocation3 + $0xaa] sm:$0xff] }
 0x36b   : > { %2503 = vmatmul.f32.gmra.mxu1 %v4595_v4  ;;  %2748 = vmatpush.msrb.mxu2 %v2409_v16  ;;  %v2402_v16 = vld [vmem:[#allocation10 + $0x208] sm:$0xff]  ;;  %v2441_v3 = vld [vmem:[#allocation10 + $0x340] sm:$0xff] }
 0x36c   : > { %2568 = vmatmul.f32.gmra.mxu2 %v4597_v1  ;;  %2683 = vmatpush.msrb.mxu1 %v2393_v63  ;;  %v2424_v63 = vld [vmem:[#allocation10 + $0x2b8] sm:$0xff]  ;;  %v2385_v42 = vld [vmem:[#allocation10 + $0x180] sm:$0xff] }
 0x36d   : > { %2633 = vmatmul.f32.gmra.mxu3 %v4599_v40  ;;  %2749 = vmatpush.msrb.mxu2 %v2408_v50  ;;  %v4710_v50 = vld [vmem:[#allocation10 + $0x360] sm:$0xff] }
 0x36e   : > { %2684 = vmatpush.msrb.mxu1 %v2392_v37  ;;  %2811 = vmatpush.msra.mxu3 %v2427_v30  ;;  %v2423_v37 = vld [vmem:[#allocation10 + $0x2b0] sm:$0xff]  ;;  %v2440_v30 = vld [vmem:[#allocation10 + $0x338] sm:$0xff] }
 0x36f   : > { %2750 = vmatpush.msrb.mxu2 %v2407_v20  ;;  %2873 = vmatpush.msra.mxu0 %v4697_v52  ;;  %v4712_v20 = vld [vmem:[#allocation10 + $0x358] sm:$0xff] }
 0x370   : > { %2685 = vmatpush.msrb.mxu1 %v2391_v43  ;;  %2812 = vmatpush.msra.mxu3 %v2426_v57  ;;  %v2386_v43 = vld [vmem:[#allocation10 + $0x188] sm:$0xff]  ;;  %v2439_v57 = vld [vmem:[#allocation10 + $0x330] sm:$0xff] }
 0x371   : > { %2751 = vmatpush.msrb.mxu2 %v2406_v45  ;;  %2874 = vmatpush.msra.mxu0 %v4710_v50  ;;  %v2422_v45 = vld [vmem:[#allocation10 + $0x2a8] sm:$0xff] }
 0x372   : > { %2686 = vmatpush.msrb.mxu1 %v2390_v19  ;;  %2813 = vmatpush.msra.mxu3 %v2425_v17  ;;  %v2443_v19 = vld [vmem:[#allocation10 + $0x350] sm:$0xff]  ;;  %v2417_v17 = vld [vmem:[#allocation10 + $0x280] sm:$0xff] }
 0x373   : > { %2506 = vmatmul.f32.gmra.mxu1 %v4601_v6  ;;  %2752 = vmatpush.msrb.mxu2 %v2405_v18  ;;  %v4715_v18 = vld [vmem:[#allocation3 + $0xb0] sm:$0xff] }
 0x374   : > { %2571 = vmatmul.f32.gmra.mxu2 %v4603_v2  ;;  %2687 = vmatpush.msrb.mxu1 %v2389_v54  ;;  %v2421_v54 = vld [vmem:[#allocation10 + $0x2a0] sm:$0xff] }
 0x375   : > { %2636 = vmatmul.f32.gmra.mxu3 %v4605_v26  ;;  %2753 = vmatpush.msrb.mxu2 %v2404_v49  ;;  %v4718_v49 = vld [vmem:[#allocation10 + $0x348] sm:$0xff] }
 0x376   : > { %2688 = vmatpush.msrb.mxu1 %v2388_v36  ;;  %2814 = vmatpush.msra.mxu3 %v2424_v63  ;;  %v2401_v36 = vld [vmem:[#allocation10 + $0x200] sm:$0xff]  ;;  %v2480_v63 = vld [vmem:[#allocation10 + $0x478] sm:$0xff] }
 0x377   : > { %2754 = vmatpush.msrb.mxu2 %v2403_v51  ;;  %2875 = vmatpush.msra.mxu0 %v4712_v20  ;;  %v2419_v51 = vld [vmem:[#allocation10 + $0x290] sm:$0xff] }
 0x378   : > { %2689 = vmatpush.msrb.mxu1 %v2387_v39  ;;  %2815 = vmatpush.msra.mxu3 %v2423_v37  ;;  %v2418_v39 = vld [vmem:[#allocation10 + $0x288] sm:$0xff]  ;;  %v2437_v37 = vld [vmem:[#allocation10 + $0x320] sm:$0xff] }
 0x379   : > { %2755 = vmatpush.msrb.mxu2 %v2402_v16  ;;  %2876 = vmatpush.msra.mxu0 %v2443_v19  ;;  %v2438_v16 = vld [vmem:[#allocation10 + $0x328] sm:$0xff] }
 0x37a   : > { %2690 = vmatpush.msrb.mxu1 %v2386_v43  ;;  %2816 = vmatpush.msra.mxu3 %v2422_v45  ;;  %v2436_v43 = vld [vmem:[#allocation10 + $0x318] sm:$0xff]  ;;  %v2435_v45 = vld [vmem:[#allocation10 + $0x310] sm:$0xff] }
 0x37b   : > { %2509 = vmatmul.f32.gmra.mxu1 %v4607_v23  ;;  %2877 = vmatpush.msra.mxu0 %v4718_v49 }
 0x37c   : > { %2574 = vmatmul.f32.gmra.mxu2 %v4609_v61  ;;  %2817 = vmatpush.msra.mxu3 %v2421_v54  ;;  %v2464_v54 = vld [vmem:[#allocation10 + $0x3f8] sm:$0xff] }
 0x37d   : > { %2639 = vmatmul.f32.gmra.mxu3 %v4611_v24  ;;  %2756 = vmatpush.msrb.mxu2 %v2401_v36  ;;  %v2434_v36 = vld [vmem:[#allocation10 + $0x308] sm:$0xff] }
 0x37e   : > { %2818 = vmatpush.msra.mxu3 %v2420_v59  ;;  %2691 = vmatpush.msrb.mxu1 %v2385_v42  ;;  %v2479_v59 = vld [vmem:[#allocation10 + $0x470] sm:$0xff] }
 0x37f   : > { %2878 = vmatpush.msra.mxu0 %v2441_v3  ;;  %3001 = vmatpush.msra.mxu2 %v2480_v63 }
 0x380   : > { %2819 = vmatpush.msra.mxu3 %v2419_v51  ;;  %v2433_v51 = vld [vmem:[#allocation10 + $0x300] sm:$0xff]  ;;  %2936 = vmatpush.msra.mxu1 %v2464_v54 }
 0x381   : > { %2879 = vmatpush.msra.mxu0 %v2440_v30  ;;  %3002 = vmatpush.msra.mxu2 %v2479_v59  ;;  %v2458_v59 = vld [vmem:[#allocation10 + $0x3c8] sm:$0xff] }
 0x382   : > { %2820 = vmatpush.msra.mxu3 %v2418_v39 }
 0x383   : > { %2512 = vmatmul.f32.gmra.mxu1 %v4613_v38  ;;  %2880 = vmatpush.msra.mxu0 %v2439_v57 }
 0x384   : > { %2577 = vmatmul.f32.gmra.mxu2 %v4616_v9  ;;  %2821 = vmatpush.msra.mxu3 %v2417_v17  ;;  %v2460_v17 = vld [vmem:[#allocation10 + $0x3d8] sm:$0xff] }
 0x385   : > { %2642 = vmatmul.f32.gmra.mxu3 %v4618_v56  ;;  %2881 = vmatpush.msra.mxu0 %v2438_v16 }
 0x386   : > { %3378 = vmatpush.msrb.mxu3 %v4692_v21  ;;  %v2463_v21 = vld [vmem:[#allocation10 + $0x3f0] sm:$0xff] }
 0x387   : > { %2882 = vmatpush.msra.mxu0 %v2437_v37  ;;  %2937 = vmatpush.msra.mxu1 %v2463_v21 }
 0x388   : > { %3379 = vmatpush.msrb.mxu3 %v4695_v48  ;;  %v2478_v48 = vld [vmem:[#allocation10 + $0x468] sm:$0xff] }
 0x389   : > { %2883 = vmatpush.msra.mxu0 %v2436_v43  ;;  %3003 = vmatpush.msra.mxu2 %v2478_v48 }
 0x38a   : > { %3380 = vmatpush.msrb.mxu3 %v4697_v52  ;;  %v2462_v52 = vld [vmem:[#allocation10 + $0x3e8] sm:$0xff] }
 0x38b   : > { %2515 = vmatmul.f32.gmra.mxu1 %v4620_v27  ;;  %2884 = vmatpush.msra.mxu0 %v2435_v45 }
 0x38c   : > { %2580 = vmatmul.f32.gmra.mxu2 %v4623_v34  ;;  %3381 = vmatpush.msrb.mxu3 %v4710_v50  ;;  %v2477_v50 = vld [vmem:[#allocation10 + $0x460] sm:$0xff] }
 0x38d   : > { %2645 = vmatmul.f32.gmra.mxu3 %v4627_v0  ;;  %2885 = vmatpush.msra.mxu0 %v2434_v36 }
 0x38e   : > { %3382 = vmatpush.msrb.mxu3 %v4712_v20  ;;  %2938 = vmatpush.msra.mxu1 %v2462_v52  ;;  %v2457_v52 = vld [vmem:[#allocation10 + $0x3c0] sm:$0xff] }
 0x38f   : > { %2886 = vmatpush.msra.mxu0 %v2433_v51  ;;  %3004 = vmatpush.msra.mxu2 %v2477_v50 }
 0x390   : > { %2887 = vmatmul.f32.vlgmr.msra.gmra.mxu0 %v4607_v23  ;;  %3383 = vmatpush.msrb.mxu3 %v2443_v19  ;;  %v2461_v19 = vld [vmem:[#allocation10 + $0x3e0] sm:$0xff] }
 0x391   : > { %2939 = vmatpush.msra.mxu1 %v2461_v19 }
 0x392   : > { %3384 = vmatpush.msrb.mxu3 %v4718_v49  ;;  %v2476_v49 = vld [vmem:[#allocation10 + $0x458] sm:$0xff] }
 0x393   : > { %2518 = vmatmul.f32.gmra.mxu1 %v4629_v62  ;;  %3005 = vmatpush.msra.mxu2 %v2476_v49  ;;  %v2456_v49 = vld [vmem:[#allocation10 + $0x3b8] sm:$0xff] }
 0x394   : > { %2583 = vmatmul.f32.gmra.mxu2 %v4632_v33  ;;  %3385 = vmatpush.msrb.mxu3 %v2441_v3 }
 0x395   : > { %2648 = vmatmul.f32.gmra.mxu3 %v4636_v11  ;;  %2940 = vmatpush.msra.mxu1 %v2460_v17 }
 0x396   : > { %3386 = vmatpush.msrb.mxu3 %v2440_v30 }
 0x398   : > { %2890 = vmatmul.f32.gmra.mxu0 %v4613_v38  ;;  %3387 = vmatpush.msrb.mxu3 %v2439_v57 }
 0x39a   : > { %3388 = vmatpush.msrb.mxu3 %v2438_v16 }
 0x39b   : > { %2521 = vmatmul.f32.gmra.mxu1 %v4638_v55 }
 0x39c   : > { %2586 = vmatmul.f32.gmra.mxu2 %v4641_v10  ;;  %3389 = vmatpush.msrb.mxu3 %v2437_v37 }
 0x39d   : > { %2651 = vmatmul.f32.gmra.mxu3 %v4645_v31 }
 0x39e   : > { %3390 = vmatpush.msrb.mxu3 %v2436_v43  ;;  %v2459_v43 = vld [vmem:[#allocation10 + $0x3d0] sm:$0xff] }
 0x39f   : > { %2941 = vmatpush.msra.mxu1 %v2459_v43 }
 0x3a0   : > { %2893 = vmatmul.f32.gmra.mxu0 %v4620_v27  ;;  %3391 = vmatpush.msrb.mxu3 %v2435_v45 }
 0x3a1   : > { %2942 = vmatpush.msra.mxu1 %v2458_v59 }
 0x3a2   : > { %3392 = vmatpush.msrb.mxu3 %v2434_v36 }
 0x3a3   : > { %2524 = vmatmul.f32.gmra.mxu1 %v4647_v29 }
 0x3a4   : > { %2589 = vmatmul.f32.gmra.mxu2 %v4650_v44  ;;  %3393 = vmatpush.msrb.mxu3 %v2433_v51 }
 0x3a5   : > { %2654 = vmatmul.f32.gmra.mxu3 %v4654_v35  ;;  %2943 = vmatpush.msra.mxu1 %v2457_v52 }
 0x3a7   : > { %2944 = vmatpush.msra.mxu1 %v2456_v49 }
 0x3a8   : > { %2896 = vmatmul.f32.gmra.mxu0 %v4629_v62 }
 0x3ab   : > { %2527 = vmatmul.f32.gmra.mxu1 %v4656_v53 }
 0x3ac   : > { %2592 = vmatmul.f32.gmra.mxu2 %v4659_v58 }
 0x3ad   : > { %2657 = vmatmul.f32.gmra.mxu3 %v4663_v22 }
 0x3b0   : > { %2899 = vmatmul.f32.gmra.mxu0 %v4638_v55 }
 0x3b3   : > { %2530 = vmatmul.f32.gmra.mxu1 %v4665_v60 }
 0x3b4   : > { %2595 = vmatmul.f32.gmra.mxu2 %v4668_v14 }
 0x3b5   : > { %2660 = vmatmul.f32.gmra.mxu3 %v4672_v46 }
 0x3b8   : > { %2902 = vmatmul.f32.gmra.mxu0 %v4647_v29 }
 0x3bb   : > { %2533 = vmatmul.f32.gmra.mxu1 %v4674_v25 }
 0x3bc   : > { %2598 = vmatmul.f32.gmra.mxu2 %v4677_v13 }
 0x3bd   : > { %2663 = vmatmul.f32.gmra.mxu3 %v4679_v15 }
 0x3c0   : > { %2905 = vmatmul.f32.gmra.mxu0 %v4656_v53 }
 0x3c3   : > { %2536 = vmatmul.f32.gmra.mxu1 %v4683_v5 }
 0x3c4   : > { %2601 = vmatmul.f32.gmra.mxu2 %v4686_v8 }
 0x3c5   : > { %2666 = vmatmul.f32.gmra.mxu3 %v4688_v47 }
 0x3c8   : > { %2908 = vmatmul.f32.gmra.mxu0 %v4665_v60 }
 0x3cb   : > { %2539 = vmatmul.f32.gmra.mxu1 %v4699_v12 }
 0x3cc   : > { %2604 = vmatmul.f32.gmra.mxu2 %v4704_v7 }
 0x3cd   : > { %2669 = vmatmul.f32.gmra.mxu3 %v4706_v41 }
 0x3d0   : > { %2911 = vmatmul.f32.gmra.mxu0 %v4674_v25 }
 0x3d3   : > { %2542 = vmatmul.f32.gmra.mxu1 %v4715_v18 }
 0x3d4   : > { %2607 = vmatmul.f32.gmra.mxu2 %v4721_v28 }
 0x3d5   : > { %2672 = vmatmul.f32.gmra.mxu3 %v4723_v32 }
 0x3d8   : > { %v2498_v20 = vpop.f32.mrf.mxu1  ;;  %2914 = vmatmul.f32.gmra.mxu0 %v4683_v5 }
 0x3db   : > { %2692 = vmatmul.f32.vlgmr.msrb.gmra.mxu1 %v4595_v4  ;;  %v2475_v4 = vld [vmem:[#allocation10 + $0x450] sm:$0xff] }
 0x3dc   : > { %2757 = vmatmul.f32.vlgmr.msrb.gmra.mxu2 %v4597_v1 }
 0x3dd   : > { %2822 = vmatmul.f32.vlgmr.msra.gmra.mxu3 %v4599_v40  ;;  %3006 = vmatpush.msra.mxu2 %v2475_v4 }
 0x3df   : > { %v2563_v3 = vpop.f32.mrf.mxu2 }
 0x3e0   : > { %v2628_v42 = vpop.f32.mrf.mxu3  ;;  %v2564_v30 = vadd.f32 %v2563_v3, %v2498_v20  ;;  %v2501_v39 = vpop.f32.mrf.mxu1  ;;  %2917 = vmatmul.f32.gmra.mxu0 %v4699_v12 }
 0x3e2   : > { %v4753_v57 = vadd.f32 %v2628_v42, %v2564_v30 }
 0x3e3   : > { %2695 = vmatmul.f32.gmra.mxu1 %v4601_v6  ;;  %v2474_v6 = vld [vmem:[#allocation10 + $0x448] sm:$0xff] }
 0x3e4   : > { %2760 = vmatmul.f32.gmra.mxu2 %v4603_v2 }
 0x3e5   : > { %2825 = vmatmul.f32.gmra.mxu3 %v4605_v26  ;;  %3007 = vmatpush.msra.mxu2 %v2474_v6  ;;  %v2453_v6 = vld [vmem:[#allocation10 + $0x3a0] sm:$0xff] }
 0x3e7   : > { %v2566_v1 = vpop.f32.mrf.mxu2 }
 0x3e8   : > { %v2631_v40 = vpop.f32.mrf.mxu3  ;;  %v2567_v16 = vadd.f32 %v2566_v1, %v2501_v39  ;;  %v2504_v63 = vpop.f32.mrf.mxu1  ;;  %v2455_v39 = vld [vmem:[#allocation10 + $0x3b0] sm:$0xff]  ;;  %2920 = vmatmul.f32.gmra.mxu0 %v4715_v18 }
 0x3e9   : > { %2945 = vmatpush.msra.mxu1 %v2455_v39  ;;  %v2111_v39 = vld [vmem:[#allocation3 + $0xd8] sm:$0xff] }
 0x3ea   : > { %v4759_v37 = vadd.f32 %v2631_v40, %v2567_v16  ;;  %v2454_v40 = vld [vmem:[#allocation10 + $0x3a8] sm:$0xff] }
 0x3eb   : > { %2698 = vmatmul.f32.gmra.mxu1 %v4607_v23  ;;  %v2473_v23 = vld [vmem:[#allocation10 + $0x440] sm:$0xff] }
 0x3ec   : > { %2763 = vmatmul.f32.gmra.mxu2 %v4609_v61  ;;  %2946 = vmatpush.msra.mxu1 %v2454_v40  ;;  %v2162_v40 = vld [vmem:[#allocation3 + $0x3a] sm:$0xff] }
 0x3ed   : > { %2828 = vmatmul.f32.gmra.mxu3 %v4611_v24  ;;  %3008 = vmatpush.msra.mxu2 %v2473_v23 }
 0x3ee   : > { %2947 = vmatpush.msra.mxu1 %v2453_v6 }
 0x3ef   : > { %v2569_v2 = vpop.f32.mrf.mxu2 }
 0x3f0   : > { %v2634_v26 = vpop.f32.mrf.mxu3  ;;  %v2570_v45 = vadd.f32 %v2569_v2, %v2504_v63  ;;  %v2507_v54 = vpop.f32.mrf.mxu1 }
 0x3f2   : > { %v4765_v36 = vadd.f32 %v2634_v26, %v2570_v45 }
 0x3f3   : > { %2701 = vmatmul.f32.gmra.mxu1 %v4613_v38  ;;  %v2472_v38 = vld [vmem:[#allocation10 + $0x438] sm:$0xff] }
 0x3f4   : > { %2766 = vmatmul.f32.gmra.mxu2 %v4616_v9 }
 0x3f5   : > { %2831 = vmatmul.f32.gmra.mxu3 %v4618_v56  ;;  %3009 = vmatpush.msra.mxu2 %v2472_v38 }
 0x3f7   : > { %v2572_v61 = vpop.f32.mrf.mxu2 }
 0x3f8   : > { %v2637_v24 = vpop.f32.mrf.mxu3  ;;  %v2573_v51 = vadd.f32 %v2572_v61, %v2507_v54  ;;  %v2510_v21 = vpop.f32.mrf.mxu1  ;;  %v2452_v54 = vld [vmem:[#allocation10 + $0x398] sm:$0xff] }
 0x3f9   : > { %2948 = vmatpush.msra.mxu1 %v2452_v54 }
 0x3fa   : > { %v4771_v48 = vadd.f32 %v2637_v24, %v2573_v51  ;;  %v2451_v51 = vld [vmem:[#allocation10 + $0x390] sm:$0xff] }
 0x3fb   : > { %2704 = vmatmul.f32.gmra.mxu1 %v4620_v27  ;;  %v2471_v27 = vld [vmem:[#allocation10 + $0x430] sm:$0xff] }
 0x3fc   : > { %2769 = vmatmul.f32.gmra.mxu2 %v4623_v34  ;;  %2949 = vmatpush.msra.mxu1 %v2451_v51 }
 0x3fd   : > { %2834 = vmatmul.f32.gmra.mxu3 %v4627_v0  ;;  %3010 = vmatpush.msra.mxu2 %v2471_v27 }
 0x3ff   : > { %v2575_v9 = vpop.f32.mrf.mxu2 }
 0x400   : > { %v2640_v56 = vpop.f32.mrf.mxu3  ;;  %v2576_v50 = vadd.f32 %v2575_v9, %v2510_v21  ;;  %v2513_v20 = vpop.f32.mrf.mxu1  ;;  %v2110_v21 = vld [vmem:[#allocation3 + $0xc8] sm:$0xff] }
 0x402   : > { %v4777_v19 = vadd.f32 %v2640_v56, %v2576_v50 }
 0x403   : > { %2707 = vmatmul.f32.gmra.mxu1 %v4629_v62  ;;  %v2470_v62 = vld [vmem:[#allocation10 + $0x428] sm:$0xff] }
 0x404   : > { %2772 = vmatmul.f32.gmra.mxu2 %v4632_v33 }
 0x405   : > { %2837 = vmatmul.f32.gmra.mxu3 %v4636_v11  ;;  %3011 = vmatpush.msra.mxu2 %v2470_v62 }
 0x407   : > { %v2578_v34 = vpop.f32.mrf.mxu2 }
 0x408   : > { %v2643_v0 = vpop.f32.mrf.mxu3  ;;  %v2579_v3 = vadd.f32 %v2578_v34, %v2513_v20  ;;  %v2516_v42 = vpop.f32.mrf.mxu1  ;;  %v4821_v20 = vld [vmem:[#allocation3 + $0xc9] sm:$0xff] }
 0x40a   : > { %v4783_v30 = vadd.f32 %v2643_v0, %v2579_v3 }
 0x40b   : > { %2710 = vmatmul.f32.gmra.mxu1 %v4638_v55  ;;  %v2469_v55 = vld [vmem:[#allocation10 + $0x420] sm:$0xff] }
 0x40c   : > { %2775 = vmatmul.f32.gmra.mxu2 %v4641_v10 }
 0x40d   : > { %2840 = vmatmul.f32.gmra.mxu3 %v4645_v31  ;;  %3012 = vmatpush.msra.mxu2 %v2469_v55 }
 0x40f   : > { %v2581_v33 = vpop.f32.mrf.mxu2 }
 0x410   : > { %v2646_v11 = vpop.f32.mrf.mxu3  ;;  %v2582_v17 = vadd.f32 %v2581_v33, %v2516_v42  ;;  %v2519_v4 = vpop.f32.mrf.mxu1  ;;  %v2449_v42 = vld [vmem:[#allocation10 + $0x380] sm:$0xff] }
 0x412   : > { %v4789_v1 = vadd.f32 %v2646_v11, %v2582_v17 }
 0x413   : > { %2713 = vmatmul.f32.gmra.mxu1 %v4647_v29  ;;  %v2468_v29 = vld [vmem:[#allocation10 + $0x418] sm:$0xff] }
 0x414   : > { %2778 = vmatmul.f32.gmra.mxu2 %v4650_v44 }
 0x415   : > { %2843 = vmatmul.f32.gmra.mxu3 %v4654_v35  ;;  %3013 = vmatpush.msra.mxu2 %v2468_v29 }
 0x417   : > { %v2584_v10 = vpop.f32.mrf.mxu2 }
 0x418   : > { %v2649_v31 = vpop.f32.mrf.mxu3  ;;  %v2585_v16 = vadd.f32 %v2584_v10, %v2519_v4  ;;  %v2522_v63 = vpop.f32.mrf.mxu1  ;;  %v2112_v4 = vld [vmem:[#allocation3 + $0xe0] sm:$0xff] }
 0x41a   : > { %v4795_v43 = vadd.f32 %v2649_v31, %v2585_v16  ;;  %v2131_v16 = vld [vmem:[#allocation3 + $0x49] sm:$0xff] }
 0x41b   : > { %2716 = vmatmul.f32.gmra.mxu1 %v4656_v53  ;;  %v2467_v53 = vld [vmem:[#allocation10 + $0x410] sm:$0xff] }
 0x41c   : > { %2781 = vmatmul.f32.gmra.mxu2 %v4659_v58  ;;  %v4806_v58 = vld [vmem:[#allocation3 + $0xc0] sm:$0xff] }
 0x41d   : > { %2846 = vmatmul.f32.gmra.mxu3 %v4663_v22  ;;  %3014 = vmatpush.msra.mxu2 %v2467_v53 }
 0x41e   : > { %2923 = vmatmul.f32.gmra.mxu0 %v4806_v58 }
 0x41f   : > { %v2587_v44 = vpop.f32.mrf.mxu2 }
 0x420   : > { %v2652_v35 = vpop.f32.mrf.mxu3  ;;  %v2588_v2 = vadd.f32 %v2587_v44, %v2522_v63  ;;  %v2525_v26 = vpop.f32.mrf.mxu1  ;;  %v2132_v44 = vld [vmem:[#allocation3 + $0x51] sm:$0xff] }
 0x422   : > { %v4801_v45 = vadd.f32 %v2652_v35, %v2588_v2  ;;  %v2164_v35 = vld [vmem:[#allocation3 + $0x52] sm:$0xff] }
 0x423   : > { %2719 = vmatmul.f32.gmra.mxu1 %v4665_v60  ;;  %v4812_v60 = vld [vmem:[#allocation3 + $0xc1] sm:$0xff] }
 0x424   : > { %2784 = vmatmul.f32.gmra.mxu2 %v4668_v14  ;;  %v4816_v14 = vld [vmem:[#allocation3 + $0xc2] sm:$0xff] }
 0x425   : > { %2849 = vmatmul.f32.gmra.mxu3 %v4672_v46  ;;  %v2466_v46 = vld [vmem:[#allocation10 + $0x408] sm:$0xff] }
 0x426   : > { %3015 = vmatpush.msra.mxu2 %v2466_v46  ;;  %2926 = vmatmul.f32.gmra.mxu0 %v2110_v21 }
 0x427   : > { %v2590_v22 = vpop.f32.mrf.mxu2 }
 0x428   : > { %v2655_v59 = vpop.f32.mrf.mxu3  ;;  %v2591_v23 = vadd.f32 %v2590_v22, %v2525_v26  ;;  %v2528_v61 = vpop.f32.mrf.mxu1  ;;  %v2133_v22 = vld [vmem:[#allocation3 + $0x61] sm:$0xff] }
 0x42a   : > { %v4809_v24 = vadd.f32 %v2655_v59, %v2591_v23  ;;  %v2165_v59 = vld [vmem:[#allocation3 + $0x62] sm:$0xff] }
 0x42b   : > { %2722 = vmatmul.f32.gmra.mxu1 %v4674_v25  ;;  %v2450_v25 = vld [vmem:[#allocation10 + $0x388] sm:$0xff] }
 0x42c   : > { %2787 = vmatmul.f32.gmra.mxu2 %v4677_v13  ;;  %v4825_v13 = vld [vmem:[#allocation3 + $0xca] sm:$0xff]  ;;  %2950 = vmatpush.msra.mxu1 %v2450_v25 }
 0x42d   : > { %2852 = vmatmul.f32.gmra.mxu3 %v4679_v15  ;;  %v2465_v15 = vld [vmem:[#allocation10 + $0x400] sm:$0xff] }
 0x42e   : > { %3016 = vmatpush.msra.mxu2 %v2465_v15  ;;  %2951 = vmatpush.msra.mxu1 %v2449_v42  ;;  %v2135_v15 = vld [vmem:[#allocation3 + $0x79] sm:$0xff]  ;;  %v2136_v42 = vld [vmem:[#allocation3 + $0x81] sm:$0xff] }
 0x42f   : > { %v2593_v52 = vpop.f32.mrf.mxu2 }
 0x430   : > { %v2658_v38 = vpop.f32.mrf.mxu3  ;;  %v2594_v9 = vadd.f32 %v2593_v52, %v2528_v61  ;;  %v2531_v56 = vpop.f32.mrf.mxu1  ;;  %v2166_v52 = vld [vmem:[#allocation3 + $0x6a] sm:$0xff] }
 0x432   : > { %v4818_v50 = vadd.f32 %v2658_v38, %v2594_v9 }
 0x433   : > { %2725 = vmatmul.f32.gmra.mxu1 %v4683_v5  ;;  %v2129_v5 = vld [vmem:[#allocation3 + $0x31] sm:$0xff] }
 0x434   : > { %2790 = vmatmul.f32.gmra.mxu2 %v4686_v8  ;;  %v2161_v8 = vld [vmem:[#allocation3 + $0x32] sm:$0xff] }
 0x435   : > { %2855 = vmatmul.f32.gmra.mxu3 %v4688_v47 }
 0x437   : > { %v2596_v49 = vpop.f32.mrf.mxu2 }
 0x438   : > { %v2661_v27 = vpop.f32.mrf.mxu3  ;;  %v2597_v34 = vadd.f32 %v2596_v49, %v2531_v56  ;;  %v2534_v0 = vpop.f32.mrf.mxu1  ;;  %v2167_v49 = vld [vmem:[#allocation3 + $0x7a] sm:$0xff] }
 0x43a   : > { %v4827_v3 = vadd.f32 %v2661_v27, %v2597_v34 }
 0x43b   : > { %2728 = vmatmul.f32.gmra.mxu1 %v4699_v12  ;;  %v2130_v12 = vld [vmem:[#allocation3 + $0x39] sm:$0xff] }
 0x43c   : > { %2793 = vmatmul.f32.gmra.mxu2 %v4704_v7 }
 0x43d   : > { %2858 = vmatmul.f32.gmra.mxu3 %v4706_v41 }
 0x43f   : > { %v2599_v47 = vpop.f32.mrf.mxu2 }
 0x440   : > { %v2664_v62 = vpop.f32.mrf.mxu3  ;;  %v2600_v33 = vadd.f32 %v2599_v47, %v2534_v0  ;;  %v2537_v11 = vpop.f32.mrf.mxu1 }
 0x442   : > { %v4832_v17 = vadd.f32 %v2664_v62, %v2600_v33  ;;  %v2137_v62 = vld [vmem:[#allocation3 + $0x91] sm:$0xff] }
 0x443   : > { %2731 = vmatmul.f32.gmra.mxu1 %v4715_v18  ;;  %v2163_v18 = vld [vmem:[#allocation3 + $0x4a] sm:$0xff]  ;;  %v2169_v33 = vld [vmem:[#allocation3 + $0x92] sm:$0xff] }
 0x444   : > { %2796 = vmatmul.f32.gmra.mxu2 %v4721_v28 }
 0x445   : > { %2861 = vmatmul.f32.gmra.mxu3 %v4723_v32 }
 0x447   : > { %v2602_v7 = vpop.f32.mrf.mxu2 }
 0x448   : > { %v2667_v55 = vpop.f32.mrf.mxu3  ;;  %v2603_v41 = vadd.f32 %v2602_v7, %v2537_v11  ;;  %v2540_v10 = vpop.f32.mrf.mxu1  ;;  %v2170_v7 = vld [vmem:[#allocation3 + $0x9a] sm:$0xff] }
 0x44a   : > { %v4837_v31 = vadd.f32 %v2667_v55, %v2603_v41 }
 0x44b   : > { %2734 = vmatmul.f32.gmra.mxu1 %v4806_v58 }
 0x44c   : > { %2799 = vmatmul.f32.gmra.mxu2 %v4812_v60 }
 0x44d   : > { %2864 = vmatmul.f32.gmra.mxu3 %v4816_v14 }
 0x44f   : > { %v2605_v63 = vpop.f32.mrf.mxu2 }
 0x450   : > { %v2670_v28 = vpop.f32.mrf.mxu3  ;;  %v2606_v6 = vadd.f32 %v2605_v63, %v2540_v10  ;;  %v2543_v32 = vpop.f32.mrf.mxu1 }
 0x452   : > { %v4842_v29 = vadd.f32 %v2670_v28, %v2606_v6 }
 0x453   : > { %2737 = vmatmul.f32.gmra.mxu1 %v2110_v21  ;;  %v2134_v21 = vld [vmem:[#allocation3 + $0x69] sm:$0xff] }
 0x454   : > { %2802 = vmatmul.f32.gmra.mxu2 %v4821_v20 }
 0x455   : > { %2867 = vmatmul.f32.gmra.mxu3 %v4825_v13 }
 0x457   : > { %v2608_v2 = vpop.f32.mrf.mxu2 }
 0x458   : > { %v2609_v26 = vadd.f32 %v2608_v2, %v2543_v32  ;;  %v2693_v54 = vpop.f32.mrf.mxu1  ;;  %v2673_v53 = vpop.f32.mrf.mxu3  ;;  %v2140_v32 = vld [vmem:[#allocation3 + $0xb1] sm:$0xff] }
 0x459   : > { %v2694_v23 = vadd.f32 %v2693_v54, %v4753_v57 }
 0x45a   : > { %v4846_v58 = vadd.f32 %v2673_v53, %v2609_v26 }
 0x45b   : > { %2952 = vmatmul.f32.vlgmr.msra.gmra.mxu1 %v2129_v5 }
 0x45c   : > { %3017 = vmatmul.f32.vlgmr.msra.gmra.mxu2 %v2161_v8 }
 0x45d   : > { %2929 = vmatmul.f32.vlgmr.msrb.gmra.mxu3 %v2111_v39  ;;  %v2168_v39 = vld [vmem:[#allocation3 + $0x82] sm:$0xff] }
 0x45f   : > { %v2758_v61 = vpop.f32.mrf.mxu2 }
 0x460   : > { %v4849_v51 = vadd.f32 %v2758_v61, %v2694_v23  ;;  %v2696_v46 = vpop.f32.mrf.mxu1  ;;  %v2823_v23 = vpop.f32.mrf.mxu3 }
 0x461   : > { %v2697_v38 = vadd.f32 %v2696_v46, %v4759_v37 }
 0x463   : > { %2955 = vmatmul.f32.gmra.mxu1 %v2130_v12 }
 0x464   : > { %3020 = vmatmul.f32.gmra.mxu2 %v2162_v40  ;;  %v2138_v40 = vld [vmem:[#allocation3 + $0x99] sm:$0xff] }
 0x465   : > { %2932 = vmatmul.f32.gmra.mxu3 %v2112_v4 }
 0x467   : > { %v2761_v9 = vpop.f32.mrf.mxu2 }
 0x468   : > { %v4852_v56 = vadd.f32 %v2761_v9, %v2697_v38  ;;  %v2699_v25 = vpop.f32.mrf.mxu1 }
 0x469   : > { %v2700_v57 = vadd.f32 %v2699_v25, %v4765_v36 }
 0x46b   : > { %2958 = vmatmul.f32.gmra.mxu1 %v2131_v16  ;;  %v2139_v16 = vld [vmem:[#allocation3 + $0xa9] sm:$0xff] }
 0x46c   : > { %3023 = vmatmul.f32.gmra.mxu2 %v2163_v18  ;;  %v2171_v18 = vld [vmem:[#allocation3 + $0xaa] sm:$0xff] }
 0x46f   : > { %v2764_v27 = vpop.f32.mrf.mxu2 }
 0x470   : > { %v4855_v34 = vadd.f32 %v2764_v27, %v2700_v57  ;;  %v2702_v0 = vpop.f32.mrf.mxu1  ;;  %v2176_v57 = vld [vmem:[#allocation3 + $0xe2] sm:$0xff] }
 0x471   : > { %v2703_v37 = vadd.f32 %v2702_v0, %v4771_v48 }
 0x473   : > { %2961 = vmatmul.f32.gmra.mxu1 %v2132_v44  ;;  %v2172_v44 = vld [vmem:[#allocation3 + $0xb2] sm:$0xff] }
 0x474   : > { %3026 = vmatmul.f32.gmra.mxu2 %v2164_v35 }
 0x477   : > { %v2767_v5 = vpop.f32.mrf.mxu2 }
 0x478   : > { %v4858_v8 = vadd.f32 %v2767_v5, %v2703_v37  ;;  %v2705_v47 = vpop.f32.mrf.mxu1  ;;  %v2888_v37 = vpop.f32.mrf.mxu0 }
 0x479   : > { %v2706_v36 = vadd.f32 %v2705_v47, %v4777_v19 }
 0x47b   : > { %2964 = vmatmul.f32.gmra.mxu1 %v2133_v22 }
 0x47c   : > { %3029 = vmatmul.f32.gmra.mxu2 %v2165_v59 }
 0x47f   : > { %v2770_v11 = vpop.f32.mrf.mxu2 }
 0x480   : > { %v4861_v4 = vadd.f32 %v2770_v11, %v2706_v36  ;;  %v2708_v12 = vpop.f32.mrf.mxu1 }
 0x481   : > { %v2709_v48 = vadd.f32 %v2708_v12, %v4783_v30  ;;  %v2891_v12 = vpop.f32.mrf.mxu0 }
 0x483   : > { %2967 = vmatmul.f32.gmra.mxu1 %v2134_v21 }
 0x484   : > { %3032 = vmatmul.f32.gmra.mxu2 %v2166_v52  ;;  %v2143_v52 = vld [vmem:[#allocation3 + $0xd9] sm:$0xff] }
 0x487   : > { %v2773_v55 = vpop.f32.mrf.mxu2 }
 0x488   : > { %v4864_v41 = vadd.f32 %v2773_v55, %v2709_v48  ;;  %v2711_v10 = vpop.f32.mrf.mxu1  ;;  %v2824_v55 = vadd.f32 %v2823_v23, %v4849_v51  ;;  %v4915_v51 = vld [vmem:[%s5161_s23] ss:$0 sm:$0xff]  ;;  %s3652_s23 = scalar_lea.hbm %s5163_s2, 512 }
 0x489   : > { %v2712_v19 = vadd.f32 %v2711_v10, %v4789_v1  ;;  %v2894_v48 = vpop.f32.mrf.mxu0 }
 0x48b   : > { %2970 = vmatmul.f32.gmra.mxu1 %v2135_v15  ;;  %v2826_v15 = vpop.f32.mrf.mxu3 }
 0x48c   : > { %3035 = vmatmul.f32.gmra.mxu2 %v2167_v49  ;;  %v2144_v49 = vld [vmem:[#allocation3 + $0xe1] sm:$0xff] }
 0x48f   : > { %v2776_v63 = vpop.f32.mrf.mxu2 }
 0x490   : > { %v4867_v28 = vadd.f32 %v2776_v63, %v2712_v19  ;;  %v2714_v6 = vpop.f32.mrf.mxu1 }
 0x491   : > { %v2715_v30 = vadd.f32 %v2714_v6, %v4795_v43  ;;  %v2897_v19 = vpop.f32.mrf.mxu0  ;;  %v4905_v6 = vld [vmem:[%s5160_s18] ss:$0 sm:$0xff]  ;;  %s3646_s18 = sshra.s32 %s3191_s17, 4  ;;  %s3647_s18 = int_to_ptr.hbm [resolvable:$true] %s3646_s18 }
 0x492   : > { %s3648_s12 = scalar_lea.hbm %s3647_s18, 128  ;;  %p3653_p1 = scmp.lt.s32.totalorder %s3647_s18, %s5163_s2 }
 0x493   : > { %2973 = vmatmul.f32.gmra.mxu1 %v2136_v42  ;;  %p3649_p9 = scmp.ne.s32.totalorder %s3647_s18, %s3648_s12  ;;  %p3654_p4 = scmp.lt.s32.totalorder %s3652_s23, %s3648_s12 }
 0x494   : > { %3038 = vmatmul.f32.gmra.mxu2 %v2168_v39  ;;  %v2829_v39 = vpop.f32.mrf.mxu3 }
 0x495   : > { %p3650_p12 = pnand %p3649_p9, %p3887_p6  ;;  %p3655_p11 = por %p3654_p4, %p3653_p1 }
 0x497   : > { %v2779_v35 = vpop.f32.mrf.mxu2  ;;  %p3651_p13 = pneg %p3650_p12 }
 0x498   : > { %v4870_v2 = vadd.f32 %v2779_v35, %v2715_v30  ;;  %v2717_v26 = vpop.f32.mrf.mxu1 }
 0x499   : > { %v2718_v54 = vadd.f32 %v2717_v26, %v4801_v45  ;;  %v2175_v45 = vld [vmem:[#allocation3 + $0xda] sm:$0xff]  ;;  %v2900_v23 = vpop.f32.mrf.mxu0  ;;  %p3656_p0 = pnand %p3655_p11, %p3651_p13 }
 0x49b   : > { %2976 = vmatmul.f32.gmra.mxu1 %v2137_v62 }
 0x49c   : > { %3041 = vmatmul.f32.gmra.mxu2 %v2169_v33  ;;  %v2832_v33 = vpop.f32.mrf.mxu3 }
 0x49f   : > { %v2782_v53 = vpop.f32.mrf.mxu2 }
 0x4a0   : > { %v4873_v1 = vadd.f32 %v2782_v53, %v2718_v54  ;;  %v2720_v22 = vpop.f32.mrf.mxu1  ;;  %v3068_v54 = vld [vmem:[%s4910_s20] sm:$0xff] }
 0x4a1   : > { %v2721_v59 = vadd.f32 %v2720_v22, %v4809_v24 }
 0x4a3   : > { %2979 = vmatmul.f32.gmra.mxu1 %v2138_v40 }
 0x4a4   : > { %3044 = vmatmul.f32.gmra.mxu2 %v2170_v7 }
 0x4a7   : > { %v2785_v61 = vpop.f32.mrf.mxu2 }
 0x4a8   : > { %v4876_v46 = vadd.f32 %v2785_v61, %v2721_v59  ;;  %v2723_v43 = vpop.f32.mrf.mxu1 }
 0x4a9   : > { %v2724_v21 = vadd.f32 %v2723_v43, %v4818_v50  ;;  %v2830_v43 = vadd.f32 %v2829_v39, %v4855_v34 }
 0x4ab   : > { %2982 = vmatmul.f32.gmra.mxu1 %v2139_v16 }
 0x4ac   : > { %3047 = vmatmul.f32.gmra.mxu2 %v2171_v18  ;;  %v2889_v18 = vadd.f32 %v2888_v37, %v2824_v55 }
 0x4af   : > { %v2788_v38 = vpop.f32.mrf.mxu2 }
 0x4b0   : > { %v4879_v9 = vadd.f32 %v2788_v38, %v2724_v21  ;;  %v2726_v25 = vpop.f32.mrf.mxu1 }
 0x4b1   : > { %v2727_v24 = vadd.f32 %v2726_v25, %v4827_v3  ;;  %v3069_v25 = vld [vmem:[%s4910_s20 + $0x8] sm:$0xff] }
 0x4b3   : > { %2985 = vmatmul.f32.gmra.mxu1 %v2140_v32  ;;  %v2827_v32 = vadd.f32 %v2826_v15, %v4852_v56  ;;  %v2895_v15 = vadd.f32 %v2894_v48, %v2830_v43 }
 0x4b4   : > { %3050 = vmatmul.f32.gmra.mxu2 %v2172_v44 }
 0x4b5   : > { %v2892_v53 = vadd.f32 %v2891_v12, %v2827_v32 }
 0x4b7   : > { %v2791_v27 = vpop.f32.mrf.mxu2 }
 0x4b8   : > { %v4882_v0 = vadd.f32 %v2791_v27, %v2727_v24  ;;  %v2729_v42 = vpop.f32.mrf.mxu1 }
 0x4b9   : > { %v2730_v50 = vadd.f32 %v2729_v42, %v4832_v17 }
 0x4bb   : > { %2988 = vmatmul.f32.gmra.mxu1 %v4812_v60 }
 0x4bc   : > { %3053 = vmatmul.f32.gmra.mxu2 %v4816_v14  ;;  %v2835_v14 = vpop.f32.mrf.mxu3 }
 0x4bf   : > { %v2794_v5 = vpop.f32.mrf.mxu2 }
 0x4c0   : > { %v4887_v47 = vadd.f32 %v2794_v5, %v2730_v50  ;;  %v2732_v3 = vpop.f32.mrf.mxu1  ;;  %v2833_v50 = vadd.f32 %v2832_v33, %v4858_v8  ;;  %v2903_v5 = vpop.f32.mrf.mxu0 }
 0x4c1   : > { %v2733_v62 = vadd.f32 %v2732_v3, %v4837_v31 }
 0x4c3   : > { %2991 = vmatmul.f32.gmra.mxu1 %v4821_v20 }
 0x4c4   : > { %3056 = vmatmul.f32.gmra.mxu2 %v4825_v13  ;;  %v2838_v16 = vpop.f32.mrf.mxu3 }
 0x4c7   : > { %v2797_v36 = vpop.f32.mrf.mxu2 }
 0x4c8   : > { %v4892_v11 = vadd.f32 %v2797_v36, %v2733_v62  ;;  %v2735_v17 = vpop.f32.mrf.mxu1  ;;  %v3070_v62 = vld [vmem:[%s4910_s20 + $0x10] sm:$0xff]  ;;  %v2898_v36 = vadd.f32 %v2897_v19, %v2833_v50  ;;  %v2906_v55 = vpop.f32.mrf.mxu0 }
 0x4c9   : > { %v2736_v60 = vadd.f32 %v2735_v17, %v4842_v29 }
 0x4cb   : > { %2994 = vmatmul.f32.gmra.mxu1 %v2143_v52 }
 0x4cc   : > { %3059 = vmatmul.f32.gmra.mxu2 %v2175_v45  ;;  %v2841_v26 = vpop.f32.mrf.mxu3 }
 0x4cf   : > { %v2800_v40 = vpop.f32.mrf.mxu2 }
 0x4d0   : > { %v4895_v7 = vadd.f32 %v2800_v40, %v2736_v60  ;;  %v2738_v31 = vpop.f32.mrf.mxu1 }
 0x4d1   : > { %v2739_v20 = vadd.f32 %v2738_v31, %v4846_v58 }
 0x4d3   : > { %2997 = vmatmul.f32.gmra.mxu1 %v2144_v49 }
 0x4d4   : > { %3062 = vmatmul.f32.gmra.mxu2 %v2176_v57  ;;  %v2844_v49 = vpop.f32.mrf.mxu3 }
 0x4d7   : > { %v2803_v13 = vpop.f32.mrf.mxu2 }
 0x4d8   : > { %v4899_v10 = vadd.f32 %v2803_v13, %v2739_v20  ;;  %v2953_v29 = vpop.f32.mrf.mxu1  ;;  %v2836_v20 = vadd.f32 %v2835_v14, %v4861_v4 }
 0x4d9   : > { %v2954_v63 = vadd.f32 %v2953_v29, %v2889_v18  ;;  %v3071_v29 = vld [vmem:[%s4910_s20 + $0x18] sm:$0xff] }
 0x4da   : > { %v2901_v18 = vadd.f32 %v2900_v23, %v2836_v20 }
 0x4dc   : > { %v2847_v40 = vpop.f32.mrf.mxu3 }
 0x4df   : > { %v3018_v58 = vpop.f32.mrf.mxu2 }
 0x4e0   : > { %v3019_v44 = vadd.f32 %v3018_v58, %v2954_v63  ;;  %v2956_v30 = vpop.f32.mrf.mxu1 }
 0x4e1   : > { %v2957_v59 = vadd.f32 %v2956_v30, %v2892_v53  ;;  %v3072_v53 = vld [vmem:[%s4910_s20 + $0x20] sm:$0xff] }
 0x4e2   : > { %v3088_v35 = vmul.f32 %v4905_v6, %v3019_v44  ;;  %v2839_v44 = vadd.f32 %v2838_v16, %v4864_v41 }
 0x4e4   : > { %v3108_v56 = vadd.f32 %v4915_v51, %v3088_v35  ;;  %v2850_v35 = vpop.f32.mrf.mxu3 }
 0x4e6   : > { %v3124_v22 = vadd.f32 %v3108_v56, %v3068_v54  ;;  %v2904_v56 = vadd.f32 %v2903_v5, %v2839_v44  ;;  %v3074_v5 = vld [vmem:[%s4910_s20 + $0x30] sm:$0xff] }
 0x4e7   : > { %v3021_v61 = vpop.f32.mrf.mxu2 }
 0x4e8   : > { %v3140_v21 = vmax.f32 %v3124_v22, 0.0  ;;  %v3022_v52 = vadd.f32 %v3021_v61, %v2957_v59  ;;  %v2959_v45 = vpop.f32.mrf.mxu1  ;;  %v2909_v59 = vpop.f32.mrf.mxu0 }
 0x4e9   : > { %v2960_v27 = vadd.f32 %v2959_v45, %v2895_v15 }
 0x4ea   : > { %3156 = vst [vmem:[%s3977_s14] sm:$0xff] %v3140_v21  ;;  %v3089_v38 = vmul.f32 %v4905_v6, %v3022_v52  ;;  %v2842_v21 = vadd.f32 %v2841_v26, %v4867_v28 }
 0x4ec   : > { %v3109_v24 = vadd.f32 %v4915_v51, %v3089_v38  ;;  %v2853_v38 = vpop.f32.mrf.mxu3  ;;  %v2907_v15 = vadd.f32 %v2906_v55, %v2842_v21  ;;  %v3077_v21 = vld [vmem:[%s4910_s20 + $0x48] sm:$0xff] }
 0x4ee   : > { %v3125_v57 = vadd.f32 %v3109_v24, %v3069_v25  ;;  %v3073_v25 = vld [vmem:[%s4910_s20 + $0x28] sm:$0xff] }
 0x4ef   : > { %v3024_v42 = vpop.f32.mrf.mxu2 }
 0x4f0   : > { %v3141_v37 = vmax.f32 %v3125_v57, 0.0  ;;  %v3025_v34 = vadd.f32 %v3024_v42, %v2960_v27  ;;  %v2962_v39 = vpop.f32.mrf.mxu1  ;;  %v2912_v42 = vpop.f32.mrf.mxu0 }
 0x4f1   : > { %v2963_v60 = vadd.f32 %v2962_v39, %v2898_v36 }
 0x4f2   : > { %3157 = vst [vmem:[%s3977_s14 + $0x8] sm:$0xff] %v3141_v37  ;;  %v3090_v3 = vmul.f32 %v4905_v6, %v3025_v34  ;;  %v2845_v37 = vadd.f32 %v2844_v49, %v4870_v2 }
 0x4f4   : > { %v3110_v17 = vadd.f32 %v4915_v51, %v3090_v3  ;;  %v2910_v3 = vadd.f32 %v2909_v59, %v2845_v37  ;;  %v2856_v36 = vpop.f32.mrf.mxu3  ;;  %v2854_v59 = vadd.f32 %v2853_v38, %v4879_v9 }
 0x4f6   : > { %v3126_v12 = vadd.f32 %v3110_v17, %v3070_v62 }
 0x4f7   : > { %v3027_v31 = vpop.f32.mrf.mxu2 }
 0x4f8   : > { %v3142_v8 = vmax.f32 %v3126_v12, 0.0  ;;  %v3028_v33 = vadd.f32 %v3027_v31, %v2963_v60  ;;  %v2965_v48 = vpop.f32.mrf.mxu1  ;;  %v2848_v31 = vadd.f32 %v2847_v40, %v4873_v1 }
 0x4f9   : > { %v2966_v58 = vadd.f32 %v2965_v48, %v2901_v18  ;;  %v3075_v48 = vld [vmem:[%s4910_s20 + $0x38] sm:$0xff] }
 0x4fa   : > { %3158 = vst [vmem:[%s3977_s14 + $0x10] sm:$0xff] %v3142_v8  ;;  %v3091_v13 = vmul.f32 %v4905_v6, %v3028_v33  ;;  %v2915_v8 = vpop.f32.mrf.mxu0 }
 0x4fc   : > { %v3111_v19 = vadd.f32 %v4915_v51, %v3091_v13  ;;  %v2913_v13 = vadd.f32 %v2912_v42, %v2848_v31 }
 0x4fe   : > { %v3127_v63 = vadd.f32 %v3111_v19, %v3071_v29  ;;  %v2859_v19 = vpop.f32.mrf.mxu3 }
 0x4ff   : > { %v3030_v32 = vpop.f32.mrf.mxu2 }
 0x500   : > { %v3143_v30 = vmax.f32 %v3127_v63, 0.0  ;;  %v3031_v4 = vadd.f32 %v3030_v32, %v2966_v58  ;;  %v2968_v14 = vpop.f32.mrf.mxu1  ;;  %v2851_v58 = vadd.f32 %v2850_v35, %v4876_v46 }
 0x501   : > { %v2969_v61 = vadd.f32 %v2968_v14, %v2904_v56 }
 0x502   : > { %3159 = vst [vmem:[%s3977_s14 + $0x18] sm:$0xff] %v3143_v30  ;;  %v3092_v54 = vmul.f32 %v4905_v6, %v3031_v4  ;;  %v2918_v30 = vpop.f32.mrf.mxu0  ;;  %v3076_v4 = vld [vmem:[%s4910_s20 + $0x40] sm:$0xff]  ;;  %v2916_v14 = vadd.f32 %v2915_v8, %v2851_v58 }
 0x504   : > { %v3112_v22 = vadd.f32 %v4915_v51, %v3092_v54 }
 0x506   : > { %v3128_v23 = vadd.f32 %v3112_v22, %v3072_v53 }
 0x507   : > { %v3033_v43 = vpop.f32.mrf.mxu2 }
 0x508   : > { %v3144_v41 = vmax.f32 %v3128_v23, 0.0  ;;  %v3034_v16 = vadd.f32 %v3033_v43, %v2969_v61  ;;  %v2971_v52 = vpop.f32.mrf.mxu1  ;;  %v2862_v61 = vpop.f32.mrf.mxu3 }
 0x509   : > { %v2972_v27 = vadd.f32 %v2971_v52, %v2907_v15 }
 0x50a   : > { %3160 = vst [vmem:[%s3977_s14 + $0x20] sm:$0xff] %v3144_v41  ;;  %v3093_v45 = vmul.f32 %v4905_v6, %v3034_v16  ;;  %v2919_v41 = vadd.f32 %v2918_v30, %v2854_v59  ;;  %v2921_v52 = vpop.f32.mrf.mxu0 }
 0x50c   : > { %v3113_v24 = vadd.f32 %v4915_v51, %v3093_v45 }
 0x50e   : > { %v3129_v57 = vadd.f32 %v3113_v24, %v3073_v25  ;;  %v2857_v24 = vadd.f32 %v2856_v36, %v4882_v0 }
 0x50f   : > { %v3036_v50 = vpop.f32.mrf.mxu2 }
 0x510   : > { %v3145_v28 = vmax.f32 %v3129_v57, 0.0  ;;  %v3037_v26 = vadd.f32 %v3036_v50, %v2972_v27  ;;  %v2974_v34 = vpop.f32.mrf.mxu1  ;;  %v2865_v42 = vpop.f32.mrf.mxu3  ;;  %v3078_v50 = vld [vmem:[%s4910_s20 + $0x50] sm:$0xff]  ;;  %v2922_v37 = vadd.f32 %v2921_v52, %v2857_v24 }
 0x511   : > { %v2975_v12 = vadd.f32 %v2974_v34, %v2910_v3  ;;  %v2860_v3 = vadd.f32 %v2859_v19, %v4887_v47 }
 0x512   : > { %3161 = vst [vmem:[%s3977_s14 + $0x28] sm:$0xff] %v3145_v28  ;;  %v3094_v39 = vmul.f32 %v4905_v6, %v3037_v26 }
 0x514   : > { %v3114_v62 = vadd.f32 %v4915_v51, %v3094_v39  ;;  %v2924_v39 = vpop.f32.mrf.mxu0 }
 0x516   : > { %v3130_v17 = vadd.f32 %v3114_v62, %v3074_v5 }
 0x517   : > { %v3039_v60 = vpop.f32.mrf.mxu2 }
 0x518   : > { %v3146_v20 = vmax.f32 %v3130_v17, 0.0  ;;  %v3040_v2 = vadd.f32 %v3039_v60, %v2975_v12  ;;  %v2977_v49 = vpop.f32.mrf.mxu1  ;;  %v3079_v12 = vld [vmem:[%s4910_s20 + $0x58] sm:$0xff]  ;;  %v2925_v60 = vadd.f32 %v2924_v39, %v2860_v3 }
 0x519   : > { %v2978_v18 = vadd.f32 %v2977_v49, %v2913_v13 }
 0x51a   : > { %3162 = vst [vmem:[%s3977_s14 + $0x30] sm:$0xff] %v3146_v20  ;;  %v3095_v33 = vmul.f32 %v4905_v6, %v3040_v2  ;;  %v2868_v20 = vpop.f32.mrf.mxu3 }
 0x51c   : > { %v3115_v55 = vadd.f32 %v4915_v51, %v3095_v33  ;;  %v2863_v33 = vadd.f32 %v2862_v61, %v4892_v11 }
 0x51e   : > { %v3131_v29 = vadd.f32 %v3115_v55, %v3075_v48  ;;  %v2927_v55 = vpop.f32.mrf.mxu0 }
 0x51f   : > { %v3042_v63 = vpop.f32.mrf.mxu2  ;;  %v2928_v19 = vadd.f32 %v2927_v55, %v2863_v33 }
 0x520   : > { %v3147_v1 = vmax.f32 %v3131_v29, 0.0  ;;  %v3043_v40 = vadd.f32 %v3042_v63, %v2978_v18  ;;  %v2980_v32 = vpop.f32.mrf.mxu1  ;;  %v3080_v18 = vld [vmem:[%s4910_s20 + $0x60] sm:$0xff] }
 0x521   : > { %v2981_v56 = vadd.f32 %v2980_v32, %v2916_v14 }
 0x522   : > { %3163 = vst [vmem:[%s3977_s14 + $0x38] sm:$0xff] %v3147_v1  ;;  %v3096_v44 = vmul.f32 %v4905_v6, %v3043_v40  ;;  %v2930_v40 = vpop.f32.mrf.mxu3 }
 0x524   : > { %v3116_v54 = vadd.f32 %v4915_v51, %v3096_v44 }
 0x526   : > { %v3132_v53 = vadd.f32 %v3116_v54, %v3076_v4  ;;  %v2866_v4 = vadd.f32 %v2865_v42, %v4895_v7  ;;  %v3081_v54 = vld [vmem:[%s4910_s20 + $0x68] sm:$0xff] }
 0x527   : > { %v3045_v22 = vpop.f32.mrf.mxu2 }
 0x528   : > { %v3148_v23 = vmax.f32 %v3132_v53, 0.0  ;;  %v3046_v46 = vadd.f32 %v3045_v22, %v2981_v56  ;;  %v2983_v35 = vpop.f32.mrf.mxu1  ;;  %v2931_v53 = vadd.f32 %v2930_v40, %v2866_v4 }
 0x529   : > { %v2984_v25 = vadd.f32 %v2983_v35, %v2919_v41 }
 0x52a   : > { %3164 = vst [vmem:[%s3977_s14 + $0x40] sm:$0xff] %v3148_v23  ;;  %v3097_v43 = vmul.f32 %v4905_v6, %v3046_v46  ;;  %v2933_v61 = vpop.f32.mrf.mxu3 }
 0x52c   : > { %v3117_v16 = vadd.f32 %v4915_v51, %v3097_v43  ;;  %v2869_v43 = vadd.f32 %v2868_v20, %v4899_v10 }
 0x52e   : > { %v3133_v45 = vadd.f32 %v3117_v16, %v3077_v21  ;;  %v3082_v21 = vld [vmem:[%s4910_s20 + $0x70] sm:$0xff]  ;;  %v2934_v16 = vadd.f32 %v2933_v61, %v2869_v43 }
 0x52f   : > { %v3048_v15 = vpop.f32.mrf.mxu2 }
 0x530   : > { %v3149_v9 = vmax.f32 %v3133_v45, 0.0  ;;  %v3049_v38 = vadd.f32 %v3048_v15, %v2984_v25  ;;  %v2986_v57 = vpop.f32.mrf.mxu1 }
 0x531   : > { %v2987_v34 = vadd.f32 %v2986_v57, %v2922_v37 }
 0x532   : > { %3165 = vst [vmem:[%s3977_s14 + $0x48] sm:$0xff] %v3149_v9  ;;  %v3098_v27 = vmul.f32 %v4905_v6, %v3049_v38  ;;  %v3083_v38 = vld [vmem:[%s4910_s20 + $0x78] sm:$0xff] }
 0x534   : > { %v3118_v28 = vadd.f32 %v4915_v51, %v3098_v27 }
 0x536   : > { %v3134_v26 = vadd.f32 %v3118_v28, %v3078_v50 }
 0x537   : > { %v3051_v5 = vpop.f32.mrf.mxu2 }
 0x538   : > { %v3150_v0 = vmax.f32 %v3134_v26, 0.0  ;;  %v3052_v62 = vadd.f32 %v3051_v5, %v2987_v34  ;;  %v2989_v36 = vpop.f32.mrf.mxu1 }
 0x539   : > { %v2990_v49 = vadd.f32 %v2989_v36, %v2925_v60 }
 0x53a   : > { %3166 = vst [vmem:[%s3977_s14 + $0x50] sm:$0xff] %v3150_v0  ;;  %v3099_v17 = vmul.f32 %v4905_v6, %v3052_v62 }
 0x53c   : > { %v3119_v31 = vadd.f32 %v4915_v51, %v3099_v17 }
 0x53e   : > { %v3135_v2 = vadd.f32 %v3119_v31, %v3079_v12 }
 0x53f   : > { %v3054_v8 = vpop.f32.mrf.mxu2 }
 0x540   : > { %v3151_v48 = vmax.f32 %v3135_v2, 0.0  ;;  %v3055_v47 = vadd.f32 %v3054_v8, %v2990_v49  ;;  %v2992_v13 = vpop.f32.mrf.mxu1 }
 0x541   : > { %v2993_v1 = vadd.f32 %v2992_v13, %v2928_v19 }
 0x542   : > { %3167 = vst [vmem:[%s3977_s14 + $0x58] sm:$0xff] %v3151_v48  ;;  %v3100_v29 = vmul.f32 %v4905_v6, %v3055_v47 }
 0x544   : > { %v3120_v63 = vadd.f32 %v4915_v51, %v3100_v29 }
 0x546   : > { %v3136_v58 = vadd.f32 %v3120_v63, %v3080_v18 }
 0x547   : > { %v3057_v32 = vpop.f32.mrf.mxu2 }
 0x548   : > { %v3152_v11 = vmax.f32 %v3136_v58, 0.0  ;;  %v3058_v44 = vadd.f32 %v3057_v32, %v2993_v1  ;;  %v2995_v30 = vpop.f32.mrf.mxu1 }
 0x549   : > { %v2996_v59 = vadd.f32 %v2995_v30, %v2931_v53 }
 0x54a   : > { %3168 = vst [vmem:[%s3977_s14 + $0x60] sm:$0xff] %v3152_v11  ;;  %v3101_v14 = vmul.f32 %v4905_v6, %v3058_v44 }
 0x54c   : > { %v3121_v56 = vadd.f32 %v4915_v51, %v3101_v14 }
 0x54e   : > { %v3137_v22 = vadd.f32 %v3121_v56, %v3081_v54 }
 0x54f   : > { %v3060_v23 = vpop.f32.mrf.mxu2 }
 0x550   : > { %v3153_v46 = vmax.f32 %v3137_v22, 0.0  ;;  %v3061_v35 = vadd.f32 %v3060_v23, %v2996_v59  ;;  %v2998_v41 = vpop.f32.mrf.mxu1 }
 0x551   : > { %v2999_v25 = vadd.f32 %v2998_v41, %v2934_v16 }
 0x552   : > { %3169 = vst [vmem:[%s3977_s14 + $0x68] sm:$0xff] %v3153_v46  ;;  %v3102_v7 = vmul.f32 %v4905_v6, %v3061_v35 }
 0x554   : > { %v3122_v52 = vadd.f32 %v4915_v51, %v3102_v7 }
 0x556   : > { %v3138_v45 = vadd.f32 %v3122_v52, %v3082_v21 }
 0x557   : > { %v3063_v15 = vpop.f32.mrf.mxu2 }
 0x558   : > { %v3154_v24 = vmax.f32 %v3138_v45, 0.0  ;;  %v3064_v9 = vadd.f32 %v3063_v15, %v2999_v25 }
 0x55a   : > { %3170 = vst [vmem:[%s3977_s14 + $0x70] sm:$0xff] %v3154_v24  ;;  %v3103_v10 = vmul.f32 %v4905_v6, %v3064_v9 }
 0x55c   : > { %v3123_v57 = vadd.f32 %v4915_v51, %v3103_v10 }
 0x55e   : > { %v3139_v27 = vadd.f32 %v3123_v57, %v3083_v38 }
 0x560   : > { %v3155_v42 = vmax.f32 %v3139_v27, 0.0 }
 0x562   : > { %3171 = vst [vmem:[%s3977_s14 + $0x78] sm:$0xff] %v3155_v42 }
 0x563   : > { %3659 = shalt.err (!%p3656_p0)
}
 0x564   : > { %s3775_s5 = smov 128   ;;  %s3776_s14 = smov 8  }
 0x565   : > { %3404 = dma.vmem_to_hbm [thread:$0]  (%p3887_p6), %s3189_s8, 2048, %s3191_s17, %s3173_s15, %s3775_s5, %s3775_s5, %s3776_s14  }
 0x566 PF: > { %s5165_s22 = sld [smem:[#allocation15_spill]]  ;;  %p3426_p2 = scmp.ge.s32.totalorder %s3762_s11, 2 }
 0x568   : > { %p3418_p3 = pnand %p3426_p2, %p3893_p10 }
 0x56a   : > { %p3419_p5 = pneg %p3418_p3 }
 0x56c   : > { %s3205_s30 = sand.u32 1, %s5165_s22  }
 0x56d   : > { %s3206_s13 = scalar_lea.sflag [#allocation7], %s3205_s30 }
 0x56e   : > { %3717 = dma.done.wait (%p3419_p5), %s3206_s13, 2048  }
 0x56f   : > { %3719 = vsyncadd (%p3419_p5), %s3206_s13, 4294965248  ;;  %s24_s11 = sadd.s32 1, %s3762_s11   ;;  %s5167_s19 = smov %s3941_s24 }
 0x570   : > { %p21_p7 = scmp.ge.s32.totalorder %s24_s11, 6   ;;  %s5168_s30 = sld [smem:[#allocation17_spill]] }
 0x571   : > { %s5169_s9 = sld [smem:[#allocation20_spill]]  ;;  %s5171_s24 = smov %s3726_s25 }
 0x572   : > { %s5170_s6 = sld [smem:[#allocation21_spill]]  ;;  %s5172_s25 = smov %s3730_s26 }
 0x573   : > { %s5173_s26 = smov %s3944_s27  ;;  %s5174_s27 = smov %s3738_s28 }
 0x574   : > { %s5175_s28 = smov %s3742_s29  ;;  %s5176_s29 = smov %s5167_s19 }
 0x575   : > { %s5177_s8 = smov %s3758_s10  ;;  %23 = sbr.rel (!%p21_p7) target bundleno = 16 (0x10), region = 135 }
 0x578   : > { %s5178_s10 = smov %s5170_s6 }
 0x57a   :  { %3212 = vsyncpa [#allocation6], 1 }
 0x57b   :  { %3214 = vsyncpa [#allocation6 + $0x1], 1 }
 0x57c   :  { %3215 = vsyncpa [#allocation9], 1 }
 0x57d   :  { %3216 = vsyncpa [#allocation7], 1 }
 0x57e   :  { %3218 = vsyncpa [#allocation7 + $0x1], 1 }

</bundles_post_ra>
